<compile_context>
chip_gen: v7x
topology: tpu7x:2x2x1
jax: 0.10.0
libtpu: 0.0.40
codegen_flags: <defaults>
</compile_context>

<pallas_src>
import jax
import jax.numpy as jnp
from jax.experimental import pallas as pl
from jax.experimental.pallas import tpu as pltpu

LN_EPS = 1e-5  # PyTorch nn.LayerNorm default


# ---------------------------------------------------------------------------
# Helpers
# ---------------------------------------------------------------------------

def _round_up(x, m):
    return ((x + m - 1) // m) * m


def _round_down(x, m):
    return (x // m) * m


def _vmem_budget():
    """Return (vmem_limit_bytes, small_vmem) for the attached TPU generation."""
    cap = None
    try:
        info = pltpu.get_tpu_info()
        cap = getattr(info, "vmem_capacity_bytes", None)
    except Exception:
        cap = None
    if cap is None:
        cap = 64 * 1024 * 1024  # unknown -> assume smallest (v7x-class) VMEM
    small_vmem = cap <= 64 * 1024 * 1024
    # Leave headroom for compiler-internal scratch and pipeline buffers.
    limit = int(cap) - 16 * 1024 * 1024
    limit = max(32 * 1024 * 1024, min(limit, 112 * 1024 * 1024))
    return limit, small_vmem


def _pick_batch_tile(B, small_vmem):
    if B <= 128:
        return B  # single whole-batch step; launch/DMA latency dominates anyway
    if small_vmem:
        # v7x-like: 2 TensorCores + 64 MiB VMEM -> modest tiles, >=2 parallel
        # steps whenever B >= 256 so both cores get a batch slice.
        max_tile = 512
        if B >= 256:
            max_tile = min(max_tile, max(128, _round_down(B // 2, 128)))
    else:
        # v5e/v6e: single TensorCore + 128 MiB VMEM -> amortize per-step cost.
        max_tile = 1024
    for t in range(max_tile, 127, -128):
        if B % t == 0:
            return t
    # No divisor that is a multiple of 128: wrapper pads B up to this tile.
    return 256 if B >= 512 else 128


def _pick_col_tile(out_cols_pad):
    cap = min(2048, out_cols_pad)
    for t in range(cap, 127, -128):
        if out_cols_pad % t == 0:
            return t
    return 128


def _layernorm_relu(x, gamma, beta):
    # Fused moments: sum(x) and sum(x*x) are independent reductions (run
    # concurrently on the XLU) instead of serializing mean -> centered -> var.
    inv_d = 1.0 / x.shape[-1]
    s1 = jnp.sum(x, axis=-1, keepdims=True)
    s2 = jnp.sum(x * x, axis=-1, keepdims=True)
    mu = s1 * inv_d
    var = jnp.maximum(s2 * inv_d - mu * mu, 0.0)  # guard cancellation
    y = (x - mu) * jax.lax.rsqrt(var + LN_EPS)
    return jnp.maximum(y * gamma + beta, 0.0)


# ---------------------------------------------------------------------------
# Kernel
# ---------------------------------------------------------------------------

def _make_kernel(latent_dim, batch_tile):
    # Layer 1 has K = latent_dim (typically 4).  For tiny batch tiles, run it
    # as broadcast-FMAs on the VPU (MXU result-FIFO latency would dominate a
    # padding-only pass).  For M >= 128 the MXU has slack while LN loads the
    # VPU/XLU, so use the MXU and free VALU slots.
    use_mxu_layer1 = (latent_dim > 8) or (batch_tile >= 128)

    def kernel(
        z_ref,
        w1_ref, b1_ref, g1_ref, be1_ref,
        w2_ref, b2_ref, g2_ref, be2_ref,
        w3_ref, b3_ref, g3_ref, be3_ref,
        w4_ref, b4_ref,
        out_ref,
        h_ref,          # VMEM scratch (batch_tile, 512) bf16 — trunk activations
    ):
        # ---- Trunk (layers 1..3): once per batch tile, reused over col tiles.
        @pl.when(pl.program_id(1) == 0)
        def _():
            z = z_ref[...]  # (bt, latent) f32
            if use_mxu_layer1:
                h = jnp.dot(z.astype(jnp.bfloat16),
                            w1_ref[...].astype(jnp.bfloat16),
                            preferred_element_type=jnp.float32) + b1_ref[...]
            else:
                w1 = w1_ref[...]
                acc = z[:, 0:1] * w1[0:1, :]
                for k in range(1, latent_dim):        # static, tiny trip count
                    acc = acc + z[:, k:k + 1] * w1[k:k + 1, :]
                h = acc + b1_ref[...]
            h = _layernorm_relu(h, g1_ref[...], be1_ref[...])

            h = jnp.dot(h.astype(jnp.bfloat16), w2_ref[...],
                        preferred_element_type=jnp.float32) + b2_ref[...]
            h = _layernorm_relu(h, g2_ref[...], be2_ref[...])

            h = jnp.dot(h.astype(jnp.bfloat16), w3_ref[...],
                        preferred_element_type=jnp.float32) + b3_ref[...]
            h = _layernorm_relu(h, g3_ref[...], be3_ref[...])

            h_ref[...] = h.astype(jnp.bfloat16)

        # ---- Output layer: one column tile of (512 -> out_cols), no activation.
        out = jnp.dot(h_ref[...], w4_ref[...],
                      preferred_element_type=jnp.float32) + b4_ref[...]
        out_ref[...] = out.astype(out_ref.dtype)

    return kernel


# ---------------------------------------------------------------------------
# Wrapper
# ---------------------------------------------------------------------------

def mlp_decoder_forward(z, params, *, output_size, output_dim,
                        batch_tile=None, out_dtype=jnp.float32):
    """Runs the fused MLP decoder. z: (B, latent_dim) float32."""
    B, latent_dim = z.shape
    out_cols = output_size * output_dim
    (w1, b1, g1, be1, w2, b2, g2, be2, w3, b3, g3, be3, w4, b4) = params

    vmem_limit, small_vmem = _vmem_budget()
    if batch_tile is None:
        batch_tile = _pick_batch_tile(B, small_vmem)

    # Pad batch rows / output columns so every tile is dense ((8,128)-aligned):
    # padded rows/cols are computed on zeros and sliced off afterwards.
    B_pad = _round_up(B, batch_tile)
    out_cols_pad = _round_up(out_cols, 128)
    col_tile = _pick_col_tile(out_cols_pad)

    if B_pad != B:
        z = jnp.pad(z, ((0, B_pad - B), (0, 0)))
    if out_cols_pad != out_cols:
        w4 = jnp.pad(w4, ((0, 0), (0, out_cols_pad - out_cols)))
        b4 = jnp.pad(b4, ((0, 0), (0, out_cols_pad - out_cols)))

    # bf16 matmul operands (f32 accumulation in-kernel); biases / LN stay f32.
    # w1 stays f32: tiny, and the VPU path consumes it directly.
    w2c = w2.astype(jnp.bfloat16)
    w3c = w3.astype(jnp.bfloat16)
    w4c = w4.astype(jnp.bfloat16)

    grid = (B_pad // batch_tile, out_cols_pad // col_tile)
    kernel = _make_kernel(latent_dim, batch_tile)

    def run(single_buffer_constants):
        def const_spec(arr):
            # Constant-index operands are only DMA'd once; single-buffer them
            # to halve their VMEM footprint.
            if single_buffer_constants:
                return pl.BlockSpec(arr.shape, lambda i, j: (0, 0),
                                    pipeline_mode=pl.Buffered(1))
            return pl.BlockSpec(arr.shape, lambda i, j: (0, 0))

        if grid[1] == 1 and single_buffer_constants:
            # Only one column tile -> w4/b4 are effectively constant too.
            w4_spec = pl.BlockSpec((512, col_tile), lambda i, j: (0, j),
                                   pipeline_mode=pl.Buffered(1))
            b4_spec = pl.BlockSpec((1, col_tile), lambda i, j: (0, j),
                                   pipeline_mode=pl.Buffered(1))
        else:
            # Multiple column tiles: keep default double-buffering so the next
            # w4 tile DMA overlaps the current dot.
            w4_spec = pl.BlockSpec((512, col_tile), lambda i, j: (0, j))
            b4_spec = pl.BlockSpec((1, col_tile), lambda i, j: (0, j))

        in_specs = [
            pl.BlockSpec((batch_tile, latent_dim), lambda i, j: (i, 0)),   # z
            const_spec(w1), const_spec(b1), const_spec(g1), const_spec(be1),
            const_spec(w2c), const_spec(b2), const_spec(g2), const_spec(be2),
            const_spec(w3c), const_spec(b3), const_spec(g3), const_spec(be3),
            w4_spec, b4_spec,
        ]

        return pl.pallas_call(
            kernel,
            out_shape=jax.ShapeDtypeStruct((B_pad, out_cols_pad), out_dtype),
            grid_spec=pltpu.PrefetchScalarGridSpec(
                num_scalar_prefetch=0,
                grid=grid,
                in_specs=in_specs,
                out_specs=pl.BlockSpec((batch_tile, col_tile),
                                       lambda i, j: (i, j)),
                scratch_shapes=[pltpu.VMEM((batch_tile, 512), jnp.bfloat16)],
            ),
            compiler_params=pltpu.CompilerParams(
                dimension_semantics=("parallel", "arbitrary"),
                vmem_limit_bytes=vmem_limit,
            ),
        )(z, w1, b1, g1, be1, w2c, b2, g2, be2, w3c, b3, g3, be3, w4c, b4)

    try:
        out_flat = run(single_buffer_constants=True)
    except Exception:
        # TODO(synk): fall back if this toolchain rejects Buffered(1) operands.
        out_flat = run(single_buffer_constants=False)

    out_flat = out_flat[:B, :out_cols]
    # Same as torch: out.view(B, output_size, output_dim)
    return out_flat.reshape(B, output_size, output_dim)


# ---------------------------------------------------------------------------
# Parameters + reference
# ---------------------------------------------------------------------------

def init_params(key, latent_dim, output_size, output_dim):
    """Deterministic synthetic params mirroring nn.Linear / nn.LayerNorm shapes."""
    layer_dims = [latent_dim, 128, 256, 512]
    params = []
    keys = jax.random.split(key, 8)
    k_iter = iter(keys)
    for in_dim, out_dim in zip(layer_dims[:-1], layer_dims[1:]):
        bound = 1.0 / (in_dim ** 0.5)
        kw, kb = jax.random.split(next(k_iter))
        w = jax.random.uniform(kw, (in_dim, out_dim), jnp.float32, -bound, bound)
        b = jax.random.uniform(kb, (1, out_dim), jnp.float32, -bound, bound)
        gamma = jnp.ones((1, out_dim), jnp.float32)   # nn.LayerNorm default weight
        beta = jnp.zeros((1, out_dim), jnp.float32)   # nn.LayerNorm default bias
        params.extend([w, b, gamma, beta])
    in_dim, out_cols = layer_dims[-1], output_size * output_dim
    bound = 1.0 / (in_dim ** 0.5)
    kw, kb = jax.random.split(next(k_iter))
    w4 = jax.random.uniform(kw, (in_dim, out_cols), jnp.float32, -bound, bound)
    b4 = jax.random.uniform(kb, (1, out_cols), jnp.float32, -bound, bound)
    params.extend([w4, b4])
    return tuple(params)


def reference_forward(z, params, *, output_size, output_dim):
    """Pure-JAX f32 reference matching the PyTorch forward (eval mode)."""
    (w1, b1, g1, be1, w2, b2, g2, be2, w3, b3, g3, be3, w4, b4) = params

    def ln_relu(x, g, b):
        mu = jnp.mean(x, axis=-1, keepdims=True)
        var = jnp.mean((x - mu) ** 2, axis=-1, keepdims=True)
        return jnp.maximum((x - mu) / jnp.sqrt(var + LN_EPS) * g + b, 0.0)

    h = ln_relu(z @ w1 + b1, g1, be1)
    h = ln_relu(h @ w2 + b2, g2, be2)
    h = ln_relu(h @ w3 + b3, g3, be3)
    out = h @ w4 + b4
    return out.reshape(z.shape[0], output_size, output_dim)


if __name__ == "__main__":
    # TODO(synk): train-mode dropout not implemented; default dropout=None /
    # eval semantics are identity, which is what this kernel reproduces.
    key = jax.random.PRNGKey(0)
    k_params, k_z, k2_params, k2_z = jax.random.split(key, 4)

    # --- Case 1: small, lane-aligned shapes (B=16, out_cols=1024) ---
    B, latent_dim, output_size, output_dim = 16, 4, 256, 4
    params = init_params(k_params, latent_dim, output_size, output_dim)
    z = jax.random.normal(k_z, (B, latent_dim), jnp.float32)
    out = mlp_decoder_forward(z, params, output_size=output_size,
                              output_dim=output_dim)
    out = jax.block_until_ready(out)
    assert out.shape == (B, output_size, output_dim)
    ref = reference_forward(z, params, output_size=output_size,
                            output_dim=output_dim)
    # bf16 matmul operands (f32 accumulation) -> ~0.1-1% relative error.
    assert jnp.allclose(out, ref, atol=3e-2, rtol=3e-2), "mismatch (case 1)"

    # --- Case 2: ragged shapes exercising the padding path (B=5, out_cols=90) ---
    B2, output_size2, output_dim2 = 5, 30, 3
    params2 = init_params(k2_params, latent_dim, output_size2, output_dim2)
    z2 = jax.random.normal(k2_z, (B2, latent_dim), jnp.float32)
    out2 = mlp_decoder_forward(z2, params2, output_size=output_size2,
                               output_dim=output_dim2)
    out2 = jax.block_until_ready(out2)
    assert out2.shape == (B2, output_size2, output_dim2)
    ref2 = reference_forward(z2, params2, output_size=output_size2,
                             output_dim=output_dim2)
    assert jnp.allclose(out2, ref2, atol=3e-2, rtol=3e-2), "mismatch (case 2)"

    print("KERNEL_OK")
</pallas_src>

<mosaic_0001>
module attributes {stable_mosaic.version = 11 : i64} {
  func.func @kernel(%arg0: i32, %arg1: i32, %arg2: memref<16x4xf32, #tpu.memory_space<vmem>>, %arg3: memref<4x128xf32, #tpu.memory_space<vmem>>, %arg4: memref<1x128xf32, #tpu.memory_space<vmem>>, %arg5: memref<1x128xf32, #tpu.memory_space<vmem>>, %arg6: memref<1x128xf32, #tpu.memory_space<vmem>>, %arg7: memref<128x256xbf16, #tpu.memory_space<vmem>>, %arg8: memref<1x256xf32, #tpu.memory_space<vmem>>, %arg9: memref<1x256xf32, #tpu.memory_space<vmem>>, %arg10: memref<1x256xf32, #tpu.memory_space<vmem>>, %arg11: memref<256x512xbf16, #tpu.memory_space<vmem>>, %arg12: memref<1x512xf32, #tpu.memory_space<vmem>>, %arg13: memref<1x512xf32, #tpu.memory_space<vmem>>, %arg14: memref<1x512xf32, #tpu.memory_space<vmem>>, %arg15: memref<512x1024xbf16, #tpu.memory_space<vmem>>, %arg16: memref<1x1024xf32, #tpu.memory_space<vmem>>, %arg17: memref<16x1024xf32, #tpu.memory_space<vmem>>, %arg18: memref<16x512xbf16, #tpu.memory_space<vmem>>) attributes {dimension_semantics = [#tpu.dimension_semantics<parallel>, #tpu.dimension_semantics<arbitrary>], iteration_bounds = array<i64: 1, 1>, scalar_prefetch = 0 : i64, scratch_operands = 1 : i64, tpu.core_type = #tpu.core_type<tc>, window_params = [{transform_indices = @transform_0, window_bounds = array<i64: 16, 4>}, {pipeline_mode = #tpu.pipeline_mode<synchronous>, transform_indices = @transform_1, window_bounds = array<i64: 4, 128>}, {pipeline_mode = #tpu.pipeline_mode<synchronous>, transform_indices = @transform_2, window_bounds = array<i64: 1, 128>}, {pipeline_mode = #tpu.pipeline_mode<synchronous>, transform_indices = @transform_3, window_bounds = array<i64: 1, 128>}, {pipeline_mode = #tpu.pipeline_mode<synchronous>, transform_indices = @transform_4, window_bounds = array<i64: 1, 128>}, {pipeline_mode = #tpu.pipeline_mode<synchronous>, transform_indices = @transform_5, window_bounds = array<i64: 128, 256>}, {pipeline_mode = #tpu.pipeline_mode<synchronous>, transform_indices = @transform_6, window_bounds = array<i64: 1, 256>}, {pipeline_mode = #tpu.pipeline_mode<synchronous>, transform_indices = @transform_7, window_bounds = array<i64: 1, 256>}, {pipeline_mode = #tpu.pipeline_mode<synchronous>, transform_indices = @transform_8, window_bounds = array<i64: 1, 256>}, {pipeline_mode = #tpu.pipeline_mode<synchronous>, transform_indices = @transform_9, window_bounds = array<i64: 256, 512>}, {pipeline_mode = #tpu.pipeline_mode<synchronous>, transform_indices = @transform_10, window_bounds = array<i64: 1, 512>}, {pipeline_mode = #tpu.pipeline_mode<synchronous>, transform_indices = @transform_11, window_bounds = array<i64: 1, 512>}, {pipeline_mode = #tpu.pipeline_mode<synchronous>, transform_indices = @transform_12, window_bounds = array<i64: 1, 512>}, {pipeline_mode = #tpu.pipeline_mode<synchronous>, transform_indices = @transform_13, window_bounds = array<i64: 512, 1024>}, {pipeline_mode = #tpu.pipeline_mode<synchronous>, transform_indices = @transform_14, window_bounds = array<i64: 1, 1024>}, {transform_indices = @transform_15, window_bounds = array<i64: 16, 1024>}]} {
    %c0_i32 = arith.constant 0 : i32
    %0 = arith.cmpi eq, %arg1, %c0_i32 : i32
    %1 = arith.extui %0 : i1 to i32
    %c0_i32_0 = arith.constant 0 : i32
    %2 = arith.cmpi ne, %1, %c0_i32_0 : i32
    scf.if %2 {
      %c0_8 = arith.constant 0 : index
      %c0_9 = arith.constant 0 : index
      %10 = vector.load %arg2[%c0_8, %c0_9] : memref<16x4xf32, #tpu.memory_space<vmem>>, vector<16x4xf32>
      %c0_10 = arith.constant 0 : index
      %c0_11 = arith.constant 0 : index
      %11 = vector.load %arg3[%c0_10, %c0_11] : memref<4x128xf32, #tpu.memory_space<vmem>>, vector<4x128xf32>
      %12 = vector.extract_strided_slice %10 {offsets = [0, 0], sizes = [16, 1], strides = [1, 1]} : vector<16x4xf32> to vector<16x1xf32>
      %13 = vector.extract_strided_slice %11 {offsets = [0, 0], sizes = [1, 128], strides = [1, 1]} : vector<4x128xf32> to vector<1x128xf32>
      %14 = vector.broadcast %12 : vector<16x1xf32> to vector<16x128xf32>
      %15 = vector.broadcast %13 : vector<1x128xf32> to vector<16x128xf32>
      %16 = arith.mulf %14, %15 : vector<16x128xf32>
      %17 = vector.extract_strided_slice %10 {offsets = [0, 1], sizes = [16, 1], strides = [1, 1]} : vector<16x4xf32> to vector<16x1xf32>
      %18 = vector.extract_strided_slice %11 {offsets = [1, 0], sizes = [1, 128], strides = [1, 1]} : vector<4x128xf32> to vector<1x128xf32>
      %19 = vector.broadcast %17 : vector<16x1xf32> to vector<16x128xf32>
      %20 = vector.broadcast %18 : vector<1x128xf32> to vector<16x128xf32>
      %21 = arith.mulf %19, %20 : vector<16x128xf32>
      %22 = arith.addf %16, %21 : vector<16x128xf32>
      %23 = vector.extract_strided_slice %10 {offsets = [0, 2], sizes = [16, 1], strides = [1, 1]} : vector<16x4xf32> to vector<16x1xf32>
      %24 = vector.extract_strided_slice %11 {offsets = [2, 0], sizes = [1, 128], strides = [1, 1]} : vector<4x128xf32> to vector<1x128xf32>
      %25 = vector.broadcast %23 : vector<16x1xf32> to vector<16x128xf32>
      %26 = vector.broadcast %24 : vector<1x128xf32> to vector<16x128xf32>
      %27 = arith.mulf %25, %26 : vector<16x128xf32>
      %28 = arith.addf %22, %27 : vector<16x128xf32>
      %29 = vector.extract_strided_slice %10 {offsets = [0, 3], sizes = [16, 1], strides = [1, 1]} : vector<16x4xf32> to vector<16x1xf32>
      %30 = vector.extract_strided_slice %11 {offsets = [3, 0], sizes = [1, 128], strides = [1, 1]} : vector<4x128xf32> to vector<1x128xf32>
      %31 = vector.broadcast %29 : vector<16x1xf32> to vector<16x128xf32>
      %32 = vector.broadcast %30 : vector<1x128xf32> to vector<16x128xf32>
      %33 = arith.mulf %31, %32 : vector<16x128xf32>
      %34 = arith.addf %28, %33 : vector<16x128xf32>
      %c0_12 = arith.constant 0 : index
      %c0_13 = arith.constant 0 : index
      %35 = vector.load %arg4[%c0_12, %c0_13] : memref<1x128xf32, #tpu.memory_space<vmem>>, vector<1x128xf32>
      %36 = vector.broadcast %35 : vector<1x128xf32> to vector<16x128xf32>
      %37 = arith.addf %34, %36 : vector<16x128xf32>
      %c0_14 = arith.constant 0 : index
      %c0_15 = arith.constant 0 : index
      %38 = vector.load %arg5[%c0_14, %c0_15] : memref<1x128xf32, #tpu.memory_space<vmem>>, vector<1x128xf32>
      %c0_16 = arith.constant 0 : index
      %c0_17 = arith.constant 0 : index
      %39 = vector.load %arg6[%c0_16, %c0_17] : memref<1x128xf32, #tpu.memory_space<vmem>>, vector<1x128xf32>
      %cst_18 = arith.constant dense<0.000000e+00> : vector<16xf32>
      %40 = vector.multi_reduction <add>, %37, %cst_18 [1] : vector<16x128xf32> to vector<16xf32>
      %41 = vector.shape_cast %40 : vector<16xf32> to vector<16x1xf32>
      %42 = arith.mulf %37, %37 : vector<16x128xf32>
      %cst_19 = arith.constant dense<0.000000e+00> : vector<16xf32>
      %43 = vector.multi_reduction <add>, %42, %cst_19 [1] : vector<16x128xf32> to vector<16xf32>
      %44 = vector.shape_cast %43 : vector<16xf32> to vector<16x1xf32>
      %cst_20 = arith.constant 7.812500e-03 : f32
      %45 = vector.broadcast %cst_20 : f32 to vector<16x1xf32>
      %46 = arith.mulf %41, %45 : vector<16x1xf32>
      %cst_21 = arith.constant 7.812500e-03 : f32
      %47 = vector.broadcast %cst_21 : f32 to vector<16x1xf32>
      %48 = arith.mulf %44, %47 : vector<16x1xf32>
      %49 = arith.mulf %46, %46 : vector<16x1xf32>
      %50 = arith.subf %48, %49 : vector<16x1xf32>
      %cst_22 = arith.constant 0.000000e+00 : f32
      %51 = vector.broadcast %cst_22 : f32 to vector<16x1xf32>
      %52 = arith.maximumf %50, %51 : vector<16x1xf32>
      %53 = vector.broadcast %46 : vector<16x1xf32> to vector<16x128xf32>
      %54 = arith.subf %37, %53 : vector<16x128xf32>
      %cst_23 = arith.constant 9.99999974E-6 : f32
      %55 = vector.broadcast %cst_23 : f32 to vector<16x1xf32>
      %56 = arith.addf %52, %55 : vector<16x1xf32>
      %57 = math.rsqrt %56 : vector<16x1xf32>
      %58 = vector.broadcast %57 : vector<16x1xf32> to vector<16x128xf32>
      %59 = arith.mulf %54, %58 : vector<16x128xf32>
      %60 = vector.broadcast %38 : vector<1x128xf32> to vector<16x128xf32>
      %61 = arith.mulf %59, %60 : vector<16x128xf32>
      %62 = vector.broadcast %39 : vector<1x128xf32> to vector<16x128xf32>
      %63 = arith.addf %61, %62 : vector<16x128xf32>
      %cst_24 = arith.constant 0.000000e+00 : f32
      %64 = vector.broadcast %cst_24 : f32 to vector<16x128xf32>
      %65 = arith.maximumf %63, %64 : vector<16x128xf32>
      %66 = arith.truncf %65 : vector<16x128xf32> to vector<16x128xbf16>
      %c0_25 = arith.constant 0 : index
      %c0_26 = arith.constant 0 : index
      %67 = vector.load %arg7[%c0_25, %c0_26] : memref<128x256xbf16, #tpu.memory_space<vmem>>, vector<128x256xbf16>
      %cst_27 = arith.constant dense<0.000000e+00> : vector<16x256xf32>
      %68 = tpu.matmul %66, %67, %cst_27 {dimension_numbers = #tpu.dot_dimension_numbers<[1], [0], [0], [1], [0, 0, 1, 1], [], []>} : vector<16x128xbf16>, vector<128x256xbf16>, vector<16x256xf32> -> vector<16x256xf32>
      %c0_28 = arith.constant 0 : index
      %c0_29 = arith.constant 0 : index
      %69 = vector.load %arg8[%c0_28, %c0_29] : memref<1x256xf32, #tpu.memory_space<vmem>>, vector<1x256xf32>
      %70 = vector.broadcast %69 : vector<1x256xf32> to vector<16x256xf32>
      %71 = arith.addf %68, %70 : vector<16x256xf32>
      %c0_30 = arith.constant 0 : index
      %c0_31 = arith.constant 0 : index
      %72 = vector.load %arg9[%c0_30, %c0_31] : memref<1x256xf32, #tpu.memory_space<vmem>>, vector<1x256xf32>
      %c0_32 = arith.constant 0 : index
      %c0_33 = arith.constant 0 : index
      %73 = vector.load %arg10[%c0_32, %c0_33] : memref<1x256xf32, #tpu.memory_space<vmem>>, vector<1x256xf32>
      %cst_34 = arith.constant dense<0.000000e+00> : vector<16xf32>
      %74 = vector.multi_reduction <add>, %71, %cst_34 [1] : vector<16x256xf32> to vector<16xf32>
      %75 = vector.shape_cast %74 : vector<16xf32> to vector<16x1xf32>
      %76 = arith.mulf %71, %71 : vector<16x256xf32>
      %cst_35 = arith.constant dense<0.000000e+00> : vector<16xf32>
      %77 = vector.multi_reduction <add>, %76, %cst_35 [1] : vector<16x256xf32> to vector<16xf32>
      %78 = vector.shape_cast %77 : vector<16xf32> to vector<16x1xf32>
      %cst_36 = arith.constant 3.906250e-03 : f32
      %79 = vector.broadcast %cst_36 : f32 to vector<16x1xf32>
      %80 = arith.mulf %75, %79 : vector<16x1xf32>
      %cst_37 = arith.constant 3.906250e-03 : f32
      %81 = vector.broadcast %cst_37 : f32 to vector<16x1xf32>
      %82 = arith.mulf %78, %81 : vector<16x1xf32>
      %83 = arith.mulf %80, %80 : vector<16x1xf32>
      %84 = arith.subf %82, %83 : vector<16x1xf32>
      %cst_38 = arith.constant 0.000000e+00 : f32
      %85 = vector.broadcast %cst_38 : f32 to vector<16x1xf32>
      %86 = arith.maximumf %84, %85 : vector<16x1xf32>
      %87 = vector.broadcast %80 : vector<16x1xf32> to vector<16x256xf32>
      %88 = arith.subf %71, %87 : vector<16x256xf32>
      %cst_39 = arith.constant 9.99999974E-6 : f32
      %89 = vector.broadcast %cst_39 : f32 to vector<16x1xf32>
      %90 = arith.addf %86, %89 : vector<16x1xf32>
      %91 = math.rsqrt %90 : vector<16x1xf32>
      %92 = vector.broadcast %91 : vector<16x1xf32> to vector<16x256xf32>
      %93 = arith.mulf %88, %92 : vector<16x256xf32>
      %94 = vector.broadcast %72 : vector<1x256xf32> to vector<16x256xf32>
      %95 = arith.mulf %93, %94 : vector<16x256xf32>
      %96 = vector.broadcast %73 : vector<1x256xf32> to vector<16x256xf32>
      %97 = arith.addf %95, %96 : vector<16x256xf32>
      %cst_40 = arith.constant 0.000000e+00 : f32
      %98 = vector.broadcast %cst_40 : f32 to vector<16x256xf32>
      %99 = arith.maximumf %97, %98 : vector<16x256xf32>
      %100 = arith.truncf %99 : vector<16x256xf32> to vector<16x256xbf16>
      %c0_41 = arith.constant 0 : index
      %c0_42 = arith.constant 0 : index
      %101 = vector.load %arg11[%c0_41, %c0_42] : memref<256x512xbf16, #tpu.memory_space<vmem>>, vector<256x512xbf16>
      %cst_43 = arith.constant dense<0.000000e+00> : vector<16x512xf32>
      %102 = tpu.matmul %100, %101, %cst_43 {dimension_numbers = #tpu.dot_dimension_numbers<[1], [0], [0], [1], [0, 0, 1, 1], [], []>} : vector<16x256xbf16>, vector<256x512xbf16>, vector<16x512xf32> -> vector<16x512xf32>
      %c0_44 = arith.constant 0 : index
      %c0_45 = arith.constant 0 : index
      %103 = vector.load %arg12[%c0_44, %c0_45] : memref<1x512xf32, #tpu.memory_space<vmem>>, vector<1x512xf32>
      %104 = vector.broadcast %103 : vector<1x512xf32> to vector<16x512xf32>
      %105 = arith.addf %102, %104 : vector<16x512xf32>
      %c0_46 = arith.constant 0 : index
      %c0_47 = arith.constant 0 : index
      %106 = vector.load %arg13[%c0_46, %c0_47] : memref<1x512xf32, #tpu.memory_space<vmem>>, vector<1x512xf32>
      %c0_48 = arith.constant 0 : index
      %c0_49 = arith.constant 0 : index
      %107 = vector.load %arg14[%c0_48, %c0_49] : memref<1x512xf32, #tpu.memory_space<vmem>>, vector<1x512xf32>
      %cst_50 = arith.constant dense<0.000000e+00> : vector<16xf32>
      %108 = vector.multi_reduction <add>, %105, %cst_50 [1] : vector<16x512xf32> to vector<16xf32>
      %109 = vector.shape_cast %108 : vector<16xf32> to vector<16x1xf32>
      %110 = arith.mulf %105, %105 : vector<16x512xf32>
      %cst_51 = arith.constant dense<0.000000e+00> : vector<16xf32>
      %111 = vector.multi_reduction <add>, %110, %cst_51 [1] : vector<16x512xf32> to vector<16xf32>
      %112 = vector.shape_cast %111 : vector<16xf32> to vector<16x1xf32>
      %cst_52 = arith.constant 0.001953125 : f32
      %113 = vector.broadcast %cst_52 : f32 to vector<16x1xf32>
      %114 = arith.mulf %109, %113 : vector<16x1xf32>
      %cst_53 = arith.constant 0.001953125 : f32
      %115 = vector.broadcast %cst_53 : f32 to vector<16x1xf32>
      %116 = arith.mulf %112, %115 : vector<16x1xf32>
      %117 = arith.mulf %114, %114 : vector<16x1xf32>
      %118 = arith.subf %116, %117 : vector<16x1xf32>
      %cst_54 = arith.constant 0.000000e+00 : f32
      %119 = vector.broadcast %cst_54 : f32 to vector<16x1xf32>
      %120 = arith.maximumf %118, %119 : vector<16x1xf32>
      %121 = vector.broadcast %114 : vector<16x1xf32> to vector<16x512xf32>
      %122 = arith.subf %105, %121 : vector<16x512xf32>
      %cst_55 = arith.constant 9.99999974E-6 : f32
      %123 = vector.broadcast %cst_55 : f32 to vector<16x1xf32>
      %124 = arith.addf %120, %123 : vector<16x1xf32>
      %125 = math.rsqrt %124 : vector<16x1xf32>
      %126 = vector.broadcast %125 : vector<16x1xf32> to vector<16x512xf32>
      %127 = arith.mulf %122, %126 : vector<16x512xf32>
      %128 = vector.broadcast %106 : vector<1x512xf32> to vector<16x512xf32>
      %129 = arith.mulf %127, %128 : vector<16x512xf32>
      %130 = vector.broadcast %107 : vector<1x512xf32> to vector<16x512xf32>
      %131 = arith.addf %129, %130 : vector<16x512xf32>
      %cst_56 = arith.constant 0.000000e+00 : f32
      %132 = vector.broadcast %cst_56 : f32 to vector<16x512xf32>
      %133 = arith.maximumf %131, %132 : vector<16x512xf32>
      %134 = arith.truncf %133 : vector<16x512xf32> to vector<16x512xbf16>
      %c0_57 = arith.constant 0 : index
      %c0_58 = arith.constant 0 : index
      %135 = vector.load %arg18[%c0_57, %c0_58] : memref<16x512xbf16, #tpu.memory_space<vmem>>, vector<16x512xbf16>
      tpu.vector_store %arg18[%c0_57, %c0_58], %134 {strides = array<i32>} : memref<16x512xbf16, #tpu.memory_space<vmem>>, vector<16x512xbf16>,
    } else {
    }
    %c0 = arith.constant 0 : index
    %c0_1 = arith.constant 0 : index
    %3 = vector.load %arg18[%c0, %c0_1] : memref<16x512xbf16, #tpu.memory_space<vmem>>, vector<16x512xbf16>
    %c0_2 = arith.constant 0 : index
    %c0_3 = arith.constant 0 : index
    %4 = vector.load %arg15[%c0_2, %c0_3] : memref<512x1024xbf16, #tpu.memory_space<vmem>>, vector<512x1024xbf16>
    %cst = arith.constant dense<0.000000e+00> : vector<16x1024xf32>
    %5 = tpu.matmul %3, %4, %cst {dimension_numbers = #tpu.dot_dimension_numbers<[1], [0], [0], [1], [0, 0, 1, 1], [], []>} : vector<16x512xbf16>, vector<512x1024xbf16>, vector<16x1024xf32> -> vector<16x1024xf32>
    %c0_4 = arith.constant 0 : index
    %c0_5 = arith.constant 0 : index
    %6 = vector.load %arg16[%c0_4, %c0_5] : memref<1x1024xf32, #tpu.memory_space<vmem>>, vector<1x1024xf32>
    %7 = vector.broadcast %6 : vector<1x1024xf32> to vector<16x1024xf32>
    %8 = arith.addf %5, %7 : vector<16x1024xf32>
    %c0_6 = arith.constant 0 : index
    %c0_7 = arith.constant 0 : index
    %9 = vector.load %arg17[%c0_6, %c0_7] : memref<16x1024xf32, #tpu.memory_space<vmem>>, vector<16x1024xf32>
    tpu.vector_store %arg17[%c0_6, %c0_7], %8 {strides = array<i32>} : memref<16x1024xf32, #tpu.memory_space<vmem>>, vector<16x1024xf32>,
    return
  }
  func.func @transform_0(%arg0: i32, %arg1: i32) -> (i32, i32) {
    %c0_i32 = arith.constant 0 : i32
    %c0_i32_0 = arith.constant 0 : i32
    return %arg0, %c0_i32 : i32, i32
  }
  func.func @transform_1(%arg0: i32, %arg1: i32) -> (i32, i32) {
    %c0_i32 = arith.constant 0 : i32
    %c0_i32_0 = arith.constant 0 : i32
    %c0_i32_1 = arith.constant 0 : i32
    return %c0_i32, %c0_i32_0 : i32, i32
  }
  func.func @transform_2(%arg0: i32, %arg1: i32) -> (i32, i32) {
    %c0_i32 = arith.constant 0 : i32
    %c0_i32_0 = arith.constant 0 : i32
    %c0_i32_1 = arith.constant 0 : i32
    return %c0_i32, %c0_i32_0 : i32, i32
  }
  func.func @transform_3(%arg0: i32, %arg1: i32) -> (i32, i32) {
    %c0_i32 = arith.constant 0 : i32
    %c0_i32_0 = arith.constant 0 : i32
    %c0_i32_1 = arith.constant 0 : i32
    return %c0_i32, %c0_i32_0 : i32, i32
  }
  func.func @transform_4(%arg0: i32, %arg1: i32) -> (i32, i32) {
    %c0_i32 = arith.constant 0 : i32
    %c0_i32_0 = arith.constant 0 : i32
    %c0_i32_1 = arith.constant 0 : i32
    return %c0_i32, %c0_i32_0 : i32, i32
  }
  func.func @transform_5(%arg0: i32, %arg1: i32) -> (i32, i32) {
    %c0_i32 = arith.constant 0 : i32
    %c0_i32_0 = arith.constant 0 : i32
    %c0_i32_1 = arith.constant 0 : i32
    return %c0_i32, %c0_i32_0 : i32, i32
  }
  func.func @transform_6(%arg0: i32, %arg1: i32) -> (i32, i32) {
    %c0_i32 = arith.constant 0 : i32
    %c0_i32_0 = arith.constant 0 : i32
    %c0_i32_1 = arith.constant 0 : i32
    return %c0_i32, %c0_i32_0 : i32, i32
  }
  func.func @transform_7(%arg0: i32, %arg1: i32) -> (i32, i32) {
    %c0_i32 = arith.constant 0 : i32
    %c0_i32_0 = arith.constant 0 : i32
    %c0_i32_1 = arith.constant 0 : i32
    return %c0_i32, %c0_i32_0 : i32, i32
  }
  func.func @transform_8(%arg0: i32, %arg1: i32) -> (i32, i32) {
    %c0_i32 = arith.constant 0 : i32
    %c0_i32_0 = arith.constant 0 : i32
    %c0_i32_1 = arith.constant 0 : i32
    return %c0_i32, %c0_i32_0 : i32, i32
  }
  func.func @transform_9(%arg0: i32, %arg1: i32) -> (i32, i32) {
    %c0_i32 = arith.constant 0 : i32
    %c0_i32_0 = arith.constant 0 : i32
    %c0_i32_1 = arith.constant 0 : i32
    return %c0_i32, %c0_i32_0 : i32, i32
  }
  func.func @transform_10(%arg0: i32, %arg1: i32) -> (i32, i32) {
    %c0_i32 = arith.constant 0 : i32
    %c0_i32_0 = arith.constant 0 : i32
    %c0_i32_1 = arith.constant 0 : i32
    return %c0_i32, %c0_i32_0 : i32, i32
  }
  func.func @transform_11(%arg0: i32, %arg1: i32) -> (i32, i32) {
    %c0_i32 = arith.constant 0 : i32
    %c0_i32_0 = arith.constant 0 : i32
    %c0_i32_1 = arith.constant 0 : i32
    return %c0_i32, %c0_i32_0 : i32, i32
  }
  func.func @transform_12(%arg0: i32, %arg1: i32) -> (i32, i32) {
    %c0_i32 = arith.constant 0 : i32
    %c0_i32_0 = arith.constant 0 : i32
    %c0_i32_1 = arith.constant 0 : i32
    return %c0_i32, %c0_i32_0 : i32, i32
  }
  func.func @transform_13(%arg0: i32, %arg1: i32) -> (i32, i32) {
    %c0_i32 = arith.constant 0 : i32
    %c0_i32_0 = arith.constant 0 : i32
    return %c0_i32, %arg1 : i32, i32
  }
  func.func @transform_14(%arg0: i32, %arg1: i32) -> (i32, i32) {
    %c0_i32 = arith.constant 0 : i32
    %c0_i32_0 = arith.constant 0 : i32
    return %c0_i32, %arg1 : i32, i32
  }
  func.func @transform_15(%arg0: i32, %arg1: i32) -> (i32, i32) {
    %c0_i32 = arith.constant 0 : i32
    return %arg0, %arg1 : i32, i32
  }
}

module attributes {stable_mosaic.version = 11 : i64} {
  func.func @kernel(%arg0: i32, %arg1: i32, %arg2: memref<16x4xf32, #tpu.memory_space<vmem>>, %arg3: memref<4x128xf32, #tpu.memory_space<vmem>>, %arg4: memref<1x128xf32, #tpu.memory_space<vmem>>, %arg5: memref<1x128xf32, #tpu.memory_space<vmem>>, %arg6: memref<1x128xf32, #tpu.memory_space<vmem>>, %arg7: memref<128x256xbf16, #tpu.memory_space<vmem>>, %arg8: memref<1x256xf32, #tpu.memory_space<vmem>>, %arg9: memref<1x256xf32, #tpu.memory_space<vmem>>, %arg10: memref<1x256xf32, #tpu.memory_space<vmem>>, %arg11: memref<256x512xbf16, #tpu.memory_space<vmem>>, %arg12: memref<1x512xf32, #tpu.memory_space<vmem>>, %arg13: memref<1x512xf32, #tpu.memory_space<vmem>>, %arg14: memref<1x512xf32, #tpu.memory_space<vmem>>, %arg15: memref<512x1024xbf16, #tpu.memory_space<vmem>>, %arg16: memref<1x1024xf32, #tpu.memory_space<vmem>>, %arg17: memref<16x1024xf32, #tpu.memory_space<vmem>>, %arg18: memref<16x512xbf16, #tpu.memory_space<vmem>>) attributes {dimension_semantics = [#tpu.dimension_semantics<parallel>, #tpu.dimension_semantics<arbitrary>], iteration_bounds = array<i64: 1, 1>, scalar_prefetch = 0 : i64, scratch_operands = 1 : i64, tpu.core_type = #tpu.core_type<tc>, window_params = [{transform_indices = @transform_0, window_bounds = array<i64: 16, 4>}, {pipeline_mode = #tpu.pipeline_mode<synchronous>, transform_indices = @transform_1, window_bounds = array<i64: 4, 128>}, {pipeline_mode = #tpu.pipeline_mode<synchronous>, transform_indices = @transform_2, window_bounds = array<i64: 1, 128>}, {pipeline_mode = #tpu.pipeline_mode<synchronous>, transform_indices = @transform_3, window_bounds = array<i64: 1, 128>}, {pipeline_mode = #tpu.pipeline_mode<synchronous>, transform_indices = @transform_4, window_bounds = array<i64: 1, 128>}, {pipeline_mode = #tpu.pipeline_mode<synchronous>, transform_indices = @transform_5, window_bounds = array<i64: 128, 256>}, {pipeline_mode = #tpu.pipeline_mode<synchronous>, transform_indices = @transform_6, window_bounds = array<i64: 1, 256>}, {pipeline_mode = #tpu.pipeline_mode<synchronous>, transform_indices = @transform_7, window_bounds = array<i64: 1, 256>}, {pipeline_mode = #tpu.pipeline_mode<synchronous>, transform_indices = @transform_8, window_bounds = array<i64: 1, 256>}, {pipeline_mode = #tpu.pipeline_mode<synchronous>, transform_indices = @transform_9, window_bounds = array<i64: 256, 512>}, {pipeline_mode = #tpu.pipeline_mode<synchronous>, transform_indices = @transform_10, window_bounds = array<i64: 1, 512>}, {pipeline_mode = #tpu.pipeline_mode<synchronous>, transform_indices = @transform_11, window_bounds = array<i64: 1, 512>}, {pipeline_mode = #tpu.pipeline_mode<synchronous>, transform_indices = @transform_12, window_bounds = array<i64: 1, 512>}, {transform_indices = @transform_13, window_bounds = array<i64: 512, 1024>}, {transform_indices = @transform_14, window_bounds = array<i64: 1, 1024>}, {transform_indices = @transform_15, window_bounds = array<i64: 16, 1024>}]} {
    %c0_i32 = arith.constant 0 : i32
    %0 = arith.cmpi eq, %arg1, %c0_i32 : i32
    %1 = arith.extui %0 : i1 to i32
    %c0_i32_0 = arith.constant 0 : i32
    %2 = arith.cmpi ne, %1, %c0_i32_0 : i32
    scf.if %2 {
      %c0_8 = arith.constant 0 : index
      %c0_9 = arith.constant 0 : index
      %10 = vector.load %arg2[%c0_8, %c0_9] : memref<16x4xf32, #tpu.memory_space<vmem>>, vector<16x4xf32>
      %c0_10 = arith.constant 0 : index
      %c0_11 = arith.constant 0 : index
      %11 = vector.load %arg3[%c0_10, %c0_11] : memref<4x128xf32, #tpu.memory_space<vmem>>, vector<4x128xf32>
      %12 = vector.extract_strided_slice %10 {offsets = [0, 0], sizes = [16, 1], strides = [1, 1]} : vector<16x4xf32> to vector<16x1xf32>
      %13 = vector.extract_strided_slice %11 {offsets = [0, 0], sizes = [1, 128], strides = [1, 1]} : vector<4x128xf32> to vector<1x128xf32>
      %14 = vector.broadcast %12 : vector<16x1xf32> to vector<16x128xf32>
      %15 = vector.broadcast %13 : vector<1x128xf32> to vector<16x128xf32>
      %16 = arith.mulf %14, %15 : vector<16x128xf32>
      %17 = vector.extract_strided_slice %10 {offsets = [0, 1], sizes = [16, 1], strides = [1, 1]} : vector<16x4xf32> to vector<16x1xf32>
      %18 = vector.extract_strided_slice %11 {offsets = [1, 0], sizes = [1, 128], strides = [1, 1]} : vector<4x128xf32> to vector<1x128xf32>
      %19 = vector.broadcast %17 : vector<16x1xf32> to vector<16x128xf32>
      %20 = vector.broadcast %18 : vector<1x128xf32> to vector<16x128xf32>
      %21 = arith.mulf %19, %20 : vector<16x128xf32>
      %22 = arith.addf %16, %21 : vector<16x128xf32>
      %23 = vector.extract_strided_slice %10 {offsets = [0, 2], sizes = [16, 1], strides = [1, 1]} : vector<16x4xf32> to vector<16x1xf32>
      %24 = vector.extract_strided_slice %11 {offsets = [2, 0], sizes = [1, 128], strides = [1, 1]} : vector<4x128xf32> to vector<1x128xf32>
      %25 = vector.broadcast %23 : vector<16x1xf32> to vector<16x128xf32>
      %26 = vector.broadcast %24 : vector<1x128xf32> to vector<16x128xf32>
      %27 = arith.mulf %25, %26 : vector<16x128xf32>
      %28 = arith.addf %22, %27 : vector<16x128xf32>
      %29 = vector.extract_strided_slice %10 {offsets = [0, 3], sizes = [16, 1], strides = [1, 1]} : vector<16x4xf32> to vector<16x1xf32>
      %30 = vector.extract_strided_slice %11 {offsets = [3, 0], sizes = [1, 128], strides = [1, 1]} : vector<4x128xf32> to vector<1x128xf32>
      %31 = vector.broadcast %29 : vector<16x1xf32> to vector<16x128xf32>
      %32 = vector.broadcast %30 : vector<1x128xf32> to vector<16x128xf32>
      %33 = arith.mulf %31, %32 : vector<16x128xf32>
      %34 = arith.addf %28, %33 : vector<16x128xf32>
      %c0_12 = arith.constant 0 : index
      %c0_13 = arith.constant 0 : index
      %35 = vector.load %arg4[%c0_12, %c0_13] : memref<1x128xf32, #tpu.memory_space<vmem>>, vector<1x128xf32>
      %36 = vector.broadcast %35 : vector<1x128xf32> to vector<16x128xf32>
      %37 = arith.addf %34, %36 : vector<16x128xf32>
      %c0_14 = arith.constant 0 : index
      %c0_15 = arith.constant 0 : index
      %38 = vector.load %arg5[%c0_14, %c0_15] : memref<1x128xf32, #tpu.memory_space<vmem>>, vector<1x128xf32>
      %c0_16 = arith.constant 0 : index
      %c0_17 = arith.constant 0 : index
      %39 = vector.load %arg6[%c0_16, %c0_17] : memref<1x128xf32, #tpu.memory_space<vmem>>, vector<1x128xf32>
      %cst_18 = arith.constant dense<0.000000e+00> : vector<16xf32>
      %40 = vector.multi_reduction <add>, %37, %cst_18 [1] : vector<16x128xf32> to vector<16xf32>
      %41 = vector.shape_cast %40 : vector<16xf32> to vector<16x1xf32>
      %42 = arith.mulf %37, %37 : vector<16x128xf32>
      %cst_19 = arith.constant dense<0.000000e+00> : vector<16xf32>
      %43 = vector.multi_reduction <add>, %42, %cst_19 [1] : vector<16x128xf32> to vector<16xf32>
      %44 = vector.shape_cast %43 : vector<16xf32> to vector<16x1xf32>
      %cst_20 = arith.constant 7.812500e-03 : f32
      %45 = vector.broadcast %cst_20 : f32 to vector<16x1xf32>
      %46 = arith.mulf %41, %45 : vector<16x1xf32>
      %cst_21 = arith.constant 7.812500e-03 : f32
      %47 = vector.broadcast %cst_21 : f32 to vector<16x1xf32>
      %48 = arith.mulf %44, %47 : vector<16x1xf32>
      %49 = arith.mulf %46, %46 : vector<16x1xf32>
      %50 = arith.subf %48, %49 : vector<16x1xf32>
      %cst_22 = arith.constant 0.000000e+00 : f32
      %51 = vector.broadcast %cst_22 : f32 to vector<16x1xf32>
      %52 = arith.maximumf %50, %51 : vector<16x1xf32>
      %53 = vector.broadcast %46 : vector<16x1xf32> to vector<16x128xf32>
      %54 = arith.subf %37, %53 : vector<16x128xf32>
      %cst_23 = arith.constant 9.99999974E-6 : f32
      %55 = vector.broadcast %cst_23 : f32 to vector<16x1xf32>
      %56 = arith.addf %52, %55 : vector<16x1xf32>
      %57 = math.rsqrt %56 : vector<16x1xf32>
      %58 = vector.broadcast %57 : vector<16x1xf32> to vector<16x128xf32>
      %59 = arith.mulf %54, %58 : vector<16x128xf32>
      %60 = vector.broadcast %38 : vector<1x128xf32> to vector<16x128xf32>
      %61 = arith.mulf %59, %60 : vector<16x128xf32>
      %62 = vector.broadcast %39 : vector<1x128xf32> to vector<16x128xf32>
      %63 = arith.addf %61, %62 : vector<16x128xf32>
      %cst_24 = arith.constant 0.000000e+00 : f32
      %64 = vector.broadcast %cst_24 : f32 to vector<16x128xf32>
      %65 = arith.maximumf %63, %64 : vector<16x128xf32>
      %66 = arith.truncf %65 : vector<16x128xf32> to vector<16x128xbf16>
      %c0_25 = arith.constant 0 : index
      %c0_26 = arith.constant 0 : index
      %67 = vector.load %arg7[%c0_25, %c0_26] : memref<128x256xbf16, #tpu.memory_space<vmem>>, vector<128x256xbf16>
      %cst_27 = arith.constant dense<0.000000e+00> : vector<16x256xf32>
      %68 = tpu.matmul %66, %67, %cst_27 {dimension_numbers = #tpu.dot_dimension_numbers<[1], [0], [0], [1], [0, 0, 1, 1], [], []>} : vector<16x128xbf16>, vector<128x256xbf16>, vector<16x256xf32> -> vector<16x256xf32>
      %c0_28 = arith.constant 0 : index
      %c0_29 = arith.constant 0 : index
      %69 = vector.load %arg8[%c0_28, %c0_29] : memref<1x256xf32, #tpu.memory_space<vmem>>, vector<1x256xf32>
      %70 = vector.broadcast %69 : vector<1x256xf32> to vector<16x256xf32>
      %71 = arith.addf %68, %70 : vector<16x256xf32>
      %c0_30 = arith.constant 0 : index
      %c0_31 = arith.constant 0 : index
      %72 = vector.load %arg9[%c0_30, %c0_31] : memref<1x256xf32, #tpu.memory_space<vmem>>, vector<1x256xf32>
      %c0_32 = arith.constant 0 : index
      %c0_33 = arith.constant 0 : index
      %73 = vector.load %arg10[%c0_32, %c0_33] : memref<1x256xf32, #tpu.memory_space<vmem>>, vector<1x256xf32>
      %cst_34 = arith.constant dense<0.000000e+00> : vector<16xf32>
      %74 = vector.multi_reduction <add>, %71, %cst_34 [1] : vector<16x256xf32> to vector<16xf32>
      %75 = vector.shape_cast %74 : vector<16xf32> to vector<16x1xf32>
      %76 = arith.mulf %71, %71 : vector<16x256xf32>
      %cst_35 = arith.constant dense<0.000000e+00> : vector<16xf32>
      %77 = vector.multi_reduction <add>, %76, %cst_35 [1] : vector<16x256xf32> to vector<16xf32>
      %78 = vector.shape_cast %77 : vector<16xf32> to vector<16x1xf32>
      %cst_36 = arith.constant 3.906250e-03 : f32
      %79 = vector.broadcast %cst_36 : f32 to vector<16x1xf32>
      %80 = arith.mulf %75, %79 : vector<16x1xf32>
      %cst_37 = arith.constant 3.906250e-03 : f32
      %81 = vector.broadcast %cst_37 : f32 to vector<16x1xf32>
      %82 = arith.mulf %78, %81 : vector<16x1xf32>
      %83 = arith.mulf %80, %80 : vector<16x1xf32>
      %84 = arith.subf %82, %83 : vector<16x1xf32>
      %cst_38 = arith.constant 0.000000e+00 : f32
      %85 = vector.broadcast %cst_38 : f32 to vector<16x1xf32>
      %86 = arith.maximumf %84, %85 : vector<16x1xf32>
      %87 = vector.broadcast %80 : vector<16x1xf32> to vector<16x256xf32>
      %88 = arith.subf %71, %87 : vector<16x256xf32>
      %cst_39 = arith.constant 9.99999974E-6 : f32
      %89 = vector.broadcast %cst_39 : f32 to vector<16x1xf32>
      %90 = arith.addf %86, %89 : vector<16x1xf32>
      %91 = math.rsqrt %90 : vector<16x1xf32>
      %92 = vector.broadcast %91 : vector<16x1xf32> to vector<16x256xf32>
      %93 = arith.mulf %88, %92 : vector<16x256xf32>
      %94 = vector.broadcast %72 : vector<1x256xf32> to vector<16x256xf32>
      %95 = arith.mulf %93, %94 : vector<16x256xf32>
      %96 = vector.broadcast %73 : vector<1x256xf32> to vector<16x256xf32>
      %97 = arith.addf %95, %96 : vector<16x256xf32>
      %cst_40 = arith.constant 0.000000e+00 : f32
      %98 = vector.broadcast %cst_40 : f32 to vector<16x256xf32>
      %99 = arith.maximumf %97, %98 : vector<16x256xf32>
      %100 = arith.truncf %99 : vector<16x256xf32> to vector<16x256xbf16>
      %c0_41 = arith.constant 0 : index
      %c0_42 = arith.constant 0 : index
      %101 = vector.load %arg11[%c0_41, %c0_42] : memref<256x512xbf16, #tpu.memory_space<vmem>>, vector<256x512xbf16>
      %cst_43 = arith.constant dense<0.000000e+00> : vector<16x512xf32>
      %102 = tpu.matmul %100, %101, %cst_43 {dimension_numbers = #tpu.dot_dimension_numbers<[1], [0], [0], [1], [0, 0, 1, 1], [], []>} : vector<16x256xbf16>, vector<256x512xbf16>, vector<16x512xf32> -> vector<16x512xf32>
      %c0_44 = arith.constant 0 : index
      %c0_45 = arith.constant 0 : index
      %103 = vector.load %arg12[%c0_44, %c0_45] : memref<1x512xf32, #tpu.memory_space<vmem>>, vector<1x512xf32>
      %104 = vector.broadcast %103 : vector<1x512xf32> to vector<16x512xf32>
      %105 = arith.addf %102, %104 : vector<16x512xf32>
      %c0_46 = arith.constant 0 : index
      %c0_47 = arith.constant 0 : index
      %106 = vector.load %arg13[%c0_46, %c0_47] : memref<1x512xf32, #tpu.memory_space<vmem>>, vector<1x512xf32>
      %c0_48 = arith.constant 0 : index
      %c0_49 = arith.constant 0 : index
      %107 = vector.load %arg14[%c0_48, %c0_49] : memref<1x512xf32, #tpu.memory_space<vmem>>, vector<1x512xf32>
      %cst_50 = arith.constant dense<0.000000e+00> : vector<16xf32>
      %108 = vector.multi_reduction <add>, %105, %cst_50 [1] : vector<16x512xf32> to vector<16xf32>
      %109 = vector.shape_cast %108 : vector<16xf32> to vector<16x1xf32>
      %110 = arith.mulf %105, %105 : vector<16x512xf32>
      %cst_51 = arith.constant dense<0.000000e+00> : vector<16xf32>
      %111 = vector.multi_reduction <add>, %110, %cst_51 [1] : vector<16x512xf32> to vector<16xf32>
      %112 = vector.shape_cast %111 : vector<16xf32> to vector<16x1xf32>
      %cst_52 = arith.constant 0.001953125 : f32
      %113 = vector.broadcast %cst_52 : f32 to vector<16x1xf32>
      %114 = arith.mulf %109, %113 : vector<16x1xf32>
      %cst_53 = arith.constant 0.001953125 : f32
      %115 = vector.broadcast %cst_53 : f32 to vector<16x1xf32>
      %116 = arith.mulf %112, %115 : vector<16x1xf32>
      %117 = arith.mulf %114, %114 : vector<16x1xf32>
      %118 = arith.subf %116, %117 : vector<16x1xf32>
      %cst_54 = arith.constant 0.000000e+00 : f32
      %119 = vector.broadcast %cst_54 : f32 to vector<16x1xf32>
      %120 = arith.maximumf %118, %119 : vector<16x1xf32>
      %121 = vector.broadcast %114 : vector<16x1xf32> to vector<16x512xf32>
      %122 = arith.subf %105, %121 : vector<16x512xf32>
      %cst_55 = arith.constant 9.99999974E-6 : f32
      %123 = vector.broadcast %cst_55 : f32 to vector<16x1xf32>
      %124 = arith.addf %120, %123 : vector<16x1xf32>
      %125 = math.rsqrt %124 : vector<16x1xf32>
      %126 = vector.broadcast %125 : vector<16x1xf32> to vector<16x512xf32>
      %127 = arith.mulf %122, %126 : vector<16x512xf32>
      %128 = vector.broadcast %106 : vector<1x512xf32> to vector<16x512xf32>
      %129 = arith.mulf %127, %128 : vector<16x512xf32>
      %130 = vector.broadcast %107 : vector<1x512xf32> to vector<16x512xf32>
      %131 = arith.addf %129, %130 : vector<16x512xf32>
      %cst_56 = arith.constant 0.000000e+00 : f32
      %132 = vector.broadcast %cst_56 : f32 to vector<16x512xf32>
      %133 = arith.maximumf %131, %132 : vector<16x512xf32>
      %134 = arith.truncf %133 : vector<16x512xf32> to vector<16x512xbf16>
      %c0_57 = arith.constant 0 : index
      %c0_58 = arith.constant 0 : index
      %135 = vector.load %arg18[%c0_57, %c0_58] : memref<16x512xbf16, #tpu.memory_space<vmem>>, vector<16x512xbf16>
      tpu.vector_store %arg18[%c0_57, %c0_58], %134 {strides = array<i32>} : memref<16x512xbf16, #tpu.memory_space<vmem>>, vector<16x512xbf16>,
    } else {
    }
    %c0 = arith.constant 0 : index
    %c0_1 = arith.constant 0 : index
    %3 = vector.load %arg18[%c0, %c0_1] : memref<16x512xbf16, #tpu.memory_space<vmem>>, vector<16x512xbf16>
    %c0_2 = arith.constant 0 : index
    %c0_3 = arith.constant 0 : index
    %4 = vector.load %arg15[%c0_2, %c0_3] : memref<512x1024xbf16, #tpu.memory_space<vmem>>, vector<512x1024xbf16>
    %cst = arith.constant dense<0.000000e+00> : vector<16x1024xf32>
    %5 = tpu.matmul %3, %4, %cst {dimension_numbers = #tpu.dot_dimension_numbers<[1], [0], [0], [1], [0, 0, 1, 1], [], []>} : vector<16x512xbf16>, vector<512x1024xbf16>, vector<16x1024xf32> -> vector<16x1024xf32>
    %c0_4 = arith.constant 0 : index
    %c0_5 = arith.constant 0 : index
    %6 = vector.load %arg16[%c0_4, %c0_5] : memref<1x1024xf32, #tpu.memory_space<vmem>>, vector<1x1024xf32>
    %7 = vector.broadcast %6 : vector<1x1024xf32> to vector<16x1024xf32>
    %8 = arith.addf %5, %7 : vector<16x1024xf32>
    %c0_6 = arith.constant 0 : index
    %c0_7 = arith.constant 0 : index
    %9 = vector.load %arg17[%c0_6, %c0_7] : memref<16x1024xf32, #tpu.memory_space<vmem>>, vector<16x1024xf32>
    tpu.vector_store %arg17[%c0_6, %c0_7], %8 {strides = array<i32>} : memref<16x1024xf32, #tpu.memory_space<vmem>>, vector<16x1024xf32>,
    return
  }
  func.func @transform_0(%arg0: i32, %arg1: i32) -> (i32, i32) {
    %c0_i32 = arith.constant 0 : i32
    %c0_i32_0 = arith.constant 0 : i32
    return %arg0, %c0_i32 : i32, i32
  }
  func.func @transform_1(%arg0: i32, %arg1: i32) -> (i32, i32) {
    %c0_i32 = arith.constant 0 : i32
    %c0_i32_0 = arith.constant 0 : i32
    %c0_i32_1 = arith.constant 0 : i32
    return %c0_i32, %c0_i32_0 : i32, i32
  }
  func.func @transform_2(%arg0: i32, %arg1: i32) -> (i32, i32) {
    %c0_i32 = arith.constant 0 : i32
    %c0_i32_0 = arith.constant 0 : i32
    %c0_i32_1 = arith.constant 0 : i32
    return %c0_i32, %c0_i32_0 : i32, i32
  }
  func.func @transform_3(%arg0: i32, %arg1: i32) -> (i32, i32) {
    %c0_i32 = arith.constant 0 : i32
    %c0_i32_0 = arith.constant 0 : i32
    %c0_i32_1 = arith.constant 0 : i32
    return %c0_i32, %c0_i32_0 : i32, i32
  }
  func.func @transform_4(%arg0: i32, %arg1: i32) -> (i32, i32) {
    %c0_i32 = arith.constant 0 : i32
    %c0_i32_0 = arith.constant 0 : i32
    %c0_i32_1 = arith.constant 0 : i32
    return %c0_i32, %c0_i32_0 : i32, i32
  }
  func.func @transform_5(%arg0: i32, %arg1: i32) -> (i32, i32) {
    %c0_i32 = arith.constant 0 : i32
    %c0_i32_0 = arith.constant 0 : i32
    %c0_i32_1 = arith.constant 0 : i32
    return %c0_i32, %c0_i32_0 : i32, i32
  }
  func.func @transform_6(%arg0: i32, %arg1: i32) -> (i32, i32) {
    %c0_i32 = arith.constant 0 : i32
    %c0_i32_0 = arith.constant 0 : i32
    %c0_i32_1 = arith.constant 0 : i32
    return %c0_i32, %c0_i32_0 : i32, i32
  }
  func.func @transform_7(%arg0: i32, %arg1: i32) -> (i32, i32) {
    %c0_i32 = arith.constant 0 : i32
    %c0_i32_0 = arith.constant 0 : i32
    %c0_i32_1 = arith.constant 0 : i32
    return %c0_i32, %c0_i32_0 : i32, i32
  }
  func.func @transform_8(%arg0: i32, %arg1: i32) -> (i32, i32) {
    %c0_i32 = arith.constant 0 : i32
    %c0_i32_0 = arith.constant 0 : i32
    %c0_i32_1 = arith.constant 0 : i32
    return %c0_i32, %c0_i32_0 : i32, i32
  }
  func.func @transform_9(%arg0: i32, %arg1: i32) -> (i32, i32) {
    %c0_i32 = arith.constant 0 : i32
    %c0_i32_0 = arith.constant 0 : i32
    %c0_i32_1 = arith.constant 0 : i32
    return %c0_i32, %c0_i32_0 : i32, i32
  }
  func.func @transform_10(%arg0: i32, %arg1: i32) -> (i32, i32) {
    %c0_i32 = arith.constant 0 : i32
    %c0_i32_0 = arith.constant 0 : i32
    %c0_i32_1 = arith.constant 0 : i32
    return %c0_i32, %c0_i32_0 : i32, i32
  }
  func.func @transform_11(%arg0: i32, %arg1: i32) -> (i32, i32) {
    %c0_i32 = arith.constant 0 : i32
    %c0_i32_0 = arith.constant 0 : i32
    %c0_i32_1 = arith.constant 0 : i32
    return %c0_i32, %c0_i32_0 : i32, i32
  }
  func.func @transform_12(%arg0: i32, %arg1: i32) -> (i32, i32) {
    %c0_i32 = arith.constant 0 : i32
    %c0_i32_0 = arith.constant 0 : i32
    %c0_i32_1 = arith.constant 0 : i32
    return %c0_i32, %c0_i32_0 : i32, i32
  }
  func.func @transform_13(%arg0: i32, %arg1: i32) -> (i32, i32) {
    %c0_i32 = arith.constant 0 : i32
    %c0_i32_0 = arith.constant 0 : i32
    return %c0_i32, %arg1 : i32, i32
  }
  func.func @transform_14(%arg0: i32, %arg1: i32) -> (i32, i32) {
    %c0_i32 = arith.constant 0 : i32
    %c0_i32_0 = arith.constant 0 : i32
    return %c0_i32, %arg1 : i32, i32
  }
  func.func @transform_15(%arg0: i32, %arg1: i32) -> (i32, i32) {
    %c0_i32 = arith.constant 0 : i32
    return %arg0, %arg1 : i32, i32
  }
}

</mosaic_0001>

<bundles_post_ra>
// kernel: tpu_custom_call.1
= control target key start
LH: loop header
LB: loop body
LE: loop exit
PB: predicated region body
PF: predicated region fallthrough
CT: control target
= control target key end

     0   :  { %s4059_s0 = inlined_call_operand.vmem [shape: f32[16,4], index: 0, kind: input, shape index: {}]   ;;  %s4060_s1 = inlined_call_operand.vmem [shape: f32[4,128], index: 1, kind: input, shape index: {}]   ;;  %s4061_s2 = inlined_call_operand.vmem [shape: f32[1,128], index: 2, kind: input, shape index: {}]   ;;  %s4062_s3 = inlined_call_operand.hbm [shape: f32[1,128], index: 3, kind: input, shape index: {}]   ;;  %s4063_s4 = inlined_call_operand.vmem [shape: f32[1,128], index: 4, kind: input, shape index: {}]   ;;  %s4064_s5 = inlined_call_operand.hbm [shape: bf16[128,256], index: 5, kind: input, shape index: {}]   ;;  %s4065_s6 = inlined_call_operand.vmem [shape: f32[1,256], index: 6, kind: input, shape index: {}]   ;;  %s4066_s7 = inlined_call_operand.vmem [shape: f32[1,256], index: 7, kind: input, shape index: {}]   ;;  %s4067_s8 = inlined_call_operand.vmem [shape: f32[1,256], index: 8, kind: input, shape index: {}]   ;;  %s4068_s9 = inlined_call_operand.hbm [shape: bf16[256,512], index: 9, kind: input, shape index: {}]   ;;  %s4069_s10 = inlined_call_operand.vmem [shape: f32[1,512], index: 10, kind: input, shape index: {}]   ;;  %s4070_s11 = inlined_call_operand.vmem [shape: f32[1,512], index: 11, kind: input, shape index: {}]   ;;  %s4071_s12 = inlined_call_operand.vmem [shape: f32[1,512], index: 12, kind: input, shape index: {}]   ;;  %s4072_s13 = inlined_call_operand.hbm [shape: bf16[512,1024], index: 13, kind: input, shape index: {}]   ;;  %s4073_s14 = inlined_call_operand.vmem [shape: f32[1,1024], index: 14, kind: input, shape index: {}]   ;;  %s4074_s15 = inlined_call_operand.hbm [shape: f32[16,1024], index: 15, kind: output, shape index: {}]  }
   0x1   :  { %4076 = sst [smem:[#allocation16_spill]] %s4074_s15 }
   0x2   :  { %20 = vsyncpa [#allocation4], 0 }
   0x3   :  { %21 = vsyncpa [#allocation7], 0 }
   0x4   :  { %22 = vsyncpa [#allocation10], 0 }
   0x5   :  { %23 = vsyncpa [#allocation5], 0  ;;  %s3692_s18 = smov [#allocation6]   ;;  %s3574_s22 = scalar_lea.hbm %s4064_s5, 2048 }
   0x6   :  { %s47_s19 = sshll.u32 %s3692_s18, 4  ;;  %p3575_p0 = scmp.ne.s32.totalorder %s4064_s5, %s3574_s22  ;;  %s48_s19 = int_to_ptr.vmem [resolvable:$true] %s47_s19 }
   0x7   :  { %p3578_p1 = scmp.lt.u32.totalorder %s3574_s22, %s4064_s5 }
   0x9   :  { %p3580_p2 = pnand %p3578_p1, %p3575_p0 }
   0xb   :  { %3583 = shalt.err (!%p3580_p2)
}
   0xc   :  { %s3584_s27 = scalar_lea.vmem %s48_s19, 2048  ;;  %p3589_p4 = scmp.lt.s32.totalorder %s48_s19, %s48_s19 }
   0xd   :  { %p3585_p3 = scmp.ne.s32.totalorder %s48_s19, %s3584_s27  ;;  %p3590_p5 = scmp.lt.s32.totalorder %s3584_s27, %s3584_s27 }
   0xf   :  { %p3591_p6 = por %p3590_p5, %p3589_p4 }
  0x11   :  { %p3592_p7 = pnand %p3591_p6, %p3585_p3 }
  0x13   :  { %3595 = shalt.err (!%p3592_p7)
}
  0x14   :  { %s3693_s28 = smov 128   ;;  %s3694_s29 = smov 8  }
  0x15   :  { %53 = dma.hbm_to_vmem [thread:$0]  %s4064_s5, 2048, %s48_s19, [#allocation7], %s3693_s28, %s3693_s28, %s3694_s29  }
  0x16   :  { %s3695_s17 = smov [#allocation3]   ;;  %s3696_s20 = smov [#allocation8]  }
  0x17   :  { %s36_s18 = sshll.u32 %s3695_s17, 4  ;;  %s65_s21 = sshll.u32 %s3696_s20, 4  ;;  %s37_s18 = int_to_ptr.vmem [resolvable:$true] %s36_s18  ;;  %s66_s21 = int_to_ptr.vmem [resolvable:$true] %s65_s21 }
  0x18   :  { %s3596_s24 = scalar_lea.hbm %s4062_s3, 16 }
  0x19   :  { %p3597_p8 = scmp.ne.s32.totalorder %s4062_s3, %s3596_s24  ;;  %p3600_p9 = scmp.lt.u32.totalorder %s3596_s24, %s4062_s3 }
  0x1b   :  { %p3602_p10 = pnand %p3600_p9, %p3597_p8 }
  0x1d   :  { %3605 = shalt.err (!%p3602_p10)
}
  0x1e   :  { %s3606_s5 = scalar_lea.vmem %s37_s18, 16  ;;  %s3610_s19 = scalar_lea.vmem %s37_s18, 32 }
  0x1f   :  { %p3607_p11 = scmp.ne.s32.totalorder %s37_s18, %s3606_s5  ;;  %p3611_p12 = scmp.lt.s32.totalorder %s37_s18, %s37_s18 }
  0x20   :  { %p3612_p13 = scmp.lt.s32.totalorder %s3610_s19, %s3606_s5 }
  0x22   :  { %p3613_p0 = por %p3612_p13, %p3611_p12 }
  0x24   :  { %p3614_p1 = pnand %p3613_p0, %p3607_p11 }
  0x26   :  { %3617 = shalt.err (!%p3614_p1)
}
  0x27   :  { %39 = dma.hbm_to_vmem [thread:$0]  %s4062_s3, 16, %s37_s18, [#allocation4]  }
  0x28   :  { %s3618_s15 = scalar_lea.hbm %s4068_s9, 8192 }
  0x29   :  { %p3619_p2 = scmp.ne.s32.totalorder %s4068_s9, %s3618_s15  ;;  %p3622_p3 = scmp.lt.u32.totalorder %s3618_s15, %s4068_s9 }
  0x2b   :  { %p3624_p4 = pnand %p3622_p3, %p3619_p2 }
  0x2d   :  { %3627 = shalt.err (!%p3624_p4)
}
  0x2e   :  { %s3628_s24 = scalar_lea.vmem %s66_s21, 8192  ;;  %p3633_p6 = scmp.lt.s32.totalorder %s66_s21, %s66_s21 }
  0x2f   :  { %p3629_p5 = scmp.ne.s32.totalorder %s66_s21, %s3628_s24  ;;  %p3634_p7 = scmp.lt.s32.totalorder %s3628_s24, %s3628_s24 }
  0x31   :  { %p3635_p8 = por %p3634_p7, %p3633_p6 }
  0x33   :  { %p3636_p9 = pnand %p3635_p8, %p3629_p5 }
  0x35   :  { %3639 = shalt.err (!%p3636_p9)
}
  0x36   :  { %s3697_s3 = smov 256   ;;  %s3698_s18 = smov 16  }
  0x37   :  { %71 = dma.hbm_to_vmem [thread:$0]  %s4068_s9, 8192, %s66_s21, [#allocation7], %s3697_s3, %s3697_s3, %s3698_s18  }
  0x38   :  { %s3699_s27 = smov [#allocation9]   ;;  %s3640_s29 = scalar_lea.hbm %s4072_s13, 32768 }
  0x39   :  { %s83_s5 = sshll.u32 %s3699_s27, 4  ;;  %p3641_p10 = scmp.ne.s32.totalorder %s4072_s13, %s3640_s29  ;;  %s84_s5 = int_to_ptr.vmem [resolvable:$true] %s83_s5 }
  0x3a   :  { %p3644_p11 = scmp.lt.u32.totalorder %s3640_s29, %s4072_s13 }
  0x3c   :  { %p3646_p12 = pnand %p3644_p11, %p3641_p10 }
  0x3e   :  { %3649 = shalt.err (!%p3646_p12)
}
  0x3f   :  { %s3650_s20 = scalar_lea.vmem %s84_s5, 32768  ;;  %p3655_p0 = scmp.lt.s32.totalorder %s84_s5, %s84_s5 }
  0x40   :  { %p3651_p13 = scmp.ne.s32.totalorder %s84_s5, %s3650_s20  ;;  %p3656_p1 = scmp.lt.s32.totalorder %s3650_s20, %s3650_s20 }
  0x42   :  { %p3657_p2 = por %p3656_p1, %p3655_p0 }
  0x44   :  { %p3658_p3 = pnand %p3657_p2, %p3651_p13 }
  0x46   :  { %3661 = shalt.err (!%p3658_p3)
}
  0x47   :  { %s3700_s9 = smov 512   ;;  %s3701_s21 = smov 32  }
  0x48   :  { %89 = dma.hbm_to_vmem [thread:$0]  %s4072_s13, 32768, %s84_s5, [#allocation10], %s3700_s9, %s3700_s9, %s3701_s21  }
  0x49   :  { %3684 = dma.done.wait [#allocation4], 16  }
  0x4a   :  { %3685 = vsyncadd [#allocation4], 4294967280 }
  0x4b   :  { %3686 = dma.done.wait [#allocation7], 10240  }
  0x4c   :  { %3687 = vsyncadd [#allocation7], 4294957056 }
  0x4d   :  { %3688 = dma.done.wait [#allocation10], 32768  }
  0x4e   :  { %3689 = vsyncadd [#allocation10], 4294934528  ;;  %v3702_v0 = vmov 1   ;;  %v3703_v1 = vmov 0   ;;  %v109_v2 = vld [vmem:[%s4059_s0] sm:$0xff]  ;;  %v110_v3 = vld [vmem:[%s4059_s0 + $0x8] sm:$0xff]  ;;  %v122_v6 = vlaneseq }
  0x4f   :  { %3437 = vset.pattern.permute.xlu1 %v3702_v0  ;;  %3436 = vset.pattern.permute.xlu0 %v3703_v1  ;;  %v3704_v4 = vmov 2   ;;  %v3705_v5 = vmov 3   ;;  %v111_v12 = vld [vmem:[%s4060_s1] sm:$0xf]  ;;  %v3442_v44 = vld [vmem:[#allocation6 + $0x4] ss:$8 sps:$4 sm:$0xff]  }
  0x50   :  { %374 = vmatprep.mubr.bf16.mxu0 %v3703_v1  ;;  %129 = vperm.xlu1 %3437, %v109_v2   ;;  %v3843_v7 = vshrl.u32 %v122_v6, 7  ;;  %v3048_v37 = vld [vmem:[%s4061_s2] ss:$0 sm:$0xff]  ;;  %v3444_v45 = vld [vmem:[#allocation6] ss:$8 sps:$4 sm:$0xff]  }
  0x51   :  { %114 = vperm.xlu0 %3436, %v109_v2   ;;  %342 = vmatprep.subr.bf16.mxu0 %v3442_v44  ;;  %v3445_v46 = vld [vmem:[#allocation6 + $0x14] ss:$8 sps:$4 sm:$0xff]   ;;  %v3447_v47 = vld [vmem:[#allocation6 + $0x10] ss:$8 sps:$4 sm:$0xff]   ;;  %v3448_v48 = vld [vmem:[#allocation6 + $0x24] ss:$8 sps:$4 sm:$0xff]  }
  0x52   :  { %v3846_v10 = vsub.s32 1, %v3843_v7  ;;  %v3849_v11 = vsub.s32 0, %v3843_v7  ;;  %v3855_v13 = vsub.s32 2, %v3843_v7  ;;  %v3861_v19 = vsub.s32 3, %v3843_v7  ;;  %343 = vmatpush1.bf16.msra.mxu0 %v3444_v45  ;;  %v3450_v49 = vld [vmem:[#allocation6 + $0x20] ss:$8 sps:$4 sm:$0xff]  }
  0x53   :  { %344 = vmatprep.subr.bf16.mxu0 %v3445_v46  ;;  %v3451_v50 = vld [vmem:[#allocation6 + $0x34] ss:$8 sps:$4 sm:$0xff]   ;;  %v3453_v51 = vld [vmem:[#allocation6 + $0x30] ss:$8 sps:$4 sm:$0xff]   ;;  %v3454_v52 = vld [vmem:[#allocation6 + $0x44] ss:$8 sps:$4 sm:$0xff]  }
  0x54   :  { %133 = vperm.xlu1 %3437, %v110_v3   ;;  %v139_v16 = vrot.slane %v111_v12, %v3846_v10  ;;  %v125_v17 = vrot.slane %v111_v12, %v3849_v11  ;;  %v155_v18 = vrot.slane %v111_v12, %v3855_v13  ;;  %v171_v28 = vrot.slane %v111_v12, %v3861_v19  ;;  %v3456_v53 = vld [vmem:[#allocation6 + $0x40] ss:$8 sps:$4 sm:$0xff]   ;;  %v3457_v54 = vld [vmem:[#allocation6 + $0x54] ss:$8 sps:$4 sm:$0xff]   ;;  %v3459_v55 = vld [vmem:[#allocation6 + $0x50] ss:$8 sps:$4 sm:$0xff]  }
  0x55   :  { %119 = vperm.xlu0 %3436, %v110_v3   ;;  %v3460_v56 = vld [vmem:[#allocation6 + $0x64] ss:$8 sps:$4 sm:$0xff]   ;;  %v3462_v57 = vld [vmem:[#allocation6 + $0x60] ss:$8 sps:$4 sm:$0xff]   ;;  %v3463_v58 = vld [vmem:[#allocation6 + $0x74] ss:$8 sps:$4 sm:$0xff]  }
  0x56   :  { %345 = vmatpush1.bf16.msra.mxu0 %v3447_v47  ;;  %v3465_v59 = vld [vmem:[#allocation6 + $0x70] ss:$8 sps:$4 sm:$0xff]   ;;  %v3484_v44 = vld [vmem:[#allocation8 + $0x64] ss:$16 sps:$4 sm:$0xff]   ;;  %v3488_v45 = vld [vmem:[#allocation8 + $0x6c] ss:$16 sps:$4 sm:$0xff]  }
  0x57   :  { %346 = vmatprep.subr.bf16.mxu0 %v3448_v48  ;;  %v3486_v46 = vld [vmem:[#allocation8 + $0x68] ss:$16 sps:$4 sm:$0xff]   ;;  %v3489_v47 = vld [vmem:[#allocation8 + $0x60] ss:$16 sps:$4 sm:$0xff]   ;;  %v3490_v48 = vld [vmem:[#allocation8 + $0x84] ss:$16 sps:$4 sm:$0xff]  }
  0x58   :  { %3439 = vset.pattern.permute.xlu1 %v3704_v4 }
  0x59   :  { %3438 = vset.pattern.permute.xlu0 %v3704_v4  ;;  %149 = vperm.xlu1 %3439, %v110_v3  }
  0x5a   :  { %145 = vperm.xlu0 %3438, %v109_v2   ;;  %347 = vmatpush1.bf16.msra.mxu0 %v3450_v49  ;;  %v3494_v49 = vld [vmem:[#allocation8 + $0x8c] ss:$16 sps:$4 sm:$0xff]  }
  0x5b   :  { %348 = vmatprep.subr.bf16.mxu0 %v3451_v50  ;;  %v3492_v50 = vld [vmem:[#allocation8 + $0x88] ss:$16 sps:$4 sm:$0xff]  }
  0x5d   :  { %3440 = vset.pattern.permute.xlu1 %v3705_v5 }
  0x5e   :  { %3441 = vset.pattern.permute.xlu0 %v3705_v5  ;;  %161 = vperm.xlu1 %3440, %v109_v2  }
  0x5f   :  { %165 = vperm.xlu0 %3441, %v110_v3   ;;  %349 = vmatpush1.bf16.msra.mxu0 %v3453_v51  ;;  %v3495_v51 = vld [vmem:[#allocation8 + $0x80] ss:$16 sps:$4 sm:$0xff]  }
  0x60   :  { %350 = vmatprep.subr.bf16.mxu0 %v3454_v52  ;;  %v3496_v52 = vld [vmem:[#allocation8 + $0xa4] ss:$16 sps:$4 sm:$0xff]  }
  0x63   :  { %351 = vmatpush1.bf16.msra.mxu0 %v3456_v53  ;;  %v3500_v53 = vld [vmem:[#allocation8 + $0xac] ss:$16 sps:$4 sm:$0xff]  }
  0x64   :  { %352 = vmatprep.subr.bf16.mxu0 %v3457_v54  ;;  %v3498_v54 = vld [vmem:[#allocation8 + $0xa8] ss:$16 sps:$4 sm:$0xff]  }
  0x67   :  { %353 = vmatpush1.bf16.msra.mxu0 %v3459_v55  ;;  %v3501_v55 = vld [vmem:[#allocation8 + $0xa0] ss:$16 sps:$4 sm:$0xff]  }
  0x68   :  { %354 = vmatprep.subr.bf16.mxu0 %v3460_v56  ;;  %v3502_v56 = vld [vmem:[#allocation8 + $0xc4] ss:$16 sps:$4 sm:$0xff]  }
  0x6b   :  { %355 = vmatpush1.bf16.msra.mxu0 %v3462_v57  ;;  %v3506_v57 = vld [vmem:[#allocation8 + $0xcc] ss:$16 sps:$4 sm:$0xff]  }
  0x6c   :  { %356 = vmatprep.subr.bf16.mxu0 %v3463_v58  ;;  %v3504_v58 = vld [vmem:[#allocation8 + $0xc8] ss:$16 sps:$4 sm:$0xff]  }
  0x6f   :  { %357 = vmatpush1.bf16.msra.mxu0 %v3465_v59  ;;  %v3507_v59 = vld [vmem:[#allocation8 + $0xc0] ss:$16 sps:$4 sm:$0xff]  }
  0xcf   :  { %v130_v8 = vpop.permute.xlu1 %129 }
  0xd0   :  { %v115_v9 = vpop.permute.xlu0 %114  ;;  %v140_v20 = vmul.f32 %v139_v16, %v130_v8 }
  0xd1   :  { %v126_v21 = vmul.f32 %v125_v17, %v115_v9 }
  0xd3   :  { %v134_v14 = vpop.permute.xlu1 %133  ;;  %v142_v29 = vadd.f32 %v140_v20, %v126_v21  ;;  %v3049_v20 = vld [vmem:[#allocation3] ss:$0 sm:$0xff] }
  0xd4   :  { %v120_v15 = vpop.permute.xlu0 %119  ;;  %v141_v22 = vmul.f32 %v139_v16, %v134_v14 }
  0xd5   :  { %v127_v23 = vmul.f32 %v125_v17, %v120_v15 }
  0xd7   :  { %v143_v30 = vadd.f32 %v141_v22, %v127_v23  ;;  %v3050_v23 = vld [vmem:[%s4063_s4] ss:$0 sm:$0xff] }
  0xd8   :  { %v150_v24 = vpop.permute.xlu1 %149 }
  0xd9   :  { %v146_v25 = vpop.permute.xlu0 %145  ;;  %v157_v26 = vmul.f32 %v155_v18, %v150_v24 }
  0xda   :  { %v156_v27 = vmul.f32 %v155_v18, %v146_v25 }
  0xdb   :  { %v159_v33 = vadd.f32 %v157_v26, %v143_v30 }
  0xdc   :  { %v158_v34 = vadd.f32 %v156_v27, %v142_v29 }
  0xdd   :  { %v162_v31 = vpop.permute.xlu1 %161 }
  0xde   :  { %v166_v32 = vpop.permute.xlu0 %165  ;;  %v172_v35 = vmul.f32 %v171_v28, %v162_v31 }
  0xdf   :  { %v173_v36 = vmul.f32 %v171_v28, %v166_v32  ;;  %v3466_v32 = vld [vmem:[#allocation8 + $0x4] ss:$16 sps:$4 sm:$0xff]  }
  0xe0   :  { %v174_v38 = vadd.f32 %v172_v35, %v158_v34  ;;  %v3470_v34 = vld [vmem:[#allocation8 + $0xc] ss:$16 sps:$4 sm:$0xff]   ;;  %v3471_v35 = vld [vmem:[#allocation8] ss:$16 sps:$4 sm:$0xff]   ;;  %867 = vmatprep.subr.bf16.mxu1 %v3466_v32  ;;  %v3526_v32 = vld [vmem:[#allocation8 + $0x144] ss:$16 sps:$4 sm:$0xff]  }
  0xe1   :  { %v175_v39 = vadd.f32 %v173_v36, %v159_v33  ;;  %v3468_v33 = vld [vmem:[#allocation8 + $0x8] ss:$16 sps:$4 sm:$0xff]   ;;  %v3472_v36 = vld [vmem:[#allocation8 + $0x24] ss:$16 sps:$4 sm:$0xff]   ;;  %910 = vmatprep.subr.bf16.mxu0 %v3470_v34  ;;  %868 = vmatpush1.bf16.msra.mxu1 %v3471_v35  ;;  %v3531_v35 = vld [vmem:[#allocation8 + $0x140] ss:$16 sps:$4 sm:$0xff]  }
  0xe2   :  { %v3867_v40 = vadd.f32 %v3048_v37, %v174_v38  ;;  %v3474_v38 = vld [vmem:[#allocation8 + $0x28] ss:$16 sps:$4 sm:$0xff]   ;;  %869 = vmatprep.subr.bf16.mxu1 %v3472_v36  ;;  %v3532_v36 = vld [vmem:[#allocation8 + $0x164] ss:$16 sps:$4 sm:$0xff]  }
  0xe3   :  { %v3869_v41 = vadd.f32 %v3048_v37, %v175_v39  ;;  %v3476_v37 = vld [vmem:[#allocation8 + $0x2c] ss:$16 sps:$4 sm:$0xff]   ;;  %v3477_v39 = vld [vmem:[#allocation8 + $0x20] ss:$16 sps:$4 sm:$0xff]   ;;  %v3528_v34 = vld [vmem:[#allocation8 + $0x148] ss:$16 sps:$4 sm:$0xff]  }
  0xe4   :  { %187 = vadd.xlane.f32.xlu1 %v3867_v40  ;;  %v191_v42 = vmul.f32 %v3867_v40, %v3867_v40 }
  0xe5   :  { %189 = vadd.xlane.f32.xlu0 %v3869_v41  ;;  %v192_v43 = vmul.f32 %v3869_v41, %v3869_v41  ;;  %870 = vmatpush1.bf16.msra.mxu1 %v3477_v39  ;;  %v3537_v39 = vld [vmem:[#allocation8 + $0x160] ss:$16 sps:$4 sm:$0xff]  }
  0xe8   :  { %193 = vadd.xlane.f32.xlu1 %v191_v42  ;;  %v3480_v42 = vld [vmem:[#allocation8 + $0x48] ss:$16 sps:$4 sm:$0xff]  }
  0xe9   :  { %195 = vadd.xlane.f32.xlu0 %v192_v43  ;;  %v3483_v43 = vld [vmem:[#allocation8 + $0x40] ss:$16 sps:$4 sm:$0xff]  }
 0x171   :  { %v188_v60 = vpop.xlane.xlu1 %187 }
 0x172   :  { %v190_v61 = vpop.xlane.xlu0 %189  ;;  %v197_v62 = vmul.f32 0.0078125, %v188_v60  ;;  %v250_v60 = vld [vmem:[%s4065_s6] sm:$0x3] }
 0x173   :  { %v198_v63 = vmul.f32 0.0078125, %v190_v61  ;;  %v255_v61 = vrot.slane %v250_v60, %v3849_v11 }
 0x174   :  { %v201_v2 = vmul.f32 %v197_v62, %v197_v62  ;;  %v207_v16 = vsub.f32 %v3867_v40, %v197_v62  ;;  %v3478_v40 = vld [vmem:[#allocation8 + $0x44] ss:$16 sps:$4 sm:$0xff]   ;;  %v259_v62 = vrot.slane %v250_v60, %v3846_v10 }
 0x175   :  { %v194_v0 = vpop.xlane.xlu1 %193  ;;  %v202_v3 = vmul.f32 %v198_v63, %v198_v63  ;;  %v208_v18 = vsub.f32 %v3869_v41, %v198_v63  ;;  %v3482_v41 = vld [vmem:[#allocation8 + $0x4c] ss:$16 sps:$4 sm:$0xff]   ;;  %871 = vmatprep.subr.bf16.mxu1 %v3478_v40  ;;  %v3538_v40 = vld [vmem:[#allocation8 + $0x184] ss:$16 sps:$4 sm:$0xff]  }
 0x176   :  { %v196_v1 = vpop.xlane.xlu0 %195  ;;  %v199_v4 = vmul.f32 0.0078125, %v194_v0  ;;  %872 = vmatpush1.bf16.msra.mxu1 %v3483_v43  ;;  %v3543_v43 = vld [vmem:[#allocation8 + $0x180] ss:$16 sps:$4 sm:$0xff]  }
 0x177   :  { %v200_v5 = vmul.f32 0.0078125, %v196_v1  ;;  %873 = vmatprep.subr.bf16.mxu1 %v3484_v44  ;;  %v3544_v44 = vld [vmem:[#allocation8 + $0x1a4] ss:$16 sps:$4 sm:$0xff]  }
 0x178   :  { %v203_v6 = vsub.f32 %v199_v4, %v201_v2 }
 0x179   :  { %v204_v8 = vsub.f32 %v200_v5, %v202_v3 }
 0x17a   :  { %v205_v9 = vmax.f32 %v203_v6, 0.0  ;;  %874 = vmatpush1.bf16.msra.mxu1 %v3489_v47  ;;  %v3549_v47 = vld [vmem:[#allocation8 + $0x1a0] ss:$16 sps:$4 sm:$0xff]  }
 0x17b   :  { %v206_v12 = vmax.f32 %v204_v8, 0.0  ;;  %875 = vmatprep.subr.bf16.mxu1 %v3490_v48  ;;  %v3550_v48 = vld [vmem:[#allocation8 + $0x1c4] ss:$16 sps:$4 sm:$0xff]  }
 0x17c   :  { %v209_v14 = vadd.f32 1e-05, %v205_v9 }
 0x17d   :  { %v210_v15 = vadd.f32 1e-05, %v206_v12 }
 0x17e   :  { %3562 = vrsqrt.f32 %v209_v14  ;;  %876 = vmatpush1.bf16.msra.mxu1 %v3495_v51  ;;  %v3555_v51 = vld [vmem:[#allocation8 + $0x1c0] ss:$16 sps:$4 sm:$0xff]  }
 0x17f   :  { %3564 = vrsqrt.f32 %v210_v15  ;;  %877 = vmatprep.subr.bf16.mxu1 %v3496_v52  ;;  %v3556_v52 = vld [vmem:[#allocation8 + $0x1e4] ss:$16 sps:$4 sm:$0xff]  }
 0x182   :  { %878 = vmatpush1.bf16.msra.mxu1 %v3501_v55  ;;  %v3561_v55 = vld [vmem:[#allocation8 + $0x1e0] ss:$16 sps:$4 sm:$0xff]  }
 0x183   :  { %879 = vmatprep.subr.bf16.mxu1 %v3502_v56 }
 0x186   :  { %880 = vmatpush1.bf16.msra.mxu1 %v3507_v59 }
 0x188   :  { %v3563_v17 = vpop.eup %3562 }
 0x189   :  { %v3565_v21 = vpop.eup %3564  ;;  %v213_v22 = vmul.f32 %v3563_v17, %v207_v16 }
 0x18a   :  { %v214_v24 = vmul.f32 %v3565_v21, %v208_v18  ;;  %v3512_v21 = vld [vmem:[#allocation8 + $0xec] ss:$16 sps:$4 sm:$0xff]  }
 0x18b   :  { %v221_v25 = vmul.f32 %v3049_v20, %v213_v22  ;;  %v3510_v22 = vld [vmem:[#allocation8 + $0xe8] ss:$16 sps:$4 sm:$0xff]  }
 0x18c   :  { %v222_v26 = vmul.f32 %v3049_v20, %v214_v24  ;;  %v3508_v20 = vld [vmem:[#allocation8 + $0xe4] ss:$16 sps:$4 sm:$0xff]  }
 0x18d   :  { %v229_v27 = vadd.f32 %v3050_v23, %v221_v25  ;;  %881 = vmatprep.subr.bf16.mxu1 %v3508_v20  ;;  %v3514_v24 = vld [vmem:[#allocation8 + $0x104] ss:$16 sps:$4 sm:$0xff]   ;;  %v3518_v25 = vld [vmem:[#allocation8 + $0x10c] ss:$16 sps:$4 sm:$0xff]  }
 0x18e   :  { %v230_v28 = vadd.f32 %v3050_v23, %v222_v26  ;;  %v3513_v23 = vld [vmem:[#allocation8 + $0xe0] ss:$16 sps:$4 sm:$0xff]   ;;  %v3516_v26 = vld [vmem:[#allocation8 + $0x108] ss:$16 sps:$4 sm:$0xff]  }
 0x18f   :  { %v231_v29 = vmax.f32 %v229_v27, 0.0  ;;  %882 = vmatpush1.bf16.msra.mxu1 %v3513_v23  ;;  %v3519_v27 = vld [vmem:[#allocation8 + $0x100] ss:$16 sps:$4 sm:$0xff]  }
 0x190   :  { %v232_v30 = vmax.f32 %v230_v28, 0.0  ;;  %883 = vmatprep.subr.bf16.mxu1 %v3514_v24  ;;  %v3520_v28 = vld [vmem:[#allocation8 + $0x124] ss:$16 sps:$4 sm:$0xff]  }
 0x192   :  { %v233_v31 = vpack.c.bf16 %v232_v30, %v231_v29  ;;  %v3524_v29 = vld [vmem:[#allocation8 + $0x12c] ss:$16 sps:$4 sm:$0xff]   ;;  %v3522_v30 = vld [vmem:[#allocation8 + $0x128] ss:$16 sps:$4 sm:$0xff]  }
 0x193   :  { %884 = vmatpush1.bf16.msra.mxu1 %v3519_v27 }
 0x194   :  { %375 = vmatmul.mubr.bf16.vlgmr.msra.gmra.mrb[0].mxu0 %v233_v31  ;;  %v3525_v31 = vld [vmem:[#allocation8 + $0x120] ss:$16 sps:$4 sm:$0xff]   ;;  %885 = vmatprep.subr.bf16.mxu1 %v3520_v28 }
 0x195   :  { %911 = vmatpush1.bf16.msra.mxu0 %v3468_v33  ;;  %v3530_v33 = vld [vmem:[#allocation8 + $0x14c] ss:$16 sps:$4 sm:$0xff]  }
 0x196   :  { %912 = vmatprep.subr.bf16.mxu0 %v3476_v37  ;;  %v3534_v37 = vld [vmem:[#allocation8 + $0x168] ss:$16 sps:$4 sm:$0xff]  }
 0x197   :  { %886 = vmatpush1.bf16.msra.mxu1 %v3525_v31 }
 0x198   :  { %887 = vmatprep.subr.bf16.mxu1 %v3526_v32 }
 0x199   :  { %913 = vmatpush1.bf16.msra.mxu0 %v3474_v38  ;;  %v3536_v38 = vld [vmem:[#allocation8 + $0x16c] ss:$16 sps:$4 sm:$0xff]  }
 0x19a   :  { %914 = vmatprep.subr.bf16.mxu0 %v3482_v41  ;;  %v3542_v41 = vld [vmem:[#allocation8 + $0x18c] ss:$16 sps:$4 sm:$0xff]  }
 0x19b   :  { %888 = vmatpush1.bf16.msra.mxu1 %v3531_v35 }
 0x19c   :  { %889 = vmatprep.subr.bf16.mxu1 %v3532_v36 }
 0x19d   :  { %915 = vmatpush1.bf16.msra.mxu0 %v3480_v42  ;;  %v3540_v42 = vld [vmem:[#allocation8 + $0x188] ss:$16 sps:$4 sm:$0xff]  }
 0x19e   :  { %916 = vmatprep.subr.bf16.mxu0 %v3488_v45  ;;  %v3548_v45 = vld [vmem:[#allocation8 + $0x1ac] ss:$16 sps:$4 sm:$0xff]  }
 0x19f   :  { %890 = vmatpush1.bf16.msra.mxu1 %v3537_v39 }
 0x1a0   :  { %891 = vmatprep.subr.bf16.mxu1 %v3538_v40 }
 0x1a1   :  { %917 = vmatpush1.bf16.msra.mxu0 %v3486_v46  ;;  %v3546_v46 = vld [vmem:[#allocation8 + $0x1a8] ss:$16 sps:$4 sm:$0xff]  }
 0x1a2   :  { %918 = vmatprep.subr.bf16.mxu0 %v3494_v49  ;;  %v3554_v49 = vld [vmem:[#allocation8 + $0x1cc] ss:$16 sps:$4 sm:$0xff]  }
 0x1a3   :  { %892 = vmatpush1.bf16.msra.mxu1 %v3543_v43 }
 0x1a4   :  { %893 = vmatprep.subr.bf16.mxu1 %v3544_v44  ;;  %v1095_v44 = vld [vmem:[#allocation9 + $0x20] sm:$0xff] }
 0x1a5   :  { %919 = vmatpush1.bf16.msra.mxu0 %v3492_v50  ;;  %v3552_v50 = vld [vmem:[#allocation8 + $0x1c8] ss:$16 sps:$4 sm:$0xff]  }
 0x1a6   :  { %920 = vmatprep.subr.bf16.mxu0 %v3500_v53  ;;  %v3560_v53 = vld [vmem:[#allocation8 + $0x1ec] ss:$16 sps:$4 sm:$0xff]  }
 0x1a7   :  { %894 = vmatpush1.bf16.msra.mxu1 %v3549_v47 }
 0x1a8   :  { %895 = vmatprep.subr.bf16.mxu1 %v3550_v48  ;;  %v1096_v48 = vld [vmem:[#allocation9 + $0x28] sm:$0xff] }
 0x1a9   :  { %921 = vmatpush1.bf16.msra.mxu0 %v3498_v54  ;;  %v3558_v54 = vld [vmem:[#allocation8 + $0x1e8] ss:$16 sps:$4 sm:$0xff]  }
 0x1aa   :  { %922 = vmatprep.subr.bf16.mxu0 %v3506_v57 }
 0x1ab   :  { %896 = vmatpush1.bf16.msra.mxu1 %v3555_v51 }
 0x1ac   :  { %897 = vmatprep.subr.bf16.mxu1 %v3556_v52 }
 0x1ad   :  { %923 = vmatpush1.bf16.msra.mxu0 %v3504_v58 }
 0x1ae   :  { %924 = vmatprep.subr.bf16.mxu0 %v3512_v21 }
 0x1af   :  { %898 = vmatpush1.bf16.msra.mxu1 %v3561_v55  ;;  %v1104_v55 = vld [vmem:[#allocation9 + $0x68] sm:$0xff] }
 0x1b1   :  { %925 = vmatpush1.bf16.msra.mxu0 %v3510_v22 }
 0x1b2   :  { %926 = vmatprep.subr.bf16.mxu0 %v3518_v25 }
 0x1b5   :  { %927 = vmatpush1.bf16.msra.mxu0 %v3516_v26 }
 0x1b6   :  { %928 = vmatprep.subr.bf16.mxu0 %v3524_v29 }
 0x1b9   :  { %929 = vmatpush1.bf16.msra.mxu0 %v3522_v30 }
 0x1ba   :  { %930 = vmatprep.subr.bf16.mxu0 %v3530_v33 }
 0x1bd   :  { %931 = vmatpush1.bf16.msra.mxu0 %v3528_v34 }
 0x1be   :  { %932 = vmatprep.subr.bf16.mxu0 %v3536_v38 }
 0x1c1   :  { %933 = vmatpush1.bf16.msra.mxu0 %v3534_v37 }
 0x1c2   :  { %934 = vmatprep.subr.bf16.mxu0 %v3542_v41 }
 0x1c5   :  { %935 = vmatpush1.bf16.msra.mxu0 %v3540_v42 }
 0x1c6   :  { %936 = vmatprep.subr.bf16.mxu0 %v3548_v45  ;;  %v1092_v45 = vld [vmem:[#allocation9 + $0x8] sm:$0xff] }
 0x1c7   :  { %v3133_v51 = vcombine.low %v1092_v45, %v1096_v48  ;;  %v3134_v52 = vcombine.high %v1092_v45, %v1096_v48  ;;  %v525_v48 = vld [vmem:[%s4069_s10] sm:$0xf] }
 0x1c9   :  { %937 = vmatpush1.bf16.msra.mxu0 %v3546_v46 }
 0x1ca   :  { %938 = vmatprep.subr.bf16.mxu0 %v3554_v49  ;;  %v1099_v49 = vld [vmem:[#allocation9 + $0x40] sm:$0xff] }
 0x1cd   :  { %939 = vmatpush1.bf16.msra.mxu0 %v3552_v50  ;;  %v1103_v50 = vld [vmem:[#allocation9 + $0x60] sm:$0xff] }
 0x1ce   :  { %940 = vmatprep.subr.bf16.mxu0 %v3560_v53  ;;  %v3140_v53 = vcombine.high %v1099_v49, %v1103_v50 }
 0x1d1   :  { %941 = vmatpush1.bf16.msra.mxu0 %v3558_v54  ;;  %v1100_v54 = vld [vmem:[#allocation9 + $0x48] sm:$0xff] }
 0x1d2   :  { %2755 = vmatprep.subr.bf16.mxu0 %v3134_v52 }
 0x267   :  { %v376_v63 = vpop.f32.mrb[0].mxu0 }
 0x268   :  { %v3887_v0 = vadd.f32 %v376_v63, %v255_v61  ;;  %v378_v1 = vpop.f32.mrb[1].mxu0 }
 0x269   :  { %v3889_v2 = vadd.f32 %v378_v1, %v259_v62  ;;  %v380_v3 = vpop.f32.mrb[2].mxu0 }
 0x26a   :  { %v3891_v4 = vadd.f32 %v380_v3, %v255_v61  ;;  %v382_v5 = vpop.f32.mrb[3].mxu0  ;;  %v393_v9 = vmul.f32 %v3887_v0, %v3887_v0 }
 0x26b   :  { %v3893_v6 = vadd.f32 %v382_v5, %v259_v62  ;;  %v387_v8 = vadd.f32 %v3889_v2, %v3887_v0  ;;  %v394_v12 = vmul.f32 %v3889_v2, %v3889_v2 }
 0x26c   :  { %v395_v15 = vmul.f32 %v3891_v4, %v3891_v4 }
 0x26d   :  { %388 = vadd.xlane.f32.xlu1 %v387_v8  ;;  %v390_v14 = vadd.f32 %v3893_v6, %v3891_v4  ;;  %v396_v16 = vmul.f32 %v3893_v6, %v3893_v6  ;;  %v397_v17 = vadd.f32 %v394_v12, %v393_v9 }
 0x26f   :  { %391 = vadd.xlane.f32.xlu0 %v390_v14  ;;  %v400_v18 = vadd.f32 %v396_v16, %v395_v15  ;;  %v385_v16 = vld [vmem:[%s4066_s7] sm:$0x3] }
 0x270   :  { %v429_v21 = vrot.slane %v385_v16, %v3849_v11  ;;  %v433_v22 = vrot.slane %v385_v16, %v3846_v10 }
 0x271   :  { %398 = vadd.xlane.f32.xlu1 %v397_v17  ;;  %v386_v17 = vld [vmem:[%s4067_s8] sm:$0x3] }
 0x272   :  { %v444_v24 = vrot.slane %v386_v17, %v3849_v11  ;;  %v448_v25 = vrot.slane %v386_v17, %v3846_v10  ;;  %v1123_v17 = vld [vmem:[#allocation9 + $0x100] sm:$0xff] }
 0x273   :  { %401 = vadd.xlane.f32.xlu0 %v400_v18 }
 0x2fa   :  { %v389_v56 = vpop.xlane.xlu1 %388 }
 0x2fb   :  { %v403_v57 = vmul.f32 0.00390625, %v389_v56  ;;  %v1107_v56 = vld [vmem:[#allocation9 + $0x80] sm:$0xff] }
 0x2fc   :  { %v392_v58 = vpop.xlane.xlu0 %391 }
 0x2fd   :  { %v404_v59 = vmul.f32 0.00390625, %v392_v58  ;;  %v407_v61 = vmul.f32 %v403_v57, %v403_v57  ;;  %v413_v18 = vsub.f32 %v3887_v0, %v403_v57  ;;  %v414_v20 = vsub.f32 %v3889_v2, %v403_v57  ;;  %v1111_v58 = vld [vmem:[#allocation9 + $0xa0] sm:$0xff] }
 0x2fe   :  { %v399_v60 = vpop.xlane.xlu1 %398  ;;  %v3142_v57 = vcombine.high %v1100_v54, %v1104_v55 }
 0x2ff   :  { %v405_v62 = vmul.f32 0.00390625, %v399_v60  ;;  %v408_v3 = vmul.f32 %v404_v59, %v404_v59  ;;  %v415_v26 = vsub.f32 %v3891_v4, %v404_v59  ;;  %v416_v27 = vsub.f32 %v3893_v6, %v404_v59  ;;  %v1091_v6 = vld [vmem:[#allocation9] sm:$0xff]  ;;  %v1108_v59 = vld [vmem:[#allocation9 + $0x88] sm:$0xff] }
 0x300   :  { %v402_v63 = vpop.xlane.xlu0 %401  ;;  %v3131_v46 = vcombine.low %v1091_v6, %v1095_v44  ;;  %v3132_v47 = vcombine.high %v1091_v6, %v1095_v44  ;;  %v1112_v60 = vld [vmem:[#allocation9 + $0xa8] sm:$0xff] }
 0x301   :  { %v409_v1 = vsub.f32 %v405_v62, %v407_v61  ;;  %v406_v5 = vmul.f32 0.00390625, %v402_v63  ;;  %v3139_v61 = vcombine.low %v1099_v49, %v1103_v50  ;;  %v3141_v62 = vcombine.low %v1100_v54, %v1104_v55 }
 0x302   :  { %2669 = vmatprep.subr.bf16.mxu1 %v3132_v47  ;;  %v3148_v63 = vcombine.high %v1107_v56, %v1111_v58  ;;  %v530_v49 = vrot.slane %v525_v48, %v3849_v11  ;;  %v538_v50 = vrot.slane %v525_v48, %v3855_v13 }
 0x303   :  { %v411_v8 = vmax.f32 %v409_v1, 0.0  ;;  %v410_v9 = vsub.f32 %v406_v5, %v408_v3  ;;  %v3150_v1 = vcombine.high %v1108_v59, %v1112_v60  ;;  %v1115_v3 = vld [vmem:[#allocation9 + $0xc0] sm:$0xff] }
 0x304   :  { %v1119_v5 = vld [vmem:[#allocation9 + $0xe0] sm:$0xff] }
 0x305   :  { %v417_v12 = vadd.f32 1e-05, %v411_v8  ;;  %v412_v14 = vmax.f32 %v410_v9, 0.0  ;;  %v1116_v8 = vld [vmem:[#allocation9 + $0xc8] sm:$0xff] }
 0x306   :  { %v1120_v9 = vld [vmem:[#allocation9 + $0xe8] sm:$0xff] }
 0x307   :  { %3566 = vrsqrt.f32 %v417_v12  ;;  %v418_v15 = vadd.f32 1e-05, %v412_v14  ;;  %v3147_v12 = vcombine.low %v1107_v56, %v1111_v58  ;;  %v3149_v14 = vcombine.low %v1108_v59, %v1112_v60 }
 0x308   :  { %v3158_v16 = vcombine.high %v1116_v8, %v1120_v9 }
 0x309   :  { %3568 = vrsqrt.f32 %v418_v15  ;;  %v3156_v15 = vcombine.high %v1115_v3, %v1119_v5 }
 0x311   :  { %v3567_v23 = vpop.eup %3566 }
 0x312   :  { %v422_v28 = vmul.f32 %v3567_v23, %v414_v20  ;;  %v421_v29 = vmul.f32 %v3567_v23, %v413_v18  ;;  %v1127_v18 = vld [vmem:[#allocation9 + $0x120] sm:$0xff]  ;;  %v1124_v20 = vld [vmem:[#allocation9 + $0x108] sm:$0xff]  ;;  %v3157_v23 = vcombine.low %v1116_v8, %v1120_v9 }
 0x313   :  { %v3569_v30 = vpop.eup %3568 }
 0x314   :  { %v424_v31 = vmul.f32 %v3569_v30, %v416_v27  ;;  %v437_v0 = vmul.f32 %v433_v22, %v422_v28  ;;  %v423_v32 = vmul.f32 %v3569_v30, %v415_v26  ;;  %v436_v2 = vmul.f32 %v429_v21, %v421_v29  ;;  %v1131_v26 = vld [vmem:[#allocation9 + $0x140] sm:$0xff]  ;;  %v1132_v28 = vld [vmem:[#allocation9 + $0x148] sm:$0xff] }
 0x315   :  { %v1135_v27 = vld [vmem:[#allocation9 + $0x160] sm:$0xff]  ;;  %v1136_v29 = vld [vmem:[#allocation9 + $0x168] sm:$0xff]  ;;  %v3163_v30 = vcombine.low %v1123_v17, %v1127_v18 }
 0x316   :  { %v439_v33 = vmul.f32 %v433_v22, %v424_v31  ;;  %v452_v34 = vadd.f32 %v448_v25, %v437_v0  ;;  %v438_v35 = vmul.f32 %v429_v21, %v423_v32  ;;  %v451_v36 = vadd.f32 %v444_v24, %v436_v2  ;;  %v1128_v21 = vld [vmem:[#allocation9 + $0x128] sm:$0xff]  ;;  %v1139_v2 = vld [vmem:[#allocation9 + $0x180] sm:$0xff] }
 0x317   :  { %v3155_v22 = vcombine.low %v1115_v3, %v1119_v5  ;;  %v3165_v31 = vcombine.low %v1124_v20, %v1128_v21  ;;  %v3172_v0 = vcombine.high %v1131_v26, %v1135_v27  ;;  %v3174_v32 = vcombine.high %v1132_v28, %v1136_v29 }
 0x318   :  { %v454_v37 = vadd.f32 %v448_v25, %v439_v33  ;;  %v453_v38 = vadd.f32 %v444_v24, %v438_v35  ;;  %v456_v39 = vmax.f32 %v452_v34, 0.0  ;;  %v455_v41 = vmax.f32 %v451_v36, 0.0  ;;  %v1143_v33 = vld [vmem:[#allocation9 + $0x1a0] sm:$0xff]  ;;  %v1140_v34 = vld [vmem:[#allocation9 + $0x188] sm:$0xff] }
 0x319   :  { %v3164_v24 = vcombine.high %v1123_v17, %v1127_v18  ;;  %v3166_v25 = vcombine.high %v1124_v20, %v1128_v21  ;;  %v1144_v35 = vld [vmem:[#allocation9 + $0x1a8] sm:$0xff]  ;;  %v3171_v36 = vcombine.low %v1131_v26, %v1135_v27 }
 0x31a   :  { %v458_v40 = vmax.f32 %v454_v37, 0.0  ;;  %v457_v42 = vmax.f32 %v453_v38, 0.0  ;;  %v3173_v37 = vcombine.low %v1132_v28, %v1136_v29  ;;  %v3180_v38 = vcombine.high %v1139_v2, %v1143_v33 }
 0x31b   :  { %v3181_v6 = vcombine.low %v1140_v34, %v1144_v35 }
 0x31c   :  { %v460_v4 = vpack.c.bf16 %v458_v40, %v456_v39  ;;  %v459_v43 = vpack.c.bf16 %v457_v42, %v455_v41  ;;  %v3182_v39 = vcombine.high %v1140_v34, %v1144_v35  ;;  %v1147_v40 = vld [vmem:[#allocation9 + $0x1c0] sm:$0xff]  ;;  %v1148_v42 = vld [vmem:[#allocation9 + $0x1c8] sm:$0xff] }
 0x31d   :  { %v1151_v41 = vld [vmem:[#allocation9 + $0x1e0] sm:$0xff]  ;;  %v1156_v34 = vld [vmem:[#allocation9 + $0x208] sm:$0xff] }
 0x31e   :  { %899 = vmatprep.mubr.bf16.mxu1 %v460_v4  ;;  %942 = vmatprep.mubr.bf16.mxu0 %v460_v4  ;;  %v1152_v4 = vld [vmem:[#allocation9 + $0x1e8] sm:$0xff]  ;;  %v3188_v44 = vcombine.high %v1147_v40, %v1151_v41 }
 0x31f   :  { %900 = vmatmul.mubr.bf16.vlgmr.msra.gmra.mrb[0].mxu1 %v459_v43  ;;  %943 = vmatmul.mubr.bf16.vlgmr.msra.gmra.mrb[4].mxu0 %v459_v43  ;;  %v3179_v43 = vcombine.low %v1139_v2, %v1143_v33  ;;  %v3190_v45 = vcombine.high %v1148_v42, %v1152_v4  ;;  %v3189_v47 = vcombine.low %v1148_v42, %v1152_v4  ;;  %v1155_v2 = vld [vmem:[#allocation9 + $0x200] sm:$0xff]  ;;  %v1164_v42 = vld [vmem:[#allocation9 + $0x248] sm:$0xff] }
 0x320   :  { %2670 = vmatpush1.bf16.msra.mxu1 %v3131_v46  ;;  %2756 = vmatpush1.bf16.msra.mxu0 %v3133_v51  ;;  %v3187_v46 = vcombine.low %v1147_v40, %v1151_v41  ;;  %v534_v51 = vrot.slane %v525_v48, %v3846_v10  ;;  %v1159_v33 = vld [vmem:[#allocation9 + $0x220] sm:$0xff] }
 0x321   :  { %2671 = vmatprep.subr.bf16.mxu1 %v3140_v53  ;;  %2757 = vmatprep.subr.bf16.mxu0 %v3142_v57  ;;  %v542_v57 = vrot.slane %v525_v48, %v3861_v19  ;;  %v3196_v35 = vcombine.high %v1155_v2, %v1159_v33  ;;  %v1163_v40 = vld [vmem:[#allocation9 + $0x240] sm:$0xff]  ;;  %v1172_v48 = vld [vmem:[#allocation9 + $0x288] sm:$0xff] }
 0x322   :  { %v1167_v41 = vld [vmem:[#allocation9 + $0x260] sm:$0xff] }
 0x323   :  { %v3204_v4 = vcombine.high %v1163_v40, %v1167_v41 }
 0x324   :  { %2672 = vmatpush1.bf16.msra.mxu1 %v3139_v61  ;;  %2758 = vmatpush1.bf16.msra.mxu0 %v3141_v62 }
 0x325   :  { %2673 = vmatprep.subr.bf16.mxu1 %v3148_v63  ;;  %2759 = vmatprep.subr.bf16.mxu0 %v3150_v1 }
 0x328   :  { %2674 = vmatpush1.bf16.msra.mxu1 %v3147_v12  ;;  %2760 = vmatpush1.bf16.msra.mxu0 %v3149_v14 }
 0x329   :  { %2675 = vmatprep.subr.bf16.mxu1 %v3156_v15  ;;  %2761 = vmatprep.subr.bf16.mxu0 %v3158_v16 }
 0x32c   :  { %2676 = vmatpush1.bf16.msra.mxu1 %v3155_v22  ;;  %2762 = vmatpush1.bf16.msra.mxu0 %v3157_v23 }
 0x32d   :  { %2677 = vmatprep.subr.bf16.mxu1 %v3164_v24  ;;  %2763 = vmatprep.subr.bf16.mxu0 %v3166_v25 }
 0x330   :  { %2678 = vmatpush1.bf16.msra.mxu1 %v3163_v30  ;;  %2764 = vmatpush1.bf16.msra.mxu0 %v3165_v31 }
 0x331   :  { %2679 = vmatprep.subr.bf16.mxu1 %v3172_v0  ;;  %2765 = vmatprep.subr.bf16.mxu0 %v3174_v32 }
 0x334   :  { %2680 = vmatpush1.bf16.msra.mxu1 %v3171_v36  ;;  %2766 = vmatpush1.bf16.msra.mxu0 %v3173_v37  ;;  %v1160_v36 = vld [vmem:[#allocation9 + $0x228] sm:$0xff]  ;;  %v3195_v37 = vcombine.low %v1155_v2, %v1159_v33 }
 0x335   :  { %2681 = vmatprep.subr.bf16.mxu1 %v3180_v38  ;;  %2767 = vmatprep.subr.bf16.mxu0 %v3182_v39  ;;  %v3197_v38 = vcombine.low %v1156_v34, %v1160_v36  ;;  %v3198_v39 = vcombine.high %v1156_v34, %v1160_v36  ;;  %v1215_v36 = vld [vmem:[#allocation9 + $0x3e0] sm:$0xff] }
 0x338   :  { %2682 = vmatpush1.bf16.msra.mxu1 %v3179_v43  ;;  %2768 = vmatpush1.bf16.msra.mxu0 %v3181_v6  ;;  %v1168_v43 = vld [vmem:[#allocation9 + $0x268] sm:$0xff]  ;;  %v3203_v6 = vcombine.low %v1163_v40, %v1167_v41 }
 0x339   :  { %2683 = vmatprep.subr.bf16.mxu1 %v3188_v44  ;;  %2769 = vmatprep.subr.bf16.mxu0 %v3190_v45  ;;  %v3205_v44 = vcombine.low %v1164_v42, %v1168_v43  ;;  %v3206_v45 = vcombine.high %v1164_v42, %v1168_v43 }
 0x33c   :  { %2684 = vmatpush1.bf16.msra.mxu1 %v3187_v46  ;;  %2770 = vmatpush1.bf16.msra.mxu0 %v3189_v47  ;;  %v1171_v46 = vld [vmem:[#allocation9 + $0x280] sm:$0xff] }
 0x33d   :  { %2685 = vmatprep.subr.bf16.mxu1 %v3196_v35  ;;  %2771 = vmatprep.subr.bf16.mxu0 %v3198_v39  ;;  %v1175_v47 = vld [vmem:[#allocation9 + $0x2a0] sm:$0xff] }
 0x33e   :  { %v1211_v35 = vld [vmem:[#allocation9 + $0x3c0] sm:$0xff] }
 0x33f   :  { %v3252_v41 = vcombine.high %v1211_v35, %v1215_v36 }
 0x340   :  { %2686 = vmatpush1.bf16.msra.mxu1 %v3195_v37  ;;  %2772 = vmatpush1.bf16.msra.mxu0 %v3197_v38  ;;  %v1212_v37 = vld [vmem:[#allocation9 + $0x3c8] sm:$0xff] }
 0x341   :  { %2687 = vmatprep.subr.bf16.mxu1 %v3204_v4  ;;  %2773 = vmatprep.subr.bf16.mxu0 %v3206_v45  ;;  %v1216_v38 = vld [vmem:[#allocation9 + $0x3e8] sm:$0xff]  ;;  %v3251_v4 = vcombine.low %v1211_v35, %v1215_v36 }
 0x342   :  { %v3254_v42 = vcombine.high %v1212_v37, %v1216_v38  ;;  %v3253_v43 = vcombine.low %v1212_v37, %v1216_v38  ;;  %v3972_v45 = vld [vmem:[#allocation9 + $0x408] sm:$0xff] }
 0x344   :  { %2688 = vmatpush1.bf16.msra.mxu1 %v3203_v6  ;;  %2774 = vmatpush1.bf16.msra.mxu0 %v3205_v44  ;;  %v3968_v6 = vld [vmem:[#allocation9 + $0x400] sm:$0xff] }
 0x345   :  { %v3970_v44 = vld [vmem:[#allocation9 + $0x420] sm:$0xff] }
 0x3f2   :  { %v901_v52 = vpop.f32.mrb[0].mxu1  ;;  %v944_v53 = vpop.f32.mrb[4].mxu0 }
 0x3f3   :  { %v3927_v54 = vadd.f32 %v901_v52, %v530_v49  ;;  %v3929_v55 = vadd.f32 %v944_v53, %v538_v50  ;;  %v903_v56 = vpop.f32.mrb[1].mxu1  ;;  %v946_v58 = vpop.f32.mrb[5].mxu0 }
 0x3f4   :  { %v3932_v59 = vadd.f32 %v903_v56, %v534_v51  ;;  %v905_v60 = vpop.f32.mrb[2].mxu1  ;;  %v948_v61 = vpop.f32.mrb[6].mxu0  ;;  %v3948_v15 = vadd.f32 %v946_v58, %v542_v57  ;;  %v1179_v56 = vld [vmem:[#allocation9 + $0x2c0] sm:$0xff]  ;;  %v1180_v58 = vld [vmem:[#allocation9 + $0x2c8] sm:$0xff] }
 0x3f5   :  { %v965_v62 = vmul.f32 %v3927_v54, %v3927_v54  ;;  %v3936_v63 = vadd.f32 %v905_v60, %v530_v49  ;;  %v3938_v1 = vadd.f32 %v948_v61, %v538_v50  ;;  %v907_v3 = vpop.f32.mrb[3].mxu1  ;;  %v950_v5 = vpop.f32.mrb[7].mxu0  ;;  %v967_v14 = vmul.f32 %v3929_v55, %v3929_v55  ;;  %v1176_v50 = vld [vmem:[#allocation9 + $0x2a8] sm:$0xff] }
 0x3f6   :  { %v955_v8 = vadd.f32 %v3932_v59, %v3927_v54  ;;  %v966_v9 = vmul.f32 %v3932_v59, %v3932_v59  ;;  %v3944_v12 = vadd.f32 %v907_v3, %v534_v51  ;;  %v3959_v23 = vadd.f32 %v950_v5, %v542_v57  ;;  %v1183_v57 = vld [vmem:[#allocation9 + $0x2e0] sm:$0xff] }
 0x3f7   :  { %v969_v16 = vmul.f32 %v3936_v63, %v3936_v63  ;;  %v971_v22 = vmul.f32 %v3938_v1, %v3938_v1  ;;  %v968_v29 = vmul.f32 %v3948_v15, %v3948_v15  ;;  %v3212_v49 = vcombine.high %v1171_v46, %v1175_v47  ;;  %v1187_v3 = vld [vmem:[#allocation9 + $0x300] sm:$0xff] }
 0x3f8   :  { %v960_v17 = vadd.f32 %v3944_v12, %v3936_v63  ;;  %v970_v18 = vmul.f32 %v3944_v12, %v3944_v12  ;;  %v956_v20 = vadd.f32 %v955_v8, %v3929_v55  ;;  %v973_v21 = vadd.f32 %v966_v9, %v965_v62  ;;  %v1184_v62 = vld [vmem:[#allocation9 + $0x2e8] sm:$0xff]  ;;  %v1191_v5 = vld [vmem:[#allocation9 + $0x320] sm:$0xff] }
 0x3f9   :  { %v972_v0 = vmul.f32 %v3959_v23, %v3959_v23  ;;  %v3211_v51 = vcombine.low %v1171_v46, %v1175_v47  ;;  %v3213_v52 = vcombine.low %v1172_v48, %v1176_v50  ;;  %v3214_v53 = vcombine.high %v1172_v48, %v1176_v50  ;;  %2689 = vmatprep.subr.bf16.mxu1 %v3212_v49  ;;  %v3978_v48 = vld [vmem:[#allocation9 + $0x428] sm:$0xff] }
 0x3fa   :  { %v957_v24 = vadd.f32 %v956_v20, %v3948_v15  ;;  %v961_v25 = vadd.f32 %v960_v17, %v3938_v1  ;;  %v974_v26 = vadd.f32 %v973_v21, %v967_v14  ;;  %v978_v27 = vadd.f32 %v970_v18, %v969_v16  ;;  %v1188_v16 = vld [vmem:[#allocation9 + $0x308] sm:$0xff]  ;;  %v1195_v18 = vld [vmem:[#allocation9 + $0x340] sm:$0xff] }
 0x3fb   :  { %2775 = vmatprep.subr.bf16.mxu0 %v3214_v53  ;;  %2690 = vmatpush1.bf16.msra.mxu1 %v3211_v51  ;;  %v3219_v60 = vcombine.low %v1179_v56, %v1183_v57  ;;  %v3220_v61 = vcombine.high %v1179_v56, %v1183_v57  ;;  %v3221_v8 = vcombine.low %v1180_v58, %v1184_v62  ;;  %v1192_v17 = vld [vmem:[#allocation9 + $0x328] sm:$0xff]  ;;  %v1199_v21 = vld [vmem:[#allocation9 + $0x360] sm:$0xff] }
 0x3fc   :  { %958 = vadd.xlane.f32.xlu1 %v957_v24  ;;  %v962_v28 = vadd.f32 %v961_v25, %v3959_v23  ;;  %v979_v30 = vadd.f32 %v978_v27, %v971_v22  ;;  %v975_v31 = vadd.f32 %v974_v26, %v968_v29  ;;  %2776 = vmatpush1.bf16.msra.mxu0 %v3213_v52  ;;  %v1196_v22 = vld [vmem:[#allocation9 + $0x348] sm:$0xff]  ;;  %v1203_v29 = vld [vmem:[#allocation9 + $0x380] sm:$0xff] }
 0x3fd   :  { %v3222_v9 = vcombine.high %v1180_v58, %v1184_v62  ;;  %v3228_v14 = vcombine.high %v1187_v3, %v1191_v5  ;;  %2691 = vmatprep.subr.bf16.mxu1 %v3220_v61  ;;  %v3230_v20 = vcombine.high %v1188_v16, %v1192_v17  ;;  %v1200_v24 = vld [vmem:[#allocation9 + $0x368] sm:$0xff]  ;;  %v3227_v25 = vcombine.low %v1187_v3, %v1191_v5 }
 0x3fe   :  { %963 = vadd.xlane.f32.xlu0 %v962_v28  ;;  %v980_v32 = vadd.f32 %v979_v30, %v972_v0  ;;  %v3229_v26 = vcombine.low %v1188_v16, %v1192_v17  ;;  %v3236_v27 = vcombine.high %v1195_v18, %v1199_v21  ;;  %v3238_v28 = vcombine.high %v1196_v22, %v1200_v24  ;;  %v1207_v30 = vld [vmem:[#allocation9 + $0x3a0] sm:$0xff]  ;;  %v1208_v0 = vld [vmem:[#allocation9 + $0x3a8] sm:$0xff] }
 0x3ff   :  { %2777 = vmatprep.subr.bf16.mxu0 %v3222_v9  ;;  %2692 = vmatpush1.bf16.msra.mxu1 %v3219_v60  ;;  %v3237_v2 = vcombine.low %v1196_v22, %v1200_v24  ;;  %v3244_v33 = vcombine.high %v1203_v29, %v1207_v30  ;;  %v3243_v39 = vcombine.low %v1203_v29, %v1207_v30 }
 0x400   :  { %976 = vadd.xlane.f32.xlu1 %v975_v31  ;;  %2778 = vmatpush1.bf16.msra.mxu0 %v3221_v8  ;;  %v1204_v31 = vld [vmem:[#allocation9 + $0x388] sm:$0xff]  ;;  %v3259_v46 = vcombine.low %v3968_v6, %v3970_v44  ;;  %v3260_v47 = vcombine.high %v3968_v6, %v3970_v44  ;;  %v3261_v49 = vcombine.low %v3972_v45, %v3978_v48 }
 0x401   :  { %2693 = vmatprep.subr.bf16.mxu1 %v3228_v14  ;;  %2779 = vmatprep.subr.bf16.mxu0 %v3230_v20  ;;  %v3246_v34 = vcombine.high %v1204_v31, %v1208_v0  ;;  %v3245_v40 = vcombine.low %v1204_v31, %v1208_v0  ;;  %v3262_v50 = vcombine.high %v3972_v45, %v3978_v48  ;;  %v954_v20 = vld [vmem:[%s4071_s12] sm:$0xf]  ;;  %v1251_v48 = vld [vmem:[#allocation9 + $0x500] sm:$0xff] }
 0x402   :  { %981 = vadd.xlane.f32.xlu0 %v980_v32  ;;  %v3235_v32 = vcombine.low %v1195_v18, %v1199_v21  ;;  %v953_v18 = vld [vmem:[%s4070_s11] sm:$0xf]  ;;  %v1054_v37 = vrot.slane %v954_v20, %v3855_v13 }
 0x403   :  { %2694 = vmatpush1.bf16.msra.mxu1 %v3227_v25  ;;  %v1021_v21 = vrot.slane %v953_v18, %v3846_v10  ;;  %v1017_v22 = vrot.slane %v953_v18, %v3849_v11  ;;  %v1029_v24 = vrot.slane %v953_v18, %v3861_v19  ;;  %v1025_v25 = vrot.slane %v953_v18, %v3855_v13 }
 0x404   :  { %2780 = vmatpush1.bf16.msra.mxu0 %v3229_v26  ;;  %2695 = vmatprep.subr.bf16.mxu1 %v3236_v27 }
 0x405   :  { %2781 = vmatprep.subr.bf16.mxu0 %v3238_v28 }
 0x407   :  { %2696 = vmatpush1.bf16.msra.mxu1 %v3235_v32  ;;  %v1050_v32 = vrot.slane %v954_v20, %v3846_v10 }
 0x408   :  { %2782 = vmatpush1.bf16.msra.mxu0 %v3237_v2  ;;  %2697 = vmatprep.subr.bf16.mxu1 %v3244_v33  ;;  %v1046_v2 = vrot.slane %v954_v20, %v3849_v11 }
 0x409   :  { %2783 = vmatprep.subr.bf16.mxu0 %v3246_v34 }
 0x40b   :  { %2698 = vmatpush1.bf16.msra.mxu1 %v3243_v39 }
 0x40c   :  { %2784 = vmatpush1.bf16.msra.mxu0 %v3245_v40  ;;  %2699 = vmatprep.subr.bf16.mxu1 %v3252_v41 }
 0x40d   :  { %2785 = vmatprep.subr.bf16.mxu0 %v3254_v42 }
 0x40f   :  { %2700 = vmatpush1.bf16.msra.mxu1 %v3251_v4 }
 0x410   :  { %2786 = vmatpush1.bf16.msra.mxu0 %v3253_v43  ;;  %2712 = vmatprep.subr.bf16.mxu1 %v3260_v47 }
 0x411   :  { %2798 = vmatprep.subr.bf16.mxu0 %v3262_v50 }
 0x489   :  { %v959_v51 = vpop.xlane.xlu1 %958 }
 0x48a   :  { %v983_v52 = vmul.f32 0.001953125, %v959_v51 }
 0x48b   :  { %v964_v53 = vpop.xlane.xlu0 %963 }
 0x48c   :  { %v984_v56 = vmul.f32 0.001953125, %v964_v53  ;;  %v987_v58 = vmul.f32 %v983_v52, %v983_v52  ;;  %v993_v26 = vsub.f32 %v3927_v54, %v983_v52  ;;  %v994_v27 = vsub.f32 %v3932_v59, %v983_v52 }
 0x48d   :  { %v977_v57 = vpop.xlane.xlu1 %976  ;;  %v995_v28 = vsub.f32 %v3929_v55, %v983_v52  ;;  %v996_v29 = vsub.f32 %v3948_v15, %v983_v52  ;;  %v1058_v15 = vrot.slane %v954_v20, %v3861_v19 }
 0x48e   :  { %v985_v60 = vmul.f32 0.001953125, %v977_v57  ;;  %v988_v3 = vmul.f32 %v984_v56, %v984_v56  ;;  %v997_v31 = vsub.f32 %v3936_v63, %v984_v56  ;;  %v998_v0 = vsub.f32 %v3944_v12, %v984_v56 }
 0x48f   :  { %v982_v61 = vpop.xlane.xlu0 %981  ;;  %v999_v59 = vsub.f32 %v3938_v1, %v984_v56  ;;  %v1000_v55 = vsub.f32 %v3959_v23, %v984_v56 }
 0x490   :  { %v989_v62 = vsub.f32 %v985_v60, %v987_v58  ;;  %v986_v5 = vmul.f32 0.001953125, %v982_v61 }
 0x492   :  { %v991_v8 = vmax.f32 %v989_v62, 0.0  ;;  %v990_v9 = vsub.f32 %v986_v5, %v988_v3 }
 0x494   :  { %v1001_v14 = vadd.f32 1e-05, %v991_v8  ;;  %v992_v16 = vmax.f32 %v990_v9, 0.0  ;;  %v1227_v8 = vld [vmem:[#allocation9 + $0x440] sm:$0xff] }
 0x496   :  { %3570 = vrsqrt.f32 %v1001_v14  ;;  %v1002_v17 = vadd.f32 1e-05, %v992_v16  ;;  %v1231_v14 = vld [vmem:[#allocation9 + $0x460] sm:$0xff]  ;;  %v1228_v16 = vld [vmem:[#allocation9 + $0x448] sm:$0xff] }
 0x498   :  { %3572 = vrsqrt.f32 %v1002_v17  ;;  %v1232_v17 = vld [vmem:[#allocation9 + $0x468] sm:$0xff] }
 0x4a0   :  { %v3571_v30 = vpop.eup %3570 }
 0x4a1   :  { %v1006_v33 = vmul.f32 %v3571_v30, %v994_v27  ;;  %v1005_v34 = vmul.f32 %v3571_v30, %v993_v26  ;;  %v1008_v35 = vmul.f32 %v3571_v30, %v996_v29  ;;  %v1007_v36 = vmul.f32 %v3571_v30, %v995_v28  ;;  %v1239_v29 = vld [vmem:[#allocation9 + $0x4a0] sm:$0xff]  ;;  %v1236_v30 = vld [vmem:[#allocation9 + $0x488] sm:$0xff] }
 0x4a2   :  { %v3573_v54 = vpop.eup %3572  ;;  %v3268_v27 = vcombine.high %v1227_v8, %v1231_v14  ;;  %v3270_v28 = vcombine.high %v1228_v16, %v1232_v17 }
 0x4a3   :  { %v1010_v63 = vmul.f32 %v3573_v54, %v998_v0  ;;  %v1035_v38 = vmul.f32 %v1021_v21, %v1006_v33  ;;  %v1009_v12 = vmul.f32 %v3573_v54, %v997_v31  ;;  %v1034_v39 = vmul.f32 %v1017_v22, %v1005_v34  ;;  %v1240_v31 = vld [vmem:[#allocation9 + $0x4a8] sm:$0xff] }
 0x4a4   :  { %v1012_v40 = vmul.f32 %v3573_v54, %v1000_v55  ;;  %v1037_v41 = vmul.f32 %v1029_v24, %v1008_v35  ;;  %v1011_v42 = vmul.f32 %v3573_v54, %v999_v59  ;;  %v1036_v4 = vmul.f32 %v1025_v25, %v1007_v36  ;;  %v1243_v35 = vld [vmem:[#allocation9 + $0x4c0] sm:$0xff]  ;;  %v1244_v54 = vld [vmem:[#allocation9 + $0x4c8] sm:$0xff] }
 0x4a5   :  { %v1039_v43 = vmul.f32 %v1021_v21, %v1010_v63  ;;  %v1064_v47 = vadd.f32 %v1050_v32, %v1035_v38  ;;  %v1038_v50 = vmul.f32 %v1017_v22, %v1009_v12  ;;  %v1063_v51 = vadd.f32 %v1046_v2, %v1034_v39  ;;  %v1247_v36 = vld [vmem:[#allocation9 + $0x4e0] sm:$0xff]  ;;  %v1248_v59 = vld [vmem:[#allocation9 + $0x4e8] sm:$0xff] }
 0x4a6   :  { %v1041_v52 = vmul.f32 %v1029_v24, %v1012_v40  ;;  %v1040_v1 = vmul.f32 %v1025_v25, %v1011_v42  ;;  %v1065_v53 = vadd.f32 %v1054_v37, %v1036_v4  ;;  %v1066_v57 = vadd.f32 %v1058_v15, %v1037_v41  ;;  %v1235_v25 = vld [vmem:[#allocation9 + $0x480] sm:$0xff]  ;;  %v1252_v55 = vld [vmem:[#allocation9 + $0x508] sm:$0xff] }
 0x4a7   :  { %v1068_v23 = vadd.f32 %v1050_v32, %v1039_v43  ;;  %v1067_v56 = vadd.f32 %v1046_v2, %v1038_v50  ;;  %v1072_v61 = vmax.f32 %v1064_v47, 0.0  ;;  %v1071_v3 = vmax.f32 %v1063_v51, 0.0  ;;  %v1259_v39 = vld [vmem:[#allocation9 + $0x540] sm:$0xff]  ;;  %v1260_v41 = vld [vmem:[#allocation9 + $0x548] sm:$0xff] }
 0x4a8   :  { %v1070_v58 = vadd.f32 %v1058_v15, %v1041_v52  ;;  %v1069_v60 = vadd.f32 %v1054_v37, %v1040_v1  ;;  %v1073_v18 = vmax.f32 %v1065_v53, 0.0  ;;  %v1074_v24 = vmax.f32 %v1066_v57, 0.0  ;;  %v1256_v15 = vld [vmem:[#allocation9 + $0x528] sm:$0xff]  ;;  %v1263_v40 = vld [vmem:[#allocation9 + $0x560] sm:$0xff] }
 0x4a9   :  { %v1076_v62 = vmax.f32 %v1068_v23, 0.0  ;;  %v1075_v5 = vmax.f32 %v1067_v56, 0.0  ;;  %v3267_v32 = vcombine.low %v1227_v8, %v1231_v14  ;;  %v3269_v2 = vcombine.low %v1228_v16, %v1232_v17  ;;  %v1264_v42 = vld [vmem:[#allocation9 + $0x568] sm:$0xff]  ;;  %v1267_v51 = vld [vmem:[#allocation9 + $0x580] sm:$0xff] }
 0x4aa   :  { %v1078_v9 = vmax.f32 %v1070_v58, 0.0  ;;  %v1077_v20 = vmax.f32 %v1069_v60, 0.0  ;;  %v3276_v33 = vcombine.high %v1235_v25, %v1239_v29  ;;  %v3278_v34 = vcombine.high %v1236_v30, %v1240_v31  ;;  %v1271_v52 = vld [vmem:[#allocation9 + $0x5a0] sm:$0xff]  ;;  %v1268_v1 = vld [vmem:[#allocation9 + $0x588] sm:$0xff] }
 0x4ab   :  { %v4006_v21 = vpack.c.bf16 %v1076_v62, %v1072_v61  ;;  %v4008_v22 = vpack.c.bf16 %v1075_v5, %v1071_v3  ;;  %v3275_v6 = vcombine.low %v1235_v25, %v1239_v29  ;;  %v3277_v44 = vcombine.low %v1236_v30, %v1240_v31  ;;  %v1272_v53 = vld [vmem:[#allocation9 + $0x5a8] sm:$0xff]  ;;  %v1275_v60 = vld [vmem:[#allocation9 + $0x5c0] sm:$0xff] }
 0x4ac   :  { %v4010_v26 = vpack.c.bf16 %v1077_v20, %v1073_v18  ;;  %v4016_v0 = vpack.c.bf16 %v1078_v9, %v1074_v24  ;;  %v3284_v45 = vcombine.high %v1243_v35, %v1247_v36  ;;  %v3283_v37 = vcombine.low %v1243_v35, %v1247_v36  ;;  %v1279_v61 = vld [vmem:[#allocation9 + $0x5e0] sm:$0xff]  ;;  %v1276_v62 = vld [vmem:[#allocation9 + $0x5c8] sm:$0xff] }
 0x4ad   :  { %2701 = vmatprep.mubr.bf16.mxu1 %v4006_v21  ;;  %2787 = vmatprep.mubr.bf16.mxu0 %v4006_v21  ;;  %v3285_v63 = vcombine.low %v1244_v54, %v1248_v59  ;;  %v3294_v12 = vcombine.high %v1252_v55, %v1256_v15  ;;  %v3293_v43 = vcombine.low %v1252_v55, %v1256_v15  ;;  %v1280_v3 = vld [vmem:[#allocation9 + $0x5e8] sm:$0xff]  ;;  %v1283_v16 = vld [vmem:[#allocation9 + $0x600] sm:$0xff] }
 0x4ae   :  { %2702 = vmatmul.mubr.bf16.vlgmr.msra.gmra.mrb[4].mxu1 %v4008_v22  ;;  %2788 = vmatmul.mubr.bf16.vlgmr.msra.gmra.mrb[8].mxu0 %v4008_v22  ;;  %v3300_v47 = vcombine.high %v1259_v39, %v1263_v40  ;;  %v3302_v50 = vcombine.high %v1260_v41, %v1264_v42  ;;  %v3299_v23 = vcombine.low %v1259_v39, %v1263_v40  ;;  %v1287_v17 = vld [vmem:[#allocation9 + $0x620] sm:$0xff]  ;;  %v1284_v18 = vld [vmem:[#allocation9 + $0x608] sm:$0xff] }
 0x4af   :  { %2713 = vmatpush1.bf16.msra.mxu1 %v3259_v46  ;;  %2799 = vmatpush1.bf16.msra.mxu0 %v3261_v49  ;;  %v3286_v46 = vcombine.high %v1244_v54, %v1248_v59  ;;  %v1255_v49 = vld [vmem:[#allocation9 + $0x520] sm:$0xff]  ;;  %v3301_v56 = vcombine.low %v1260_v41, %v1264_v42  ;;  %v3308_v57 = vcombine.high %v1267_v51, %v1271_v52  ;;  %v1288_v20 = vld [vmem:[#allocation9 + $0x628] sm:$0xff] }
 0x4b0   :  { %2744 = vmatprep.mubr.bf16.mxu1 %v4016_v0  ;;  %2830 = vmatprep.mubr.bf16.mxu0 %v4016_v0  ;;  %v3292_v38 = vcombine.high %v1251_v48, %v1255_v49  ;;  %v3291_v4 = vcombine.low %v1251_v48, %v1255_v49  ;;  %v3310_v58 = vcombine.high %v1268_v1, %v1272_v53  ;;  %v1291_v29 = vld [vmem:[#allocation9 + $0x640] sm:$0xff]  ;;  %v1292_v31 = vld [vmem:[#allocation9 + $0x648] sm:$0xff] }
 0x4b1   :  { %2714 = vmatprep.subr.bf16.mxu1 %v3268_v27  ;;  %2800 = vmatprep.subr.bf16.mxu0 %v3270_v28  ;;  %v3307_v5 = vcombine.low %v1267_v51, %v1271_v52  ;;  %v3309_v8 = vcombine.low %v1268_v1, %v1272_v53  ;;  %v3316_v9 = vcombine.high %v1275_v60, %v1279_v61  ;;  %v1295_v30 = vld [vmem:[#allocation9 + $0x660] sm:$0xff]  ;;  %v1300_v59 = vld [vmem:[#allocation9 + $0x688] sm:$0xff] }
 0x4b2   :  { %v3318_v14 = vcombine.high %v1276_v62, %v1280_v3  ;;  %v3315_v24 = vcombine.low %v1275_v60, %v1279_v61  ;;  %v3317_v25 = vcombine.low %v1276_v62, %v1280_v3  ;;  %v3324_v27 = vcombine.high %v1283_v16, %v1287_v17  ;;  %v1299_v36 = vld [vmem:[#allocation9 + $0x680] sm:$0xff]  ;;  %v1308_v15 = vld [vmem:[#allocation9 + $0x6c8] sm:$0xff] }
 0x4b3   :  { %2715 = vmatpush1.bf16.msra.mxu1 %v3267_v32  ;;  %2801 = vmatpush1.bf16.msra.mxu0 %v3269_v2  ;;  %v3326_v28 = vcombine.high %v1284_v18, %v1288_v20  ;;  %v1296_v32 = vld [vmem:[#allocation9 + $0x668] sm:$0xff]  ;;  %v3323_v2 = vcombine.low %v1283_v16, %v1287_v17  ;;  %v1303_v54 = vld [vmem:[#allocation9 + $0x6a0] sm:$0xff] }
 0x4b4   :  { %2716 = vmatprep.subr.bf16.mxu1 %v3276_v33  ;;  %2802 = vmatprep.subr.bf16.mxu0 %v3278_v34  ;;  %v3325_v33 = vcombine.low %v1284_v18, %v1288_v20  ;;  %v3332_v34 = vcombine.high %v1291_v29, %v1295_v30  ;;  %v3334_v35 = vcombine.high %v1292_v31, %v1296_v32  ;;  %v1307_v49 = vld [vmem:[#allocation9 + $0x6c0] sm:$0xff]  ;;  %v1316_v42 = vld [vmem:[#allocation9 + $0x708] sm:$0xff] }
 0x4b5   :  { %v1311_v55 = vld [vmem:[#allocation9 + $0x6e0] sm:$0xff]  ;;  %v1324_v53 = vld [vmem:[#allocation9 + $0x748] sm:$0xff] }
 0x4b6   :  { %v1315_v40 = vld [vmem:[#allocation9 + $0x700] sm:$0xff]  ;;  %v1332_v3 = vld [vmem:[#allocation9 + $0x788] sm:$0xff] }
 0x4b7   :  { %2717 = vmatpush1.bf16.msra.mxu1 %v3275_v6  ;;  %2803 = vmatpush1.bf16.msra.mxu0 %v3277_v44  ;;  %v1304_v6 = vld [vmem:[#allocation9 + $0x6a8] sm:$0xff]  ;;  %v3331_v44 = vcombine.low %v1291_v29, %v1295_v30  ;;  %v1319_v41 = vld [vmem:[#allocation9 + $0x720] sm:$0xff]  ;;  %v1093_v30 = vld [vmem:[#allocation9 + $0x10] sm:$0xff] }
 0x4b8   :  { %2718 = vmatprep.subr.bf16.mxu1 %v3284_v45  ;;  %2804 = vmatprep.subr.bf16.mxu0 %v3286_v46  ;;  %v3333_v45 = vcombine.low %v1292_v31, %v1296_v32  ;;  %v3340_v46 = vcombine.high %v1299_v36, %v1303_v54  ;;  %v3342_v48 = vcombine.high %v1300_v59, %v1304_v6  ;;  %v1323_v52 = vld [vmem:[#allocation9 + $0x740] sm:$0xff]  ;;  %v1340_v20 = vld [vmem:[#allocation9 + $0x7c8] sm:$0xff]  ;;  %v1097_v31 = vld [vmem:[#allocation9 + $0x30] sm:$0xff] }
 0x4b9   :  { %v1327_v1 = vld [vmem:[#allocation9 + $0x760] sm:$0xff]  ;;  %v1094_v32 = vld [vmem:[#allocation9 + $0x18] sm:$0xff] }
 0x4ba   :  { %v1331_v61 = vld [vmem:[#allocation9 + $0x780] sm:$0xff] }
 0x4bb   :  { %2719 = vmatpush1.bf16.msra.mxu1 %v3283_v37  ;;  %2805 = vmatpush1.bf16.msra.mxu0 %v3285_v63  ;;  %v1312_v37 = vld [vmem:[#allocation9 + $0x6e8] sm:$0xff]  ;;  %v3339_v63 = vcombine.low %v1299_v36, %v1303_v54  ;;  %v1335_v62 = vld [vmem:[#allocation9 + $0x7a0] sm:$0xff]  ;;  %v1101_v54 = vld [vmem:[#allocation9 + $0x50] sm:$0xff] }
 0x4bc   :  { %2720 = vmatprep.subr.bf16.mxu1 %v3292_v38  ;;  %2806 = vmatprep.subr.bf16.mxu0 %v3294_v12  ;;  %v3341_v38 = vcombine.low %v1300_v59, %v1304_v6  ;;  %v3348_v12 = vcombine.high %v1307_v49, %v1311_v55  ;;  %v3350_v39 = vcombine.high %v1308_v15, %v1312_v37  ;;  %v1339_v17 = vld [vmem:[#allocation9 + $0x7c0] sm:$0xff]  ;;  %v1105_v59 = vld [vmem:[#allocation9 + $0x70] sm:$0xff]  ;;  %v1102_v6 = vld [vmem:[#allocation9 + $0x58] sm:$0xff] }
 0x4bd   :  { %v1343_v18 = vld [vmem:[#allocation9 + $0x7e0] sm:$0xff] }
 0x4bf   :  { %2721 = vmatpush1.bf16.msra.mxu1 %v3291_v4  ;;  %2807 = vmatpush1.bf16.msra.mxu0 %v3293_v43  ;;  %v1320_v4 = vld [vmem:[#allocation9 + $0x728] sm:$0xff]  ;;  %v3347_v43 = vcombine.low %v1307_v49, %v1311_v55  ;;  %v1109_v55 = vld [vmem:[#allocation9 + $0x90] sm:$0xff] }
 0x4c0   :  { %2722 = vmatprep.subr.bf16.mxu1 %v3300_v47  ;;  %2808 = vmatprep.subr.bf16.mxu0 %v3302_v50  ;;  %v3349_v47 = vcombine.low %v1308_v15, %v1312_v37  ;;  %v3356_v50 = vcombine.high %v1315_v40, %v1319_v41  ;;  %v3358_v51 = vcombine.high %v1316_v42, %v1320_v4  ;;  %v1113_v15 = vld [vmem:[#allocation9 + $0xb0] sm:$0xff]  ;;  %v1110_v37 = vld [vmem:[#allocation9 + $0x98] sm:$0xff] }
 0x4c3   :  { %2723 = vmatpush1.bf16.msra.mxu1 %v3299_v23  ;;  %2809 = vmatpush1.bf16.msra.mxu0 %v3301_v56  ;;  %v1328_v23 = vld [vmem:[#allocation9 + $0x768] sm:$0xff]  ;;  %v3355_v56 = vcombine.low %v1315_v40, %v1319_v41  ;;  %v1117_v41 = vld [vmem:[#allocation9 + $0xd0] sm:$0xff] }
 0x4c4   :  { %2724 = vmatprep.subr.bf16.mxu1 %v3308_v57  ;;  %2810 = vmatprep.subr.bf16.mxu0 %v3310_v58  ;;  %v3357_v57 = vcombine.low %v1316_v42, %v1320_v4  ;;  %v3364_v58 = vcombine.high %v1323_v52, %v1327_v1  ;;  %v3366_v60 = vcombine.high %v1324_v53, %v1328_v23  ;;  %v1121_v42 = vld [vmem:[#allocation9 + $0xf0] sm:$0xff]  ;;  %v1118_v4 = vld [vmem:[#allocation9 + $0xd8] sm:$0xff] }
 0x4c7   :  { %2725 = vmatpush1.bf16.msra.mxu1 %v3307_v5  ;;  %2811 = vmatpush1.bf16.msra.mxu0 %v3309_v8  ;;  %v1336_v5 = vld [vmem:[#allocation9 + $0x7a8] sm:$0xff]  ;;  %v3363_v8 = vcombine.low %v1323_v52, %v1327_v1  ;;  %v1125_v1 = vld [vmem:[#allocation9 + $0x110] sm:$0xff] }
 0x4c8   :  { %2726 = vmatprep.subr.bf16.mxu1 %v3316_v9  ;;  %2812 = vmatprep.subr.bf16.mxu0 %v3318_v14  ;;  %v3365_v9 = vcombine.low %v1324_v53, %v1328_v23  ;;  %v3372_v14 = vcombine.high %v1331_v61, %v1335_v62  ;;  %v3374_v16 = vcombine.high %v1332_v3, %v1336_v5  ;;  %v1129_v53 = vld [vmem:[#allocation9 + $0x130] sm:$0xff]  ;;  %v1130_v23 = vld [vmem:[#allocation9 + $0x138] sm:$0xff] }
 0x4cb   :  { %2727 = vmatpush1.bf16.msra.mxu1 %v3315_v24  ;;  %2813 = vmatpush1.bf16.msra.mxu0 %v3317_v25  ;;  %v1344_v24 = vld [vmem:[#allocation9 + $0x7e8] sm:$0xff]  ;;  %v3371_v25 = vcombine.low %v1331_v61, %v1335_v62  ;;  %v1133_v61 = vld [vmem:[#allocation9 + $0x150] sm:$0xff] }
 0x4cc   :  { %2728 = vmatprep.subr.bf16.mxu1 %v3324_v27  ;;  %2814 = vmatprep.subr.bf16.mxu0 %v3326_v28  ;;  %v3373_v27 = vcombine.low %v1332_v3, %v1336_v5  ;;  %v3380_v28 = vcombine.high %v1339_v17, %v1343_v18  ;;  %v3382_v29 = vcombine.high %v1340_v20, %v1344_v24  ;;  %v1137_v62 = vld [vmem:[#allocation9 + $0x170] sm:$0xff]  ;;  %v1134_v3 = vld [vmem:[#allocation9 + $0x158] sm:$0xff] }
 0x4cd   :  { %v1138_v5 = vld [vmem:[#allocation9 + $0x178] sm:$0xff] }
 0x4cf   :  { %2729 = vmatpush1.bf16.msra.mxu1 %v3323_v2  ;;  %2815 = vmatpush1.bf16.msra.mxu0 %v3325_v33  ;;  %v1098_v2 = vld [vmem:[#allocation9 + $0x38] sm:$0xff]  ;;  %v3379_v33 = vcombine.low %v1339_v17, %v1343_v18  ;;  %v1141_v17 = vld [vmem:[#allocation9 + $0x190] sm:$0xff] }
 0x4d0   :  { %2730 = vmatprep.subr.bf16.mxu1 %v3332_v34  ;;  %2816 = vmatprep.subr.bf16.mxu0 %v3334_v35  ;;  %v3381_v34 = vcombine.low %v1340_v20, %v1344_v24  ;;  %v3136_v35 = vcombine.high %v1093_v30, %v1097_v31  ;;  %v3138_v36 = vcombine.high %v1094_v32, %v1098_v2  ;;  %v1145_v18 = vld [vmem:[#allocation9 + $0x1b0] sm:$0xff]  ;;  %v1142_v20 = vld [vmem:[#allocation9 + $0x198] sm:$0xff] }
 0x4d1   :  { %v1146_v24 = vld [vmem:[#allocation9 + $0x1b8] sm:$0xff] }
 0x4d3   :  { %2731 = vmatpush1.bf16.msra.mxu1 %v3331_v44  ;;  %2817 = vmatpush1.bf16.msra.mxu0 %v3333_v45  ;;  %v1106_v44 = vld [vmem:[#allocation9 + $0x78] sm:$0xff]  ;;  %v3135_v45 = vcombine.low %v1093_v30, %v1097_v31  ;;  %v1149_v30 = vld [vmem:[#allocation9 + $0x1d0] sm:$0xff] }
 0x4d4   :  { %2732 = vmatprep.subr.bf16.mxu1 %v3340_v46  ;;  %2818 = vmatprep.subr.bf16.mxu0 %v3342_v48  ;;  %v3137_v46 = vcombine.low %v1094_v32, %v1098_v2  ;;  %v3144_v48 = vcombine.high %v1101_v54, %v1105_v59  ;;  %v3146_v49 = vcombine.high %v1102_v6, %v1106_v44  ;;  %v1153_v31 = vld [vmem:[#allocation9 + $0x1f0] sm:$0xff]  ;;  %v1150_v32 = vld [vmem:[#allocation9 + $0x1d8] sm:$0xff] }
 0x4d5   :  { %v1154_v2 = vld [vmem:[#allocation9 + $0x1f8] sm:$0xff] }
 0x4d7   :  { %2733 = vmatpush1.bf16.msra.mxu1 %v3339_v63  ;;  %2819 = vmatpush1.bf16.msra.mxu0 %v3341_v38  ;;  %v1114_v63 = vld [vmem:[#allocation9 + $0xb8] sm:$0xff]  ;;  %v3143_v38 = vcombine.low %v1101_v54, %v1105_v59  ;;  %v1157_v54 = vld [vmem:[#allocation9 + $0x210] sm:$0xff] }
 0x4d8   :  { %2734 = vmatprep.subr.bf16.mxu1 %v3348_v12  ;;  %2820 = vmatprep.subr.bf16.mxu0 %v3350_v39  ;;  %v3145_v12 = vcombine.low %v1102_v6, %v1106_v44  ;;  %v3152_v39 = vcombine.high %v1109_v55, %v1113_v15  ;;  %v3154_v40 = vcombine.high %v1110_v37, %v1114_v63  ;;  %v1161_v59 = vld [vmem:[#allocation9 + $0x230] sm:$0xff]  ;;  %v1158_v6 = vld [vmem:[#allocation9 + $0x218] sm:$0xff] }
 0x4d9   :  { %v1162_v44 = vld [vmem:[#allocation9 + $0x238] sm:$0xff] }
 0x4db   :  { %2735 = vmatpush1.bf16.msra.mxu1 %v3347_v43  ;;  %2821 = vmatpush1.bf16.msra.mxu0 %v3349_v47  ;;  %v1122_v43 = vld [vmem:[#allocation9 + $0xf8] sm:$0xff]  ;;  %v3151_v47 = vcombine.low %v1109_v55, %v1113_v15  ;;  %v1165_v55 = vld [vmem:[#allocation9 + $0x250] sm:$0xff] }
 0x4dc   :  { %2736 = vmatprep.subr.bf16.mxu1 %v3356_v50  ;;  %2822 = vmatprep.subr.bf16.mxu0 %v3358_v51  ;;  %v3153_v50 = vcombine.low %v1110_v37, %v1114_v63  ;;  %v3160_v51 = vcombine.high %v1117_v41, %v1121_v42  ;;  %v3162_v52 = vcombine.high %v1118_v4, %v1122_v43  ;;  %v1169_v15 = vld [vmem:[#allocation9 + $0x270] sm:$0xff]  ;;  %v1166_v37 = vld [vmem:[#allocation9 + $0x258] sm:$0xff] }
 0x4dd   :  { %v1170_v63 = vld [vmem:[#allocation9 + $0x278] sm:$0xff] }
 0x4df   :  { %2737 = vmatpush1.bf16.msra.mxu1 %v3355_v56  ;;  %2823 = vmatpush1.bf16.msra.mxu0 %v3357_v57  ;;  %v3159_v56 = vcombine.low %v1117_v41, %v1121_v42  ;;  %v3161_v57 = vcombine.low %v1118_v4, %v1122_v43  ;;  %v1173_v41 = vld [vmem:[#allocation9 + $0x290] sm:$0xff]  ;;  %v1174_v4 = vld [vmem:[#allocation9 + $0x298] sm:$0xff] }
 0x4e0   :  { %2738 = vmatprep.subr.bf16.mxu1 %v3364_v58  ;;  %2824 = vmatprep.subr.bf16.mxu0 %v3366_v60  ;;  %v3168_v58 = vcombine.high %v1125_v1, %v1129_v53  ;;  %v1177_v42 = vld [vmem:[#allocation9 + $0x2b0] sm:$0xff]  ;;  %v1178_v43 = vld [vmem:[#allocation9 + $0x2b8] sm:$0xff] }
 0x4e3   :  { %2739 = vmatpush1.bf16.msra.mxu1 %v3363_v8  ;;  %2825 = vmatpush1.bf16.msra.mxu0 %v3365_v9  ;;  %v3167_v8 = vcombine.low %v1125_v1, %v1129_v53  ;;  %v1181_v1 = vld [vmem:[#allocation9 + $0x2d0] sm:$0xff] }
 0x4e4   :  { %2740 = vmatprep.subr.bf16.mxu1 %v3372_v14  ;;  %2826 = vmatprep.subr.bf16.mxu0 %v3374_v16  ;;  %v3176_v14 = vcombine.high %v1133_v61, %v1137_v62  ;;  %v3178_v16 = vcombine.high %v1134_v3, %v1138_v5  ;;  %v1185_v53 = vld [vmem:[#allocation9 + $0x2f0] sm:$0xff] }
 0x4e7   :  { %2741 = vmatpush1.bf16.msra.mxu1 %v3371_v25  ;;  %2827 = vmatpush1.bf16.msra.mxu0 %v3373_v27  ;;  %v3175_v25 = vcombine.low %v1133_v61, %v1137_v62  ;;  %v3177_v27 = vcombine.low %v1134_v3, %v1138_v5  ;;  %v1189_v61 = vld [vmem:[#allocation9 + $0x310] sm:$0xff]  ;;  %v1190_v3 = vld [vmem:[#allocation9 + $0x318] sm:$0xff] }
 0x4e8   :  { %2742 = vmatprep.subr.bf16.mxu1 %v3380_v28  ;;  %2828 = vmatprep.subr.bf16.mxu0 %v3382_v29  ;;  %v3184_v28 = vcombine.high %v1141_v17, %v1145_v18  ;;  %v3186_v29 = vcombine.high %v1142_v20, %v1146_v24  ;;  %v1193_v62 = vld [vmem:[#allocation9 + $0x330] sm:$0xff]  ;;  %v1194_v5 = vld [vmem:[#allocation9 + $0x338] sm:$0xff] }
 0x4eb   :  { %2743 = vmatpush1.bf16.msra.mxu1 %v3379_v33  ;;  %2829 = vmatpush1.bf16.msra.mxu0 %v3381_v34  ;;  %v3183_v33 = vcombine.low %v1141_v17, %v1145_v18  ;;  %v3185_v34 = vcombine.low %v1142_v20, %v1146_v24  ;;  %v1197_v17 = vld [vmem:[#allocation9 + $0x350] sm:$0xff]  ;;  %v1198_v20 = vld [vmem:[#allocation9 + $0x358] sm:$0xff] }
 0x4ec   :  { %2841 = vmatprep.subr.bf16.mxu1 %v3136_v35  ;;  %2927 = vmatprep.subr.bf16.mxu0 %v3138_v36  ;;  %v3192_v35 = vcombine.high %v1149_v30, %v1153_v31  ;;  %v3194_v36 = vcombine.high %v1150_v32, %v1154_v2  ;;  %v1201_v18 = vld [vmem:[#allocation9 + $0x370] sm:$0xff]  ;;  %v1202_v24 = vld [vmem:[#allocation9 + $0x378] sm:$0xff] }
 0x4ee   :  { %2745 = vmatmul.mubr.bf16.vlgmr.msra.gmra.mrb[4].mxu1 %v4010_v26  ;;  %2831 = vmatmul.mubr.bf16.vlgmr.msra.gmra.mrb[8].mxu0 %v4010_v26 }
 0x4ef   :  { %2842 = vmatpush1.bf16.msra.mxu1 %v3135_v45  ;;  %2873 = vmatprep.mubr.bf16.mxu1 %v4006_v21  ;;  %v3191_v45 = vcombine.low %v1149_v30, %v1153_v31  ;;  %v1205_v30 = vld [vmem:[#allocation9 + $0x390] sm:$0xff] }
 0x4f0   :  { %2928 = vmatpush1.bf16.msra.mxu0 %v3137_v46  ;;  %2959 = vmatprep.mubr.bf16.mxu0 %v4006_v21  ;;  %v1126_v21 = vld [vmem:[#allocation9 + $0x118] sm:$0xff]  ;;  %v3193_v46 = vcombine.low %v1150_v32, %v1154_v2  ;;  %v1209_v31 = vld [vmem:[#allocation9 + $0x3b0] sm:$0xff] }
 0x4f1   :  { %2843 = vmatprep.subr.bf16.mxu1 %v3144_v48  ;;  %2929 = vmatprep.subr.bf16.mxu0 %v3146_v49  ;;  %v3170_v60 = vcombine.high %v1126_v21, %v1130_v23  ;;  %v3169_v9 = vcombine.low %v1126_v21, %v1130_v23  ;;  %v3200_v48 = vcombine.high %v1157_v54, %v1161_v59  ;;  %v1182_v21 = vld [vmem:[#allocation9 + $0x2d8] sm:$0xff] }
 0x4f2   :  { %v3202_v49 = vcombine.high %v1158_v6, %v1162_v44  ;;  %v1186_v23 = vld [vmem:[#allocation9 + $0x2f8] sm:$0xff] }
 0x4f3   :  { %2844 = vmatpush1.bf16.msra.mxu1 %v3143_v38  ;;  %v3199_v38 = vcombine.low %v1157_v54, %v1161_v59  ;;  %v1206_v32 = vld [vmem:[#allocation9 + $0x398] sm:$0xff]  ;;  %v1213_v54 = vld [vmem:[#allocation9 + $0x3d0] sm:$0xff] }
 0x4f4   :  { %2930 = vmatpush1.bf16.msra.mxu0 %v3145_v12  ;;  %2845 = vmatprep.subr.bf16.mxu1 %v3152_v39  ;;  %v3201_v12 = vcombine.low %v1158_v6, %v1162_v44  ;;  %v3208_v39 = vcombine.high %v1165_v55, %v1169_v15  ;;  %v1210_v2 = vld [vmem:[#allocation9 + $0x3b8] sm:$0xff]  ;;  %v1217_v59 = vld [vmem:[#allocation9 + $0x3f0] sm:$0xff] }
 0x4f5   :  { %2931 = vmatprep.subr.bf16.mxu0 %v3154_v40  ;;  %v3210_v40 = vcombine.high %v1166_v37, %v1170_v63  ;;  %v1214_v6 = vld [vmem:[#allocation9 + $0x3d8] sm:$0xff] }
 0x4f6   :  { %v1218_v44 = vld [vmem:[#allocation9 + $0x3f8] sm:$0xff] }
 0x4f7   :  { %2846 = vmatpush1.bf16.msra.mxu1 %v3151_v47  ;;  %v3207_v47 = vcombine.low %v1165_v55, %v1169_v15  ;;  %v1221_v55 = vld [vmem:[#allocation9 + $0x410] sm:$0xff] }
 0x4f8   :  { %2932 = vmatpush1.bf16.msra.mxu0 %v3153_v50  ;;  %2847 = vmatprep.subr.bf16.mxu1 %v3160_v51  ;;  %v3209_v50 = vcombine.low %v1166_v37, %v1170_v63  ;;  %v3216_v51 = vcombine.high %v1173_v41, %v1177_v42  ;;  %v1225_v15 = vld [vmem:[#allocation9 + $0x430] sm:$0xff]  ;;  %v1222_v37 = vld [vmem:[#allocation9 + $0x418] sm:$0xff] }
 0x4f9   :  { %2933 = vmatprep.subr.bf16.mxu0 %v3162_v52  ;;  %v3218_v52 = vcombine.high %v1174_v4, %v1178_v43  ;;  %v1226_v63 = vld [vmem:[#allocation9 + $0x438] sm:$0xff] }
 0x4fb   :  { %2848 = vmatpush1.bf16.msra.mxu1 %v3159_v56  ;;  %v3215_v56 = vcombine.low %v1173_v41, %v1177_v42  ;;  %v1229_v41 = vld [vmem:[#allocation9 + $0x450] sm:$0xff] }
 0x4fc   :  { %2934 = vmatpush1.bf16.msra.mxu0 %v3161_v57  ;;  %2849 = vmatprep.subr.bf16.mxu1 %v3168_v58  ;;  %v3217_v57 = vcombine.low %v1174_v4, %v1178_v43  ;;  %v3224_v58 = vcombine.high %v1181_v1, %v1185_v53  ;;  %v1233_v42 = vld [vmem:[#allocation9 + $0x470] sm:$0xff]  ;;  %v3263_v4 = vcombine.low %v1221_v55, %v1225_v15  ;;  %v1230_v43 = vld [vmem:[#allocation9 + $0x458] sm:$0xff] }
 0x4fd   :  { %2935 = vmatprep.subr.bf16.mxu0 %v3170_v60  ;;  %v3226_v60 = vcombine.high %v1182_v21, %v1186_v23 }
 0x4ff   :  { %2850 = vmatpush1.bf16.msra.mxu1 %v3167_v8  ;;  %v3223_v8 = vcombine.low %v1181_v1, %v1185_v53  ;;  %v1241_v1 = vld [vmem:[#allocation9 + $0x4b0] sm:$0xff] }
 0x500   :  { %2936 = vmatpush1.bf16.msra.mxu0 %v3169_v9  ;;  %2851 = vmatprep.subr.bf16.mxu1 %v3176_v14  ;;  %v3225_v9 = vcombine.low %v1182_v21, %v1186_v23  ;;  %v3232_v14 = vcombine.high %v1189_v61, %v1193_v62  ;;  %v1238_v21 = vld [vmem:[#allocation9 + $0x498] sm:$0xff] }
 0x501   :  { %2937 = vmatprep.subr.bf16.mxu0 %v3178_v16  ;;  %v3234_v16 = vcombine.high %v1190_v3, %v1194_v5  ;;  %v1242_v23 = vld [vmem:[#allocation9 + $0x4b8] sm:$0xff] }
 0x503   :  { %2852 = vmatpush1.bf16.msra.mxu1 %v3175_v25  ;;  %v3231_v25 = vcombine.low %v1189_v61, %v1193_v62  ;;  %v1245_v61 = vld [vmem:[#allocation9 + $0x4d0] sm:$0xff] }
 0x504   :  { %2938 = vmatpush1.bf16.msra.mxu0 %v3177_v27  ;;  %2853 = vmatprep.subr.bf16.mxu1 %v3184_v28  ;;  %v3233_v27 = vcombine.low %v1190_v3, %v1194_v5  ;;  %v3240_v28 = vcombine.high %v1197_v17, %v1201_v18  ;;  %v1249_v62 = vld [vmem:[#allocation9 + $0x4f0] sm:$0xff]  ;;  %v1246_v3 = vld [vmem:[#allocation9 + $0x4d8] sm:$0xff] }
 0x505   :  { %2939 = vmatprep.subr.bf16.mxu0 %v3186_v29  ;;  %v3242_v29 = vcombine.high %v1198_v20, %v1202_v24  ;;  %v1250_v5 = vld [vmem:[#allocation9 + $0x4f8] sm:$0xff] }
 0x507   :  { %2854 = vmatpush1.bf16.msra.mxu1 %v3183_v33  ;;  %v3239_v33 = vcombine.low %v1197_v17, %v1201_v18  ;;  %v1257_v17 = vld [vmem:[#allocation9 + $0x530] sm:$0xff]  ;;  %v1254_v18 = vld [vmem:[#allocation9 + $0x518] sm:$0xff] }
 0x508   :  { %2940 = vmatpush1.bf16.msra.mxu0 %v3185_v34  ;;  %2855 = vmatprep.subr.bf16.mxu1 %v3192_v35  ;;  %v3241_v34 = vcombine.low %v1198_v20, %v1202_v24  ;;  %v3248_v35 = vcombine.high %v1205_v30, %v1209_v31  ;;  %v1258_v20 = vld [vmem:[#allocation9 + $0x538] sm:$0xff]  ;;  %v3289_v24 = vcombine.low %v1246_v3, %v1250_v5 }
 0x509   :  { %2941 = vmatprep.subr.bf16.mxu0 %v3194_v36  ;;  %v3250_v36 = vcombine.high %v1206_v32, %v1210_v2 }
 0x50b   :  { %2856 = vmatpush1.bf16.msra.mxu1 %v3191_v45  ;;  %v3247_v45 = vcombine.low %v1205_v30, %v1209_v31  ;;  %v1262_v30 = vld [vmem:[#allocation9 + $0x558] sm:$0xff] }
 0x50c   :  { %2942 = vmatpush1.bf16.msra.mxu0 %v3193_v46  ;;  %2857 = vmatprep.subr.bf16.mxu1 %v3200_v48  ;;  %v3249_v46 = vcombine.low %v1206_v32, %v1210_v2  ;;  %v3256_v48 = vcombine.high %v1213_v54, %v1217_v59  ;;  %v1266_v31 = vld [vmem:[#allocation9 + $0x578] sm:$0xff]  ;;  %v3297_v2 = vcombine.low %v1254_v18, %v1258_v20 }
 0x50d   :  { %2943 = vmatprep.subr.bf16.mxu0 %v3202_v49  ;;  %v3258_v49 = vcombine.high %v1214_v6, %v1218_v44 }
 0x50f   :  { %2858 = vmatpush1.bf16.msra.mxu1 %v3199_v38  ;;  %v3255_v38 = vcombine.low %v1213_v54, %v1217_v59  ;;  %v1270_v54 = vld [vmem:[#allocation9 + $0x598] sm:$0xff] }
 0x510   :  { %2944 = vmatpush1.bf16.msra.mxu0 %v3201_v12  ;;  %2859 = vmatprep.subr.bf16.mxu1 %v3208_v39  ;;  %v3257_v12 = vcombine.low %v1214_v6, %v1218_v44  ;;  %v3264_v39 = vcombine.high %v1221_v55, %v1225_v15  ;;  %v1274_v59 = vld [vmem:[#allocation9 + $0x5b8] sm:$0xff]  ;;  %v3305_v44 = vcombine.low %v1262_v30, %v1266_v31 }
 0x511   :  { %2945 = vmatprep.subr.bf16.mxu0 %v3210_v40  ;;  %v3266_v40 = vcombine.high %v1222_v37, %v1226_v63  ;;  %v1278_v55 = vld [vmem:[#allocation9 + $0x5d8] sm:$0xff] }
 0x512   :  { %v1282_v15 = vld [vmem:[#allocation9 + $0x5f8] sm:$0xff] }
 0x513   :  { %2860 = vmatpush1.bf16.msra.mxu1 %v3207_v47  ;;  %v1234_v47 = vld [vmem:[#allocation9 + $0x478] sm:$0xff] }
 0x514   :  { %2946 = vmatpush1.bf16.msra.mxu0 %v3209_v50  ;;  %2861 = vmatprep.subr.bf16.mxu1 %v3216_v51  ;;  %v3265_v50 = vcombine.low %v1222_v37, %v1226_v63  ;;  %v3272_v51 = vcombine.high %v1229_v41, %v1233_v42  ;;  %v3274_v53 = vcombine.high %v1230_v43, %v1234_v47 }
 0x515   :  { %2947 = vmatprep.subr.bf16.mxu0 %v3218_v52  ;;  %v1237_v52 = vld [vmem:[#allocation9 + $0x490] sm:$0xff]  ;;  %v3313_v63 = vcombine.low %v1270_v54, %v1274_v59 }
 0x517   :  { %2862 = vmatpush1.bf16.msra.mxu1 %v3215_v56  ;;  %v3271_v56 = vcombine.low %v1229_v41, %v1233_v42  ;;  %v1286_v41 = vld [vmem:[#allocation9 + $0x618] sm:$0xff] }
 0x518   :  { %2948 = vmatpush1.bf16.msra.mxu0 %v3217_v57  ;;  %2863 = vmatprep.subr.bf16.mxu1 %v3224_v58  ;;  %v3273_v57 = vcombine.low %v1230_v43, %v1234_v47  ;;  %v3280_v58 = vcombine.high %v1237_v52, %v1241_v1  ;;  %v1290_v42 = vld [vmem:[#allocation9 + $0x638] sm:$0xff]  ;;  %v3321_v43 = vcombine.low %v1278_v55, %v1282_v15 }
 0x519   :  { %2949 = vmatprep.subr.bf16.mxu0 %v3226_v60  ;;  %v3282_v60 = vcombine.high %v1238_v21, %v1242_v23 }
 0x51b   :  { %2864 = vmatpush1.bf16.msra.mxu1 %v3223_v8  ;;  %v3279_v8 = vcombine.low %v1237_v52, %v1241_v1  ;;  %v1297_v52 = vld [vmem:[#allocation9 + $0x670] sm:$0xff]  ;;  %v1294_v1 = vld [vmem:[#allocation9 + $0x658] sm:$0xff] }
 0x51c   :  { %2950 = vmatpush1.bf16.msra.mxu0 %v3225_v9  ;;  %2865 = vmatprep.subr.bf16.mxu1 %v3232_v14  ;;  %v3288_v9 = vcombine.high %v1245_v61, %v1249_v62  ;;  %v3290_v14 = vcombine.high %v1246_v3, %v1250_v5 }
 0x51d   :  { %2951 = vmatprep.subr.bf16.mxu0 %v3234_v16  ;;  %v1253_v16 = vld [vmem:[#allocation9 + $0x510] sm:$0xff] }
 0x51e   :  { %v3295_v32 = vcombine.low %v1253_v16, %v1257_v17 }
 0x51f   :  { %2866 = vmatpush1.bf16.msra.mxu1 %v3231_v25  ;;  %v3296_v25 = vcombine.high %v1253_v16, %v1257_v17  ;;  %v1310_v16 = vld [vmem:[#allocation9 + $0x6d8] sm:$0xff] }
 0x520   :  { %2952 = vmatpush1.bf16.msra.mxu0 %v3233_v27  ;;  %2867 = vmatprep.subr.bf16.mxu1 %v3240_v28  ;;  %v3298_v27 = vcombine.high %v1254_v18, %v1258_v20  ;;  %v1261_v28 = vld [vmem:[#allocation9 + $0x550] sm:$0xff]  ;;  %v1314_v17 = vld [vmem:[#allocation9 + $0x6f8] sm:$0xff] }
 0x521   :  { %2953 = vmatprep.subr.bf16.mxu0 %v3242_v29  ;;  %v1265_v29 = vld [vmem:[#allocation9 + $0x570] sm:$0xff] }
 0x522   :  { %v3303_v6 = vcombine.low %v1261_v28, %v1265_v29 }
 0x523   :  { %2868 = vmatpush1.bf16.msra.mxu1 %v3239_v33  ;;  %v3304_v33 = vcombine.high %v1261_v28, %v1265_v29  ;;  %v1318_v28 = vld [vmem:[#allocation9 + $0x718] sm:$0xff] }
 0x524   :  { %2954 = vmatpush1.bf16.msra.mxu0 %v3241_v34  ;;  %2869 = vmatprep.subr.bf16.mxu1 %v3248_v35  ;;  %v3306_v34 = vcombine.high %v1262_v30, %v1266_v31  ;;  %v1269_v35 = vld [vmem:[#allocation9 + $0x590] sm:$0xff]  ;;  %v1322_v29 = vld [vmem:[#allocation9 + $0x738] sm:$0xff]  ;;  %v3353_v31 = vcombine.low %v1310_v16, %v1314_v17 }
 0x525   :  { %2955 = vmatprep.subr.bf16.mxu0 %v3250_v36  ;;  %v1273_v36 = vld [vmem:[#allocation9 + $0x5b0] sm:$0xff] }
 0x526   :  { %v3311_v37 = vcombine.low %v1269_v35, %v1273_v36 }
 0x527   :  { %2870 = vmatpush1.bf16.msra.mxu1 %v3247_v45  ;;  %v3312_v45 = vcombine.high %v1269_v35, %v1273_v36  ;;  %v1326_v35 = vld [vmem:[#allocation9 + $0x758] sm:$0xff] }
 0x528   :  { %2956 = vmatpush1.bf16.msra.mxu0 %v3249_v46  ;;  %2871 = vmatprep.subr.bf16.mxu1 %v3256_v48  ;;  %v3314_v46 = vcombine.high %v1270_v54, %v1274_v59  ;;  %v1277_v48 = vld [vmem:[#allocation9 + $0x5d0] sm:$0xff]  ;;  %v1330_v36 = vld [vmem:[#allocation9 + $0x778] sm:$0xff]  ;;  %v3361_v59 = vcombine.low %v1318_v28, %v1322_v29 }
 0x529   :  { %2957 = vmatprep.subr.bf16.mxu0 %v3258_v49  ;;  %v1281_v49 = vld [vmem:[#allocation9 + $0x5f0] sm:$0xff] }
 0x52b   :  { %2872 = vmatpush1.bf16.msra.mxu1 %v3255_v38  ;;  %v3320_v38 = vcombine.high %v1277_v48, %v1281_v49 }
 0x52c   :  { %2958 = vmatpush1.bf16.msra.mxu0 %v3257_v12  ;;  %2884 = vmatprep.subr.bf16.mxu1 %v3264_v39  ;;  %v3322_v12 = vcombine.high %v1278_v55, %v1282_v15  ;;  %v1285_v39 = vld [vmem:[#allocation9 + $0x610] sm:$0xff]  ;;  %v3369_v15 = vcombine.low %v1326_v35, %v1330_v36 }
 0x52d   :  { %2970 = vmatprep.subr.bf16.mxu0 %v3266_v40  ;;  %v1289_v40 = vld [vmem:[#allocation9 + $0x630] sm:$0xff] }
 0x52e   :  { %2874 = vmatmul.mubr.bf16.vlgmr.msra.gmra.mrb[8].mxu1 %v4008_v22  ;;  %v3328_v47 = vcombine.high %v1285_v39, %v1289_v40 }
 0x52f   :  { %2960 = vmatmul.mubr.bf16.vlgmr.msra.gmra.mrb[12].mxu0 %v4008_v22  ;;  %2885 = vmatpush1.bf16.msra.mxu1 %v3263_v4  ;;  %v3281_v22 = vcombine.low %v1238_v21, %v1242_v23  ;;  %v3319_v4 = vcombine.low %v1277_v48, %v1281_v49  ;;  %v3327_v21 = vcombine.low %v1285_v39, %v1289_v40  ;;  %v1334_v48 = vld [vmem:[#allocation9 + $0x798] sm:$0xff] }
 0x530   :  { %2916 = vmatprep.mubr.bf16.mxu1 %v4016_v0  ;;  %2971 = vmatpush1.bf16.msra.mxu0 %v3265_v50  ;;  %v3330_v50 = vcombine.high %v1286_v41, %v1290_v42  ;;  %v3329_v23 = vcombine.low %v1286_v41, %v1290_v42  ;;  %v1338_v49 = vld [vmem:[#allocation9 + $0x7b8] sm:$0xff] }
 0x531   :  { %3002 = vmatprep.mubr.bf16.mxu0 %v4016_v0  ;;  %2886 = vmatprep.subr.bf16.mxu1 %v3272_v51  ;;  %v3287_v0 = vcombine.low %v1245_v61, %v1249_v62  ;;  %v1293_v51 = vld [vmem:[#allocation9 + $0x650] sm:$0xff]  ;;  %v1302_v61 = vld [vmem:[#allocation9 + $0x698] sm:$0xff]  ;;  %v3377_v42 = vcombine.low %v1334_v48, %v1338_v49 }
 0x532   :  { %2972 = vmatprep.subr.bf16.mxu0 %v3274_v53  ;;  %v1298_v53 = vld [vmem:[#allocation9 + $0x678] sm:$0xff]  ;;  %v3335_v3 = vcombine.low %v1293_v51, %v1297_v52 }
 0x533   :  { %2887 = vmatpush1.bf16.msra.mxu1 %v3271_v56  ;;  %v3336_v56 = vcombine.high %v1293_v51, %v1297_v52  ;;  %v1306_v62 = vld [vmem:[#allocation9 + $0x6b8] sm:$0xff]  ;;  %v3337_v5 = vcombine.low %v1294_v1, %v1298_v53 }
 0x534   :  { %2973 = vmatpush1.bf16.msra.mxu0 %v3273_v57  ;;  %2888 = vmatprep.subr.bf16.mxu1 %v3280_v58  ;;  %v3338_v57 = vcombine.high %v1294_v1, %v1298_v53  ;;  %v1301_v58 = vld [vmem:[#allocation9 + $0x690] sm:$0xff]  ;;  %v3345_v20 = vcombine.low %v1302_v61, %v1306_v62  ;;  %v1342_v39 = vld [vmem:[#allocation9 + $0x7d8] sm:$0xff] }
 0x535   :  { %2974 = vmatprep.subr.bf16.mxu0 %v3282_v60  ;;  %v1305_v60 = vld [vmem:[#allocation9 + $0x6b0] sm:$0xff]  ;;  %v1346_v40 = vld [vmem:[#allocation9 + $0x7f8] sm:$0xff] }
 0x536   :  { %v3343_v18 = vcombine.low %v1301_v58, %v1305_v60  ;;  %v1347_v51 = vld [vmem:[%s4073_s14] sm:$0xff]  ;;  %s3706_s14 = smov [#allocation11]  }
 0x537   :  { %2889 = vmatpush1.bf16.msra.mxu1 %v3279_v8  ;;  %v3344_v8 = vcombine.high %v1301_v58, %v1305_v60  ;;  %v1352_v52 = vrot.slane %v1347_v51, %v3849_v11  ;;  %v1360_v1 = vrot.slane %v1347_v51, %v3855_v13  ;;  %v1356_v53 = vrot.slane %v1347_v51, %v3846_v10  ;;  %s3034_s17 = sshll.u32 %s3706_s14, 4  ;;  %s3035_s17 = int_to_ptr.vmem [resolvable:$true] %s3034_s17 }
 0x538   :  { %2975 = vmatpush1.bf16.msra.mxu0 %v3281_v22  ;;  %2890 = vmatprep.subr.bf16.mxu1 %v3288_v9  ;;  %v3346_v22 = vcombine.high %v1302_v61, %v1306_v62  ;;  %v1309_v9 = vld [vmem:[#allocation9 + $0x6d0] sm:$0xff]  ;;  %s3662_s20 = scalar_lea.vmem %s3035_s17, 2048  ;;  %p3667_p5 = scmp.lt.s32.totalorder %s3035_s17, %s3035_s17 }
 0x539   :  { %2976 = vmatprep.subr.bf16.mxu0 %v3290_v14  ;;  %v1313_v14 = vld [vmem:[#allocation9 + $0x6f0] sm:$0xff]  ;;  %p3663_p4 = scmp.ne.s32.totalorder %s3035_s17, %s3662_s20  ;;  %p3668_p6 = scmp.lt.s32.totalorder %s3662_s20, %s3662_s20 }
 0x53a   :  { %v3351_v30 = vcombine.low %v1309_v9, %v1313_v14 }
 0x53b   :  { %2891 = vmatpush1.bf16.msra.mxu1 %v3287_v0  ;;  %v3352_v0 = vcombine.high %v1309_v9, %v1313_v14  ;;  %v1367_v9 = vsub.s32 4, %v3843_v7  ;;  %v1375_v14 = vsub.s32 6, %v3843_v7  ;;  %p3669_p7 = por %p3668_p6, %p3667_p5 }
 0x53c   :  { %2977 = vmatpush1.bf16.msra.mxu0 %v3289_v24  ;;  %2892 = vmatprep.subr.bf16.mxu1 %v3296_v25  ;;  %v3354_v24 = vcombine.high %v1310_v16, %v1314_v17  ;;  %v1317_v25 = vld [vmem:[#allocation9 + $0x710] sm:$0xff]  ;;  %v1371_v16 = vsub.s32 5, %v3843_v7  ;;  %v1379_v17 = vsub.s32 7, %v3843_v7 }
 0x53d   :  { %2978 = vmatprep.subr.bf16.mxu0 %v3298_v27  ;;  %v1321_v27 = vld [vmem:[#allocation9 + $0x730] sm:$0xff]  ;;  %p3670_p8 = pnand %p3669_p7, %p3663_p4 }
 0x53e   :  { %v3359_v54 = vcombine.low %v1317_v25, %v1321_v27 }
 0x53f   :  { %2893 = vmatpush1.bf16.msra.mxu1 %v3295_v32  ;;  %v3360_v32 = vcombine.high %v1317_v25, %v1321_v27 }
 0x540   :  { %2979 = vmatpush1.bf16.msra.mxu0 %v3297_v2  ;;  %2894 = vmatprep.subr.bf16.mxu1 %v3304_v33  ;;  %v3362_v2 = vcombine.high %v1318_v28, %v1322_v29  ;;  %v1325_v33 = vld [vmem:[#allocation9 + $0x750] sm:$0xff] }
 0x541   :  { %2980 = vmatprep.subr.bf16.mxu0 %v3306_v34  ;;  %v1329_v34 = vld [vmem:[#allocation9 + $0x770] sm:$0xff] }
 0x542   :  { %v3367_v55 = vcombine.low %v1325_v33, %v1329_v34 }
 0x543   :  { %2895 = vmatpush1.bf16.msra.mxu1 %v3303_v6  ;;  %v3368_v6 = vcombine.high %v1325_v33, %v1329_v34 }
 0x544   :  { %2981 = vmatpush1.bf16.msra.mxu0 %v3305_v44  ;;  %2896 = vmatprep.subr.bf16.mxu1 %v3312_v45  ;;  %v3370_v44 = vcombine.high %v1326_v35, %v1330_v36  ;;  %v1333_v45 = vld [vmem:[#allocation9 + $0x790] sm:$0xff] }
 0x545   :  { %2982 = vmatprep.subr.bf16.mxu0 %v3314_v46  ;;  %v1337_v46 = vld [vmem:[#allocation9 + $0x7b0] sm:$0xff] }
 0x546   :  { %v3375_v41 = vcombine.low %v1333_v45, %v1337_v46 }
 0x547   :  { %2897 = vmatpush1.bf16.msra.mxu1 %v3311_v37  ;;  %v3376_v37 = vcombine.high %v1333_v45, %v1337_v46 }
 0x548   :  { %2983 = vmatpush1.bf16.msra.mxu0 %v3313_v63  ;;  %2898 = vmatprep.subr.bf16.mxu1 %v3320_v38  ;;  %v3378_v63 = vcombine.high %v1334_v48, %v1338_v49  ;;  %v1341_v38 = vld [vmem:[#allocation9 + $0x7d0] sm:$0xff] }
 0x549   :  { %2984 = vmatprep.subr.bf16.mxu0 %v3322_v12  ;;  %v1345_v12 = vld [vmem:[#allocation9 + $0x7f0] sm:$0xff] }
 0x54b   :  { %2899 = vmatpush1.bf16.msra.mxu1 %v3319_v4  ;;  %v3384_v4 = vcombine.high %v1341_v38, %v1345_v12 }
 0x54c   :  { %2985 = vmatpush1.bf16.msra.mxu0 %v3321_v43  ;;  %2900 = vmatprep.subr.bf16.mxu1 %v3328_v47  ;;  %v3386_v43 = vcombine.high %v1342_v39, %v1346_v40  ;;  %v3383_v47 = vcombine.low %v1341_v38, %v1345_v12 }
 0x54d   :  { %2986 = vmatprep.subr.bf16.mxu0 %v3330_v50  ;;  %v3385_v50 = vcombine.low %v1342_v39, %v1346_v40 }
 0x54f   :  { %2901 = vmatpush1.bf16.msra.mxu1 %v3327_v21  ;;  %v1364_v21 = vrot.slane %v1347_v51, %v3861_v19 }
 0x550   :  { %2987 = vmatpush1.bf16.msra.mxu0 %v3329_v23  ;;  %2902 = vmatprep.subr.bf16.mxu1 %v3336_v56 }
 0x551   :  { %2988 = vmatprep.subr.bf16.mxu0 %v3338_v57 }
 0x553   :  { %2903 = vmatpush1.bf16.msra.mxu1 %v3335_v3 }
 0x554   :  { %2989 = vmatpush1.bf16.msra.mxu0 %v3337_v5  ;;  %2904 = vmatprep.subr.bf16.mxu1 %v3344_v8 }
 0x555   :  { %2990 = vmatprep.subr.bf16.mxu0 %v3346_v22 }
 0x557   :  { %2905 = vmatpush1.bf16.msra.mxu1 %v3343_v18  ;;  %v1368_v18 = vrot.slane %v1347_v51, %v1367_v9 }
 0x558   :  { %2991 = vmatpush1.bf16.msra.mxu0 %v3345_v20  ;;  %2906 = vmatprep.subr.bf16.mxu1 %v3352_v0  ;;  %v1376_v20 = vrot.slane %v1347_v51, %v1375_v14  ;;  %v1372_v0 = vrot.slane %v1347_v51, %v1371_v16 }
 0x559   :  { %2992 = vmatprep.subr.bf16.mxu0 %v3354_v24  ;;  %v1380_v24 = vrot.slane %v1347_v51, %v1379_v17 }
 0x55b   :  { %2907 = vmatpush1.bf16.msra.mxu1 %v3351_v30 }
 0x55c   :  { %2993 = vmatpush1.bf16.msra.mxu0 %v3353_v31  ;;  %2908 = vmatprep.subr.bf16.mxu1 %v3360_v32 }
 0x55d   :  { %2994 = vmatprep.subr.bf16.mxu0 %v3362_v2 }
 0x55f   :  { %2909 = vmatpush1.bf16.msra.mxu1 %v3359_v54 }
 0x560   :  { %2995 = vmatpush1.bf16.msra.mxu0 %v3361_v59  ;;  %2910 = vmatprep.subr.bf16.mxu1 %v3368_v6 }
 0x561   :  { %2996 = vmatprep.subr.bf16.mxu0 %v3370_v44 }
 0x563   :  { %2911 = vmatpush1.bf16.msra.mxu1 %v3367_v55 }
 0x564   :  { %2997 = vmatpush1.bf16.msra.mxu0 %v3369_v15  ;;  %2912 = vmatprep.subr.bf16.mxu1 %v3376_v37 }
 0x565   :  { %2998 = vmatprep.subr.bf16.mxu0 %v3378_v63 }
 0x567   :  { %2913 = vmatpush1.bf16.msra.mxu1 %v3375_v41 }
 0x568   :  { %2999 = vmatpush1.bf16.msra.mxu0 %v3377_v42  ;;  %2914 = vmatprep.subr.bf16.mxu1 %v3384_v4 }
 0x569   :  { %3000 = vmatprep.subr.bf16.mxu0 %v3386_v43 }
 0x56b   :  { %2915 = vmatpush1.bf16.msra.mxu1 %v3383_v47 }
 0x56c   :  { %3001 = vmatpush1.bf16.msra.mxu0 %v3385_v50 }
 0x56e   :  { %2917 = vmatmul.mubr.bf16.vlgmr.msra.gmra.mrb[8].mxu1 %v4010_v26 }
 0x56f   :  { %3003 = vmatmul.mubr.bf16.vlgmr.msra.gmra.mrb[12].mxu0 %v4010_v26 }
 0x5c1   :  { %v2746_v23 = vpop.f32.mrb[4].mxu1  ;;  %v2832_v56 = vpop.f32.mrb[8].mxu0 }
 0x5c2   :  { %v3387_v57 = vadd.f32 %v2746_v23, %v1352_v52  ;;  %v3391_v58 = vadd.f32 %v2832_v56, %v1360_v1  ;;  %v2748_v60 = vpop.f32.mrb[5].mxu1  ;;  %v2834_v61 = vpop.f32.mrb[9].mxu0 }
 0x5c3   :  { %v3388_v62 = vadd.f32 %v2748_v60, %v1356_v53  ;;  %v3392_v26 = vadd.f32 %v2834_v61, %v1364_v21  ;;  %v2750_v3 = vpop.f32.mrb[6].mxu1  ;;  %v2836_v5 = vpop.f32.mrb[10].mxu0 }
 0x5c4   :  { %3013 = vst [vmem:[#allocation11] sm:$0xff] %v3387_v57  ;;  %3015 = vst [vmem:[#allocation11 + $0x10] sm:$0xff] %v3391_v58  ;;  %v3389_v8 = vadd.f32 %v2750_v3, %v1352_v52  ;;  %v3393_v11 = vadd.f32 %v2836_v5, %v1360_v1  ;;  %v2752_v22 = vpop.f32.mrb[7].mxu1  ;;  %v2838_v13 = vpop.f32.mrb[11].mxu0 }
 0x5c5   :  { %3014 = vst [vmem:[#allocation11 + $0x8] sm:$0xff] %v3388_v62  ;;  %3016 = vst [vmem:[#allocation11 + $0x18] sm:$0xff] %v3392_v26  ;;  %v3390_v10 = vadd.f32 %v2752_v22, %v1356_v53  ;;  %v3394_v19 = vadd.f32 %v2838_v13, %v1364_v21 }
 0x5c6   :  { %3021 = vst [vmem:[#allocation11 + $0x40] sm:$0xff] %v3389_v8  ;;  %3023 = vst [vmem:[#allocation11 + $0x50] sm:$0xff] %v3393_v11 }
 0x5c7   :  { %3022 = vst [vmem:[#allocation11 + $0x48] sm:$0xff] %v3390_v10  ;;  %3024 = vst [vmem:[#allocation11 + $0x58] sm:$0xff] %v3394_v19 }
 0x641   :  { %v2918_v25 = vpop.f32.mrb[8].mxu1 }
 0x642   :  { %v3395_v27 = vadd.f32 %v2918_v25, %v1368_v18  ;;  %v3004_v28 = vpop.f32.mrb[12].mxu0  ;;  %v2920_v29 = vpop.f32.mrb[9].mxu1 }
 0x643   :  { %v3399_v30 = vadd.f32 %v3004_v28, %v1376_v20  ;;  %v3396_v31 = vadd.f32 %v2920_v29, %v1372_v0  ;;  %v3006_v32 = vpop.f32.mrb[13].mxu0  ;;  %v2922_v2 = vpop.f32.mrb[10].mxu1 }
 0x644   :  { %3017 = vst [vmem:[#allocation11 + $0x20] sm:$0xff] %v3395_v27  ;;  %v3400_v33 = vadd.f32 %v3006_v32, %v1380_v24  ;;  %v3397_v34 = vadd.f32 %v2922_v2, %v1368_v18  ;;  %v3008_v35 = vpop.f32.mrb[14].mxu0  ;;  %v2924_v36 = vpop.f32.mrb[11].mxu1 }
 0x645   :  { %3019 = vst [vmem:[#allocation11 + $0x30] sm:$0xff] %v3399_v30  ;;  %3018 = vst [vmem:[#allocation11 + $0x28] sm:$0xff] %v3396_v31  ;;  %v3401_v7 = vadd.f32 %v3008_v35, %v1376_v20  ;;  %v3398_v54 = vadd.f32 %v2924_v36, %v1372_v0  ;;  %v3010_v59 = vpop.f32.mrb[15].mxu0 }
 0x646   :  { %3020 = vst [vmem:[#allocation11 + $0x38] sm:$0xff] %v3400_v33  ;;  %3025 = vst [vmem:[#allocation11 + $0x60] sm:$0xff] %v3397_v34  ;;  %v3402_v6 = vadd.f32 %v3010_v59, %v1380_v24 }
 0x647   :  { %3027 = vst [vmem:[#allocation11 + $0x70] sm:$0xff] %v3401_v7  ;;  %3026 = vst [vmem:[#allocation11 + $0x68] sm:$0xff] %v3398_v54 }
 0x648   :  { %3028 = vst [vmem:[#allocation11 + $0x78] sm:$0xff] %v3402_v6 }
 0x649   :  { %3673 = shalt.err (!%p3670_p8)
}
 0x64a   :  { %s4077_s22 = sld [smem:[#allocation16_spill]] }
 0x650   :  { %s3674_s23 = scalar_lea.hbm %s4077_s22, 2048 }
 0x651   :  { %p3675_p9 = scmp.ne.s32.totalorder %s4077_s22, %s3674_s23  ;;  %p3678_p10 = scmp.lt.u32.totalorder %s3674_s23, %s4077_s22 }
 0x653   :  { %p3680_p11 = pnand %p3678_p10, %p3675_p9 }
 0x655   :  { %3683 = shalt.err (!%p3680_p11)
}
 0x656   :  { %s3707_s0 = smov 1024   ;;  %s3708_s13 = smov 64  }
 0x657   :  { %3040 = dma.vmem_to_hbm [thread:$0]  %s3035_s17, 2048, %s4077_s22, [#allocation5], %s3707_s0, %s3707_s0, %s3708_s13  }
 0x658   :  { %3690 = dma.done.wait [#allocation5], 2048  }
 0x659   :  { %3691 = vsyncadd [#allocation5], 4294965248 }
 0x65a   :  { %3044 = vsyncpa [#allocation4], 1 }
 0x65b   :  { %3045 = vsyncpa [#allocation7], 1 }
 0x65c   :  { %3046 = vsyncpa [#allocation10], 1 }
 0x65d   :  { %3047 = vsyncpa [#allocation5], 1 }

// kernel: tpu_custom_call.1
= control target key start
LH: loop header
LB: loop body
LE: loop exit
PB: predicated region body
PF: predicated region fallthrough
CT: control target
= control target key end

     0   :  { %s4059_s0 = inlined_call_operand.vmem [shape: f32[16,4], index: 0, kind: input, shape index: {}]   ;;  %s4060_s1 = inlined_call_operand.vmem [shape: f32[4,128], index: 1, kind: input, shape index: {}]   ;;  %s4061_s2 = inlined_call_operand.vmem [shape: f32[1,128], index: 2, kind: input, shape index: {}]   ;;  %s4062_s3 = inlined_call_operand.hbm [shape: f32[1,128], index: 3, kind: input, shape index: {}]   ;;  %s4063_s4 = inlined_call_operand.vmem [shape: f32[1,128], index: 4, kind: input, shape index: {}]   ;;  %s4064_s5 = inlined_call_operand.hbm [shape: bf16[128,256], index: 5, kind: input, shape index: {}]   ;;  %s4065_s6 = inlined_call_operand.vmem [shape: f32[1,256], index: 6, kind: input, shape index: {}]   ;;  %s4066_s7 = inlined_call_operand.vmem [shape: f32[1,256], index: 7, kind: input, shape index: {}]   ;;  %s4067_s8 = inlined_call_operand.vmem [shape: f32[1,256], index: 8, kind: input, shape index: {}]   ;;  %s4068_s9 = inlined_call_operand.hbm [shape: bf16[256,512], index: 9, kind: input, shape index: {}]   ;;  %s4069_s10 = inlined_call_operand.vmem [shape: f32[1,512], index: 10, kind: input, shape index: {}]   ;;  %s4070_s11 = inlined_call_operand.vmem [shape: f32[1,512], index: 11, kind: input, shape index: {}]   ;;  %s4071_s12 = inlined_call_operand.vmem [shape: f32[1,512], index: 12, kind: input, shape index: {}]   ;;  %s4072_s13 = inlined_call_operand.hbm [shape: bf16[512,1024], index: 13, kind: input, shape index: {}]   ;;  %s4073_s14 = inlined_call_operand.vmem [shape: f32[1,1024], index: 14, kind: input, shape index: {}]   ;;  %s4074_s15 = inlined_call_operand.hbm [shape: f32[16,1024], index: 15, kind: output, shape index: {}]  }
   0x1   :  { %4076 = sst [smem:[#allocation16_spill]] %s4074_s15 }
   0x2   :  { %20 = vsyncpa [#allocation4], 0 }
   0x3   :  { %21 = vsyncpa [#allocation7], 0 }
   0x4   :  { %22 = vsyncpa [#allocation10], 0 }
   0x5   :  { %23 = vsyncpa [#allocation5], 0  ;;  %s3692_s18 = smov [#allocation6]   ;;  %s3574_s22 = scalar_lea.hbm %s4064_s5, 2048 }
   0x6   :  { %s47_s19 = sshll.u32 %s3692_s18, 4  ;;  %p3575_p0 = scmp.ne.s32.totalorder %s4064_s5, %s3574_s22  ;;  %s48_s19 = int_to_ptr.vmem [resolvable:$true] %s47_s19 }
   0x7   :  { %p3578_p1 = scmp.lt.u32.totalorder %s3574_s22, %s4064_s5 }
   0x9   :  { %p3580_p2 = pnand %p3578_p1, %p3575_p0 }
   0xb   :  { %3583 = shalt.err (!%p3580_p2)
}
   0xc   :  { %s3584_s27 = scalar_lea.vmem %s48_s19, 2048  ;;  %p3589_p4 = scmp.lt.s32.totalorder %s48_s19, %s48_s19 }
   0xd   :  { %p3585_p3 = scmp.ne.s32.totalorder %s48_s19, %s3584_s27  ;;  %p3590_p5 = scmp.lt.s32.totalorder %s3584_s27, %s3584_s27 }
   0xf   :  { %p3591_p6 = por %p3590_p5, %p3589_p4 }
  0x11   :  { %p3592_p7 = pnand %p3591_p6, %p3585_p3 }
  0x13   :  { %3595 = shalt.err (!%p3592_p7)
}
  0x14   :  { %s3693_s28 = smov 128   ;;  %s3694_s29 = smov 8  }
  0x15   :  { %53 = dma.hbm_to_vmem [thread:$0]  %s4064_s5, 2048, %s48_s19, [#allocation7], %s3693_s28, %s3693_s28, %s3694_s29  }
  0x16   :  { %s3695_s17 = smov [#allocation3]   ;;  %s3696_s20 = smov [#allocation8]  }
  0x17   :  { %s36_s18 = sshll.u32 %s3695_s17, 4  ;;  %s65_s21 = sshll.u32 %s3696_s20, 4  ;;  %s37_s18 = int_to_ptr.vmem [resolvable:$true] %s36_s18  ;;  %s66_s21 = int_to_ptr.vmem [resolvable:$true] %s65_s21 }
  0x18   :  { %s3596_s24 = scalar_lea.hbm %s4062_s3, 16 }
  0x19   :  { %p3597_p8 = scmp.ne.s32.totalorder %s4062_s3, %s3596_s24  ;;  %p3600_p9 = scmp.lt.u32.totalorder %s3596_s24, %s4062_s3 }
  0x1b   :  { %p3602_p10 = pnand %p3600_p9, %p3597_p8 }
  0x1d   :  { %3605 = shalt.err (!%p3602_p10)
}
  0x1e   :  { %s3606_s5 = scalar_lea.vmem %s37_s18, 16  ;;  %s3610_s19 = scalar_lea.vmem %s37_s18, 32 }
  0x1f   :  { %p3607_p11 = scmp.ne.s32.totalorder %s37_s18, %s3606_s5  ;;  %p3611_p12 = scmp.lt.s32.totalorder %s37_s18, %s37_s18 }
  0x20   :  { %p3612_p13 = scmp.lt.s32.totalorder %s3610_s19, %s3606_s5 }
  0x22   :  { %p3613_p0 = por %p3612_p13, %p3611_p12 }
  0x24   :  { %p3614_p1 = pnand %p3613_p0, %p3607_p11 }
  0x26   :  { %3617 = shalt.err (!%p3614_p1)
}
  0x27   :  { %39 = dma.hbm_to_vmem [thread:$0]  %s4062_s3, 16, %s37_s18, [#allocation4]  }
  0x28   :  { %s3618_s15 = scalar_lea.hbm %s4068_s9, 8192 }
  0x29   :  { %p3619_p2 = scmp.ne.s32.totalorder %s4068_s9, %s3618_s15  ;;  %p3622_p3 = scmp.lt.u32.totalorder %s3618_s15, %s4068_s9 }
  0x2b   :  { %p3624_p4 = pnand %p3622_p3, %p3619_p2 }
  0x2d   :  { %3627 = shalt.err (!%p3624_p4)
}
  0x2e   :  { %s3628_s24 = scalar_lea.vmem %s66_s21, 8192  ;;  %p3633_p6 = scmp.lt.s32.totalorder %s66_s21, %s66_s21 }
  0x2f   :  { %p3629_p5 = scmp.ne.s32.totalorder %s66_s21, %s3628_s24  ;;  %p3634_p7 = scmp.lt.s32.totalorder %s3628_s24, %s3628_s24 }
  0x31   :  { %p3635_p8 = por %p3634_p7, %p3633_p6 }
  0x33   :  { %p3636_p9 = pnand %p3635_p8, %p3629_p5 }
  0x35   :  { %3639 = shalt.err (!%p3636_p9)
}
  0x36   :  { %s3697_s3 = smov 256   ;;  %s3698_s18 = smov 16  }
  0x37   :  { %71 = dma.hbm_to_vmem [thread:$0]  %s4068_s9, 8192, %s66_s21, [#allocation7], %s3697_s3, %s3697_s3, %s3698_s18  }
  0x38   :  { %s3699_s27 = smov [#allocation9]   ;;  %s3640_s29 = scalar_lea.hbm %s4072_s13, 32768 }
  0x39   :  { %s83_s5 = sshll.u32 %s3699_s27, 4  ;;  %p3641_p10 = scmp.ne.s32.totalorder %s4072_s13, %s3640_s29  ;;  %s84_s5 = int_to_ptr.vmem [resolvable:$true] %s83_s5 }
  0x3a   :  { %p3644_p11 = scmp.lt.u32.totalorder %s3640_s29, %s4072_s13 }
  0x3c   :  { %p3646_p12 = pnand %p3644_p11, %p3641_p10 }
  0x3e   :  { %3649 = shalt.err (!%p3646_p12)
}
  0x3f   :  { %s3650_s20 = scalar_lea.vmem %s84_s5, 32768  ;;  %p3655_p0 = scmp.lt.s32.totalorder %s84_s5, %s84_s5 }
  0x40   :  { %p3651_p13 = scmp.ne.s32.totalorder %s84_s5, %s3650_s20  ;;  %p3656_p1 = scmp.lt.s32.totalorder %s3650_s20, %s3650_s20 }
  0x42   :  { %p3657_p2 = por %p3656_p1, %p3655_p0 }
  0x44   :  { %p3658_p3 = pnand %p3657_p2, %p3651_p13 }
  0x46   :  { %3661 = shalt.err (!%p3658_p3)
}
  0x47   :  { %s3700_s9 = smov 512   ;;  %s3701_s21 = smov 32  }
  0x48   :  { %89 = dma.hbm_to_vmem [thread:$0]  %s4072_s13, 32768, %s84_s5, [#allocation10], %s3700_s9, %s3700_s9, %s3701_s21  }
  0x49   :  { %3684 = dma.done.wait [#allocation4], 16  }
  0x4a   :  { %3685 = vsyncadd [#allocation4], 4294967280 }
  0x4b   :  { %3686 = dma.done.wait [#allocation7], 10240  }
  0x4c   :  { %3687 = vsyncadd [#allocation7], 4294957056 }
  0x4d   :  { %3688 = dma.done.wait [#allocation10], 32768  }
  0x4e   :  { %3689 = vsyncadd [#allocation10], 4294934528  ;;  %v3702_v0 = vmov 1   ;;  %v3703_v1 = vmov 0   ;;  %v109_v2 = vld [vmem:[%s4059_s0] sm:$0xff]  ;;  %v110_v3 = vld [vmem:[%s4059_s0 + $0x8] sm:$0xff]  ;;  %v122_v6 = vlaneseq }
  0x4f   :  { %3437 = vset.pattern.permute.xlu1 %v3702_v0  ;;  %3436 = vset.pattern.permute.xlu0 %v3703_v1  ;;  %v3704_v4 = vmov 2   ;;  %v3705_v5 = vmov 3   ;;  %v111_v12 = vld [vmem:[%s4060_s1] sm:$0xf]  ;;  %v3442_v44 = vld [vmem:[#allocation6 + $0x4] ss:$8 sps:$4 sm:$0xff]  }
  0x50   :  { %374 = vmatprep.mubr.bf16.mxu0 %v3703_v1  ;;  %129 = vperm.xlu1 %3437, %v109_v2   ;;  %v3843_v7 = vshrl.u32 %v122_v6, 7  ;;  %v3048_v37 = vld [vmem:[%s4061_s2] ss:$0 sm:$0xff]  ;;  %v3444_v45 = vld [vmem:[#allocation6] ss:$8 sps:$4 sm:$0xff]  }
  0x51   :  { %114 = vperm.xlu0 %3436, %v109_v2   ;;  %342 = vmatprep.subr.bf16.mxu0 %v3442_v44  ;;  %v3445_v46 = vld [vmem:[#allocation6 + $0x14] ss:$8 sps:$4 sm:$0xff]   ;;  %v3447_v47 = vld [vmem:[#allocation6 + $0x10] ss:$8 sps:$4 sm:$0xff]   ;;  %v3448_v48 = vld [vmem:[#allocation6 + $0x24] ss:$8 sps:$4 sm:$0xff]  }
  0x52   :  { %v3846_v10 = vsub.s32 1, %v3843_v7  ;;  %v3849_v11 = vsub.s32 0, %v3843_v7  ;;  %v3855_v13 = vsub.s32 2, %v3843_v7  ;;  %v3861_v19 = vsub.s32 3, %v3843_v7  ;;  %343 = vmatpush1.bf16.msra.mxu0 %v3444_v45  ;;  %v3450_v49 = vld [vmem:[#allocation6 + $0x20] ss:$8 sps:$4 sm:$0xff]  }
  0x53   :  { %344 = vmatprep.subr.bf16.mxu0 %v3445_v46  ;;  %v3451_v50 = vld [vmem:[#allocation6 + $0x34] ss:$8 sps:$4 sm:$0xff]   ;;  %v3453_v51 = vld [vmem:[#allocation6 + $0x30] ss:$8 sps:$4 sm:$0xff]   ;;  %v3454_v52 = vld [vmem:[#allocation6 + $0x44] ss:$8 sps:$4 sm:$0xff]  }
  0x54   :  { %133 = vperm.xlu1 %3437, %v110_v3   ;;  %v139_v16 = vrot.slane %v111_v12, %v3846_v10  ;;  %v125_v17 = vrot.slane %v111_v12, %v3849_v11  ;;  %v155_v18 = vrot.slane %v111_v12, %v3855_v13  ;;  %v171_v28 = vrot.slane %v111_v12, %v3861_v19  ;;  %v3456_v53 = vld [vmem:[#allocation6 + $0x40] ss:$8 sps:$4 sm:$0xff]   ;;  %v3457_v54 = vld [vmem:[#allocation6 + $0x54] ss:$8 sps:$4 sm:$0xff]   ;;  %v3459_v55 = vld [vmem:[#allocation6 + $0x50] ss:$8 sps:$4 sm:$0xff]  }
  0x55   :  { %119 = vperm.xlu0 %3436, %v110_v3   ;;  %v3460_v56 = vld [vmem:[#allocation6 + $0x64] ss:$8 sps:$4 sm:$0xff]   ;;  %v3462_v57 = vld [vmem:[#allocation6 + $0x60] ss:$8 sps:$4 sm:$0xff]   ;;  %v3463_v58 = vld [vmem:[#allocation6 + $0x74] ss:$8 sps:$4 sm:$0xff]  }
  0x56   :  { %345 = vmatpush1.bf16.msra.mxu0 %v3447_v47  ;;  %v3465_v59 = vld [vmem:[#allocation6 + $0x70] ss:$8 sps:$4 sm:$0xff]   ;;  %v3484_v44 = vld [vmem:[#allocation8 + $0x64] ss:$16 sps:$4 sm:$0xff]   ;;  %v3488_v45 = vld [vmem:[#allocation8 + $0x6c] ss:$16 sps:$4 sm:$0xff]  }
  0x57   :  { %346 = vmatprep.subr.bf16.mxu0 %v3448_v48  ;;  %v3486_v46 = vld [vmem:[#allocation8 + $0x68] ss:$16 sps:$4 sm:$0xff]   ;;  %v3489_v47 = vld [vmem:[#allocation8 + $0x60] ss:$16 sps:$4 sm:$0xff]   ;;  %v3490_v48 = vld [vmem:[#allocation8 + $0x84] ss:$16 sps:$4 sm:$0xff]  }
  0x58   :  { %3439 = vset.pattern.permute.xlu1 %v3704_v4 }
  0x59   :  { %3438 = vset.pattern.permute.xlu0 %v3704_v4  ;;  %149 = vperm.xlu1 %3439, %v110_v3  }
  0x5a   :  { %145 = vperm.xlu0 %3438, %v109_v2   ;;  %347 = vmatpush1.bf16.msra.mxu0 %v3450_v49  ;;  %v3494_v49 = vld [vmem:[#allocation8 + $0x8c] ss:$16 sps:$4 sm:$0xff]  }
  0x5b   :  { %348 = vmatprep.subr.bf16.mxu0 %v3451_v50  ;;  %v3492_v50 = vld [vmem:[#allocation8 + $0x88] ss:$16 sps:$4 sm:$0xff]  }
  0x5d   :  { %3440 = vset.pattern.permute.xlu1 %v3705_v5 }
  0x5e   :  { %3441 = vset.pattern.permute.xlu0 %v3705_v5  ;;  %161 = vperm.xlu1 %3440, %v109_v2  }
  0x5f   :  { %165 = vperm.xlu0 %3441, %v110_v3   ;;  %349 = vmatpush1.bf16.msra.mxu0 %v3453_v51  ;;  %v3495_v51 = vld [vmem:[#allocation8 + $0x80] ss:$16 sps:$4 sm:$0xff]  }
  0x60   :  { %350 = vmatprep.subr.bf16.mxu0 %v3454_v52  ;;  %v3496_v52 = vld [vmem:[#allocation8 + $0xa4] ss:$16 sps:$4 sm:$0xff]  }
  0x63   :  { %351 = vmatpush1.bf16.msra.mxu0 %v3456_v53  ;;  %v3500_v53 = vld [vmem:[#allocation8 + $0xac] ss:$16 sps:$4 sm:$0xff]  }
  0x64   :  { %352 = vmatprep.subr.bf16.mxu0 %v3457_v54  ;;  %v3498_v54 = vld [vmem:[#allocation8 + $0xa8] ss:$16 sps:$4 sm:$0xff]  }
  0x67   :  { %353 = vmatpush1.bf16.msra.mxu0 %v3459_v55  ;;  %v3501_v55 = vld [vmem:[#allocation8 + $0xa0] ss:$16 sps:$4 sm:$0xff]  }
  0x68   :  { %354 = vmatprep.subr.bf16.mxu0 %v3460_v56  ;;  %v3502_v56 = vld [vmem:[#allocation8 + $0xc4] ss:$16 sps:$4 sm:$0xff]  }
  0x6b   :  { %355 = vmatpush1.bf16.msra.mxu0 %v3462_v57  ;;  %v3506_v57 = vld [vmem:[#allocation8 + $0xcc] ss:$16 sps:$4 sm:$0xff]  }
  0x6c   :  { %356 = vmatprep.subr.bf16.mxu0 %v3463_v58  ;;  %v3504_v58 = vld [vmem:[#allocation8 + $0xc8] ss:$16 sps:$4 sm:$0xff]  }
  0x6f   :  { %357 = vmatpush1.bf16.msra.mxu0 %v3465_v59  ;;  %v3507_v59 = vld [vmem:[#allocation8 + $0xc0] ss:$16 sps:$4 sm:$0xff]  }
  0xcf   :  { %v130_v8 = vpop.permute.xlu1 %129 }
  0xd0   :  { %v115_v9 = vpop.permute.xlu0 %114  ;;  %v140_v20 = vmul.f32 %v139_v16, %v130_v8 }
  0xd1   :  { %v126_v21 = vmul.f32 %v125_v17, %v115_v9 }
  0xd3   :  { %v134_v14 = vpop.permute.xlu1 %133  ;;  %v142_v29 = vadd.f32 %v140_v20, %v126_v21  ;;  %v3049_v20 = vld [vmem:[#allocation3] ss:$0 sm:$0xff] }
  0xd4   :  { %v120_v15 = vpop.permute.xlu0 %119  ;;  %v141_v22 = vmul.f32 %v139_v16, %v134_v14 }
  0xd5   :  { %v127_v23 = vmul.f32 %v125_v17, %v120_v15 }
  0xd7   :  { %v143_v30 = vadd.f32 %v141_v22, %v127_v23  ;;  %v3050_v23 = vld [vmem:[%s4063_s4] ss:$0 sm:$0xff] }
  0xd8   :  { %v150_v24 = vpop.permute.xlu1 %149 }
  0xd9   :  { %v146_v25 = vpop.permute.xlu0 %145  ;;  %v157_v26 = vmul.f32 %v155_v18, %v150_v24 }
  0xda   :  { %v156_v27 = vmul.f32 %v155_v18, %v146_v25 }
  0xdb   :  { %v159_v33 = vadd.f32 %v157_v26, %v143_v30 }
  0xdc   :  { %v158_v34 = vadd.f32 %v156_v27, %v142_v29 }
  0xdd   :  { %v162_v31 = vpop.permute.xlu1 %161 }
  0xde   :  { %v166_v32 = vpop.permute.xlu0 %165  ;;  %v172_v35 = vmul.f32 %v171_v28, %v162_v31 }
  0xdf   :  { %v173_v36 = vmul.f32 %v171_v28, %v166_v32  ;;  %v3466_v32 = vld [vmem:[#allocation8 + $0x4] ss:$16 sps:$4 sm:$0xff]  }
  0xe0   :  { %v174_v38 = vadd.f32 %v172_v35, %v158_v34  ;;  %v3470_v34 = vld [vmem:[#allocation8 + $0xc] ss:$16 sps:$4 sm:$0xff]   ;;  %v3471_v35 = vld [vmem:[#allocation8] ss:$16 sps:$4 sm:$0xff]   ;;  %867 = vmatprep.subr.bf16.mxu1 %v3466_v32  ;;  %v3526_v32 = vld [vmem:[#allocation8 + $0x144] ss:$16 sps:$4 sm:$0xff]  }
  0xe1   :  { %v175_v39 = vadd.f32 %v173_v36, %v159_v33  ;;  %v3468_v33 = vld [vmem:[#allocation8 + $0x8] ss:$16 sps:$4 sm:$0xff]   ;;  %v3472_v36 = vld [vmem:[#allocation8 + $0x24] ss:$16 sps:$4 sm:$0xff]   ;;  %910 = vmatprep.subr.bf16.mxu0 %v3470_v34  ;;  %868 = vmatpush1.bf16.msra.mxu1 %v3471_v35  ;;  %v3531_v35 = vld [vmem:[#allocation8 + $0x140] ss:$16 sps:$4 sm:$0xff]  }
  0xe2   :  { %v3867_v40 = vadd.f32 %v3048_v37, %v174_v38  ;;  %v3474_v38 = vld [vmem:[#allocation8 + $0x28] ss:$16 sps:$4 sm:$0xff]   ;;  %869 = vmatprep.subr.bf16.mxu1 %v3472_v36  ;;  %v3532_v36 = vld [vmem:[#allocation8 + $0x164] ss:$16 sps:$4 sm:$0xff]  }
  0xe3   :  { %v3869_v41 = vadd.f32 %v3048_v37, %v175_v39  ;;  %v3476_v37 = vld [vmem:[#allocation8 + $0x2c] ss:$16 sps:$4 sm:$0xff]   ;;  %v3477_v39 = vld [vmem:[#allocation8 + $0x20] ss:$16 sps:$4 sm:$0xff]   ;;  %v3528_v34 = vld [vmem:[#allocation8 + $0x148] ss:$16 sps:$4 sm:$0xff]  }
  0xe4   :  { %187 = vadd.xlane.f32.xlu1 %v3867_v40  ;;  %v191_v42 = vmul.f32 %v3867_v40, %v3867_v40 }
  0xe5   :  { %189 = vadd.xlane.f32.xlu0 %v3869_v41  ;;  %v192_v43 = vmul.f32 %v3869_v41, %v3869_v41  ;;  %870 = vmatpush1.bf16.msra.mxu1 %v3477_v39  ;;  %v3537_v39 = vld [vmem:[#allocation8 + $0x160] ss:$16 sps:$4 sm:$0xff]  }
  0xe8   :  { %193 = vadd.xlane.f32.xlu1 %v191_v42  ;;  %v3480_v42 = vld [vmem:[#allocation8 + $0x48] ss:$16 sps:$4 sm:$0xff]  }
  0xe9   :  { %195 = vadd.xlane.f32.xlu0 %v192_v43  ;;  %v3483_v43 = vld [vmem:[#allocation8 + $0x40] ss:$16 sps:$4 sm:$0xff]  }
 0x171   :  { %v188_v60 = vpop.xlane.xlu1 %187 }
 0x172   :  { %v190_v61 = vpop.xlane.xlu0 %189  ;;  %v197_v62 = vmul.f32 0.0078125, %v188_v60  ;;  %v250_v60 = vld [vmem:[%s4065_s6] sm:$0x3] }
 0x173   :  { %v198_v63 = vmul.f32 0.0078125, %v190_v61  ;;  %v255_v61 = vrot.slane %v250_v60, %v3849_v11 }
 0x174   :  { %v201_v2 = vmul.f32 %v197_v62, %v197_v62  ;;  %v207_v16 = vsub.f32 %v3867_v40, %v197_v62  ;;  %v3478_v40 = vld [vmem:[#allocation8 + $0x44] ss:$16 sps:$4 sm:$0xff]   ;;  %v259_v62 = vrot.slane %v250_v60, %v3846_v10 }
 0x175   :  { %v194_v0 = vpop.xlane.xlu1 %193  ;;  %v202_v3 = vmul.f32 %v198_v63, %v198_v63  ;;  %v208_v18 = vsub.f32 %v3869_v41, %v198_v63  ;;  %v3482_v41 = vld [vmem:[#allocation8 + $0x4c] ss:$16 sps:$4 sm:$0xff]   ;;  %871 = vmatprep.subr.bf16.mxu1 %v3478_v40  ;;  %v3538_v40 = vld [vmem:[#allocation8 + $0x184] ss:$16 sps:$4 sm:$0xff]  }
 0x176   :  { %v196_v1 = vpop.xlane.xlu0 %195  ;;  %v199_v4 = vmul.f32 0.0078125, %v194_v0  ;;  %872 = vmatpush1.bf16.msra.mxu1 %v3483_v43  ;;  %v3543_v43 = vld [vmem:[#allocation8 + $0x180] ss:$16 sps:$4 sm:$0xff]  }
 0x177   :  { %v200_v5 = vmul.f32 0.0078125, %v196_v1  ;;  %873 = vmatprep.subr.bf16.mxu1 %v3484_v44  ;;  %v3544_v44 = vld [vmem:[#allocation8 + $0x1a4] ss:$16 sps:$4 sm:$0xff]  }
 0x178   :  { %v203_v6 = vsub.f32 %v199_v4, %v201_v2 }
 0x179   :  { %v204_v8 = vsub.f32 %v200_v5, %v202_v3 }
 0x17a   :  { %v205_v9 = vmax.f32 %v203_v6, 0.0  ;;  %874 = vmatpush1.bf16.msra.mxu1 %v3489_v47  ;;  %v3549_v47 = vld [vmem:[#allocation8 + $0x1a0] ss:$16 sps:$4 sm:$0xff]  }
 0x17b   :  { %v206_v12 = vmax.f32 %v204_v8, 0.0  ;;  %875 = vmatprep.subr.bf16.mxu1 %v3490_v48  ;;  %v3550_v48 = vld [vmem:[#allocation8 + $0x1c4] ss:$16 sps:$4 sm:$0xff]  }
 0x17c   :  { %v209_v14 = vadd.f32 1e-05, %v205_v9 }
 0x17d   :  { %v210_v15 = vadd.f32 1e-05, %v206_v12 }
 0x17e   :  { %3562 = vrsqrt.f32 %v209_v14  ;;  %876 = vmatpush1.bf16.msra.mxu1 %v3495_v51  ;;  %v3555_v51 = vld [vmem:[#allocation8 + $0x1c0] ss:$16 sps:$4 sm:$0xff]  }
 0x17f   :  { %3564 = vrsqrt.f32 %v210_v15  ;;  %877 = vmatprep.subr.bf16.mxu1 %v3496_v52  ;;  %v3556_v52 = vld [vmem:[#allocation8 + $0x1e4] ss:$16 sps:$4 sm:$0xff]  }
 0x182   :  { %878 = vmatpush1.bf16.msra.mxu1 %v3501_v55  ;;  %v3561_v55 = vld [vmem:[#allocation8 + $0x1e0] ss:$16 sps:$4 sm:$0xff]  }
 0x183   :  { %879 = vmatprep.subr.bf16.mxu1 %v3502_v56 }
 0x186   :  { %880 = vmatpush1.bf16.msra.mxu1 %v3507_v59 }
 0x188   :  { %v3563_v17 = vpop.eup %3562 }
 0x189   :  { %v3565_v21 = vpop.eup %3564  ;;  %v213_v22 = vmul.f32 %v3563_v17, %v207_v16 }
 0x18a   :  { %v214_v24 = vmul.f32 %v3565_v21, %v208_v18  ;;  %v3512_v21 = vld [vmem:[#allocation8 + $0xec] ss:$16 sps:$4 sm:$0xff]  }
 0x18b   :  { %v221_v25 = vmul.f32 %v3049_v20, %v213_v22  ;;  %v3510_v22 = vld [vmem:[#allocation8 + $0xe8] ss:$16 sps:$4 sm:$0xff]  }
 0x18c   :  { %v222_v26 = vmul.f32 %v3049_v20, %v214_v24  ;;  %v3508_v20 = vld [vmem:[#allocation8 + $0xe4] ss:$16 sps:$4 sm:$0xff]  }
 0x18d   :  { %v229_v27 = vadd.f32 %v3050_v23, %v221_v25  ;;  %881 = vmatprep.subr.bf16.mxu1 %v3508_v20  ;;  %v3514_v24 = vld [vmem:[#allocation8 + $0x104] ss:$16 sps:$4 sm:$0xff]   ;;  %v3518_v25 = vld [vmem:[#allocation8 + $0x10c] ss:$16 sps:$4 sm:$0xff]  }
 0x18e   :  { %v230_v28 = vadd.f32 %v3050_v23, %v222_v26  ;;  %v3513_v23 = vld [vmem:[#allocation8 + $0xe0] ss:$16 sps:$4 sm:$0xff]   ;;  %v3516_v26 = vld [vmem:[#allocation8 + $0x108] ss:$16 sps:$4 sm:$0xff]  }
 0x18f   :  { %v231_v29 = vmax.f32 %v229_v27, 0.0  ;;  %882 = vmatpush1.bf16.msra.mxu1 %v3513_v23  ;;  %v3519_v27 = vld [vmem:[#allocation8 + $0x100] ss:$16 sps:$4 sm:$0xff]  }
 0x190   :  { %v232_v30 = vmax.f32 %v230_v28, 0.0  ;;  %883 = vmatprep.subr.bf16.mxu1 %v3514_v24  ;;  %v3520_v28 = vld [vmem:[#allocation8 + $0x124] ss:$16 sps:$4 sm:$0xff]  }
 0x192   :  { %v233_v31 = vpack.c.bf16 %v232_v30, %v231_v29  ;;  %v3524_v29 = vld [vmem:[#allocation8 + $0x12c] ss:$16 sps:$4 sm:$0xff]   ;;  %v3522_v30 = vld [vmem:[#allocation8 + $0x128] ss:$16 sps:$4 sm:$0xff]  }
 0x193   :  { %884 = vmatpush1.bf16.msra.mxu1 %v3519_v27 }
 0x194   :  { %375 = vmatmul.mubr.bf16.vlgmr.msra.gmra.mrb[0].mxu0 %v233_v31  ;;  %v3525_v31 = vld [vmem:[#allocation8 + $0x120] ss:$16 sps:$4 sm:$0xff]   ;;  %885 = vmatprep.subr.bf16.mxu1 %v3520_v28 }
 0x195   :  { %911 = vmatpush1.bf16.msra.mxu0 %v3468_v33  ;;  %v3530_v33 = vld [vmem:[#allocation8 + $0x14c] ss:$16 sps:$4 sm:$0xff]  }
 0x196   :  { %912 = vmatprep.subr.bf16.mxu0 %v3476_v37  ;;  %v3534_v37 = vld [vmem:[#allocation8 + $0x168] ss:$16 sps:$4 sm:$0xff]  }
 0x197   :  { %886 = vmatpush1.bf16.msra.mxu1 %v3525_v31 }
 0x198   :  { %887 = vmatprep.subr.bf16.mxu1 %v3526_v32 }
 0x199   :  { %913 = vmatpush1.bf16.msra.mxu0 %v3474_v38  ;;  %v3536_v38 = vld [vmem:[#allocation8 + $0x16c] ss:$16 sps:$4 sm:$0xff]  }
 0x19a   :  { %914 = vmatprep.subr.bf16.mxu0 %v3482_v41  ;;  %v3542_v41 = vld [vmem:[#allocation8 + $0x18c] ss:$16 sps:$4 sm:$0xff]  }
 0x19b   :  { %888 = vmatpush1.bf16.msra.mxu1 %v3531_v35 }
 0x19c   :  { %889 = vmatprep.subr.bf16.mxu1 %v3532_v36 }
 0x19d   :  { %915 = vmatpush1.bf16.msra.mxu0 %v3480_v42  ;;  %v3540_v42 = vld [vmem:[#allocation8 + $0x188] ss:$16 sps:$4 sm:$0xff]  }
 0x19e   :  { %916 = vmatprep.subr.bf16.mxu0 %v3488_v45  ;;  %v3548_v45 = vld [vmem:[#allocation8 + $0x1ac] ss:$16 sps:$4 sm:$0xff]  }
 0x19f   :  { %890 = vmatpush1.bf16.msra.mxu1 %v3537_v39 }
 0x1a0   :  { %891 = vmatprep.subr.bf16.mxu1 %v3538_v40 }
 0x1a1   :  { %917 = vmatpush1.bf16.msra.mxu0 %v3486_v46  ;;  %v3546_v46 = vld [vmem:[#allocation8 + $0x1a8] ss:$16 sps:$4 sm:$0xff]  }
 0x1a2   :  { %918 = vmatprep.subr.bf16.mxu0 %v3494_v49  ;;  %v3554_v49 = vld [vmem:[#allocation8 + $0x1cc] ss:$16 sps:$4 sm:$0xff]  }
 0x1a3   :  { %892 = vmatpush1.bf16.msra.mxu1 %v3543_v43 }
 0x1a4   :  { %893 = vmatprep.subr.bf16.mxu1 %v3544_v44  ;;  %v1095_v44 = vld [vmem:[#allocation9 + $0x20] sm:$0xff] }
 0x1a5   :  { %919 = vmatpush1.bf16.msra.mxu0 %v3492_v50  ;;  %v3552_v50 = vld [vmem:[#allocation8 + $0x1c8] ss:$16 sps:$4 sm:$0xff]  }
 0x1a6   :  { %920 = vmatprep.subr.bf16.mxu0 %v3500_v53  ;;  %v3560_v53 = vld [vmem:[#allocation8 + $0x1ec] ss:$16 sps:$4 sm:$0xff]  }
 0x1a7   :  { %894 = vmatpush1.bf16.msra.mxu1 %v3549_v47 }
 0x1a8   :  { %895 = vmatprep.subr.bf16.mxu1 %v3550_v48  ;;  %v1096_v48 = vld [vmem:[#allocation9 + $0x28] sm:$0xff] }
 0x1a9   :  { %921 = vmatpush1.bf16.msra.mxu0 %v3498_v54  ;;  %v3558_v54 = vld [vmem:[#allocation8 + $0x1e8] ss:$16 sps:$4 sm:$0xff]  }
 0x1aa   :  { %922 = vmatprep.subr.bf16.mxu0 %v3506_v57 }
 0x1ab   :  { %896 = vmatpush1.bf16.msra.mxu1 %v3555_v51 }
 0x1ac   :  { %897 = vmatprep.subr.bf16.mxu1 %v3556_v52 }
 0x1ad   :  { %923 = vmatpush1.bf16.msra.mxu0 %v3504_v58 }
 0x1ae   :  { %924 = vmatprep.subr.bf16.mxu0 %v3512_v21 }
 0x1af   :  { %898 = vmatpush1.bf16.msra.mxu1 %v3561_v55  ;;  %v1104_v55 = vld [vmem:[#allocation9 + $0x68] sm:$0xff] }
 0x1b1   :  { %925 = vmatpush1.bf16.msra.mxu0 %v3510_v22 }
 0x1b2   :  { %926 = vmatprep.subr.bf16.mxu0 %v3518_v25 }
 0x1b5   :  { %927 = vmatpush1.bf16.msra.mxu0 %v3516_v26 }
 0x1b6   :  { %928 = vmatprep.subr.bf16.mxu0 %v3524_v29 }
 0x1b9   :  { %929 = vmatpush1.bf16.msra.mxu0 %v3522_v30 }
 0x1ba   :  { %930 = vmatprep.subr.bf16.mxu0 %v3530_v33 }
 0x1bd   :  { %931 = vmatpush1.bf16.msra.mxu0 %v3528_v34 }
 0x1be   :  { %932 = vmatprep.subr.bf16.mxu0 %v3536_v38 }
 0x1c1   :  { %933 = vmatpush1.bf16.msra.mxu0 %v3534_v37 }
 0x1c2   :  { %934 = vmatprep.subr.bf16.mxu0 %v3542_v41 }
 0x1c5   :  { %935 = vmatpush1.bf16.msra.mxu0 %v3540_v42 }
 0x1c6   :  { %936 = vmatprep.subr.bf16.mxu0 %v3548_v45  ;;  %v1092_v45 = vld [vmem:[#allocation9 + $0x8] sm:$0xff] }
 0x1c7   :  { %v3133_v51 = vcombine.low %v1092_v45, %v1096_v48  ;;  %v3134_v52 = vcombine.high %v1092_v45, %v1096_v48  ;;  %v525_v48 = vld [vmem:[%s4069_s10] sm:$0xf] }
 0x1c9   :  { %937 = vmatpush1.bf16.msra.mxu0 %v3546_v46 }
 0x1ca   :  { %938 = vmatprep.subr.bf16.mxu0 %v3554_v49  ;;  %v1099_v49 = vld [vmem:[#allocation9 + $0x40] sm:$0xff] }
 0x1cd   :  { %939 = vmatpush1.bf16.msra.mxu0 %v3552_v50  ;;  %v1103_v50 = vld [vmem:[#allocation9 + $0x60] sm:$0xff] }
 0x1ce   :  { %940 = vmatprep.subr.bf16.mxu0 %v3560_v53  ;;  %v3140_v53 = vcombine.high %v1099_v49, %v1103_v50 }
 0x1d1   :  { %941 = vmatpush1.bf16.msra.mxu0 %v3558_v54  ;;  %v1100_v54 = vld [vmem:[#allocation9 + $0x48] sm:$0xff] }
 0x1d2   :  { %2755 = vmatprep.subr.bf16.mxu0 %v3134_v52 }
 0x267   :  { %v376_v63 = vpop.f32.mrb[0].mxu0 }
 0x268   :  { %v3887_v0 = vadd.f32 %v376_v63, %v255_v61  ;;  %v378_v1 = vpop.f32.mrb[1].mxu0 }
 0x269   :  { %v3889_v2 = vadd.f32 %v378_v1, %v259_v62  ;;  %v380_v3 = vpop.f32.mrb[2].mxu0 }
 0x26a   :  { %v3891_v4 = vadd.f32 %v380_v3, %v255_v61  ;;  %v382_v5 = vpop.f32.mrb[3].mxu0  ;;  %v393_v9 = vmul.f32 %v3887_v0, %v3887_v0 }
 0x26b   :  { %v3893_v6 = vadd.f32 %v382_v5, %v259_v62  ;;  %v387_v8 = vadd.f32 %v3889_v2, %v3887_v0  ;;  %v394_v12 = vmul.f32 %v3889_v2, %v3889_v2 }
 0x26c   :  { %v395_v15 = vmul.f32 %v3891_v4, %v3891_v4 }
 0x26d   :  { %388 = vadd.xlane.f32.xlu1 %v387_v8  ;;  %v390_v14 = vadd.f32 %v3893_v6, %v3891_v4  ;;  %v396_v16 = vmul.f32 %v3893_v6, %v3893_v6  ;;  %v397_v17 = vadd.f32 %v394_v12, %v393_v9 }
 0x26f   :  { %391 = vadd.xlane.f32.xlu0 %v390_v14  ;;  %v400_v18 = vadd.f32 %v396_v16, %v395_v15  ;;  %v385_v16 = vld [vmem:[%s4066_s7] sm:$0x3] }
 0x270   :  { %v429_v21 = vrot.slane %v385_v16, %v3849_v11  ;;  %v433_v22 = vrot.slane %v385_v16, %v3846_v10 }
 0x271   :  { %398 = vadd.xlane.f32.xlu1 %v397_v17  ;;  %v386_v17 = vld [vmem:[%s4067_s8] sm:$0x3] }
 0x272   :  { %v444_v24 = vrot.slane %v386_v17, %v3849_v11  ;;  %v448_v25 = vrot.slane %v386_v17, %v3846_v10  ;;  %v1123_v17 = vld [vmem:[#allocation9 + $0x100] sm:$0xff] }
 0x273   :  { %401 = vadd.xlane.f32.xlu0 %v400_v18 }
 0x2fa   :  { %v389_v56 = vpop.xlane.xlu1 %388 }
 0x2fb   :  { %v403_v57 = vmul.f32 0.00390625, %v389_v56  ;;  %v1107_v56 = vld [vmem:[#allocation9 + $0x80] sm:$0xff] }
 0x2fc   :  { %v392_v58 = vpop.xlane.xlu0 %391 }
 0x2fd   :  { %v404_v59 = vmul.f32 0.00390625, %v392_v58  ;;  %v407_v61 = vmul.f32 %v403_v57, %v403_v57  ;;  %v413_v18 = vsub.f32 %v3887_v0, %v403_v57  ;;  %v414_v20 = vsub.f32 %v3889_v2, %v403_v57  ;;  %v1111_v58 = vld [vmem:[#allocation9 + $0xa0] sm:$0xff] }
 0x2fe   :  { %v399_v60 = vpop.xlane.xlu1 %398  ;;  %v3142_v57 = vcombine.high %v1100_v54, %v1104_v55 }
 0x2ff   :  { %v405_v62 = vmul.f32 0.00390625, %v399_v60  ;;  %v408_v3 = vmul.f32 %v404_v59, %v404_v59  ;;  %v415_v26 = vsub.f32 %v3891_v4, %v404_v59  ;;  %v416_v27 = vsub.f32 %v3893_v6, %v404_v59  ;;  %v1091_v6 = vld [vmem:[#allocation9] sm:$0xff]  ;;  %v1108_v59 = vld [vmem:[#allocation9 + $0x88] sm:$0xff] }
 0x300   :  { %v402_v63 = vpop.xlane.xlu0 %401  ;;  %v3131_v46 = vcombine.low %v1091_v6, %v1095_v44  ;;  %v3132_v47 = vcombine.high %v1091_v6, %v1095_v44  ;;  %v1112_v60 = vld [vmem:[#allocation9 + $0xa8] sm:$0xff] }
 0x301   :  { %v409_v1 = vsub.f32 %v405_v62, %v407_v61  ;;  %v406_v5 = vmul.f32 0.00390625, %v402_v63  ;;  %v3139_v61 = vcombine.low %v1099_v49, %v1103_v50  ;;  %v3141_v62 = vcombine.low %v1100_v54, %v1104_v55 }
 0x302   :  { %2669 = vmatprep.subr.bf16.mxu1 %v3132_v47  ;;  %v3148_v63 = vcombine.high %v1107_v56, %v1111_v58  ;;  %v530_v49 = vrot.slane %v525_v48, %v3849_v11  ;;  %v538_v50 = vrot.slane %v525_v48, %v3855_v13 }
 0x303   :  { %v411_v8 = vmax.f32 %v409_v1, 0.0  ;;  %v410_v9 = vsub.f32 %v406_v5, %v408_v3  ;;  %v3150_v1 = vcombine.high %v1108_v59, %v1112_v60  ;;  %v1115_v3 = vld [vmem:[#allocation9 + $0xc0] sm:$0xff] }
 0x304   :  { %v1119_v5 = vld [vmem:[#allocation9 + $0xe0] sm:$0xff] }
 0x305   :  { %v417_v12 = vadd.f32 1e-05, %v411_v8  ;;  %v412_v14 = vmax.f32 %v410_v9, 0.0  ;;  %v1116_v8 = vld [vmem:[#allocation9 + $0xc8] sm:$0xff] }
 0x306   :  { %v1120_v9 = vld [vmem:[#allocation9 + $0xe8] sm:$0xff] }
 0x307   :  { %3566 = vrsqrt.f32 %v417_v12  ;;  %v418_v15 = vadd.f32 1e-05, %v412_v14  ;;  %v3147_v12 = vcombine.low %v1107_v56, %v1111_v58  ;;  %v3149_v14 = vcombine.low %v1108_v59, %v1112_v60 }
 0x308   :  { %v3158_v16 = vcombine.high %v1116_v8, %v1120_v9 }
 0x309   :  { %3568 = vrsqrt.f32 %v418_v15  ;;  %v3156_v15 = vcombine.high %v1115_v3, %v1119_v5 }
 0x311   :  { %v3567_v23 = vpop.eup %3566 }
 0x312   :  { %v422_v28 = vmul.f32 %v3567_v23, %v414_v20  ;;  %v421_v29 = vmul.f32 %v3567_v23, %v413_v18  ;;  %v1127_v18 = vld [vmem:[#allocation9 + $0x120] sm:$0xff]  ;;  %v1124_v20 = vld [vmem:[#allocation9 + $0x108] sm:$0xff]  ;;  %v3157_v23 = vcombine.low %v1116_v8, %v1120_v9 }
 0x313   :  { %v3569_v30 = vpop.eup %3568 }
 0x314   :  { %v424_v31 = vmul.f32 %v3569_v30, %v416_v27  ;;  %v437_v0 = vmul.f32 %v433_v22, %v422_v28  ;;  %v423_v32 = vmul.f32 %v3569_v30, %v415_v26  ;;  %v436_v2 = vmul.f32 %v429_v21, %v421_v29  ;;  %v1131_v26 = vld [vmem:[#allocation9 + $0x140] sm:$0xff]  ;;  %v1132_v28 = vld [vmem:[#allocation9 + $0x148] sm:$0xff] }
 0x315   :  { %v1135_v27 = vld [vmem:[#allocation9 + $0x160] sm:$0xff]  ;;  %v1136_v29 = vld [vmem:[#allocation9 + $0x168] sm:$0xff]  ;;  %v3163_v30 = vcombine.low %v1123_v17, %v1127_v18 }
 0x316   :  { %v439_v33 = vmul.f32 %v433_v22, %v424_v31  ;;  %v452_v34 = vadd.f32 %v448_v25, %v437_v0  ;;  %v438_v35 = vmul.f32 %v429_v21, %v423_v32  ;;  %v451_v36 = vadd.f32 %v444_v24, %v436_v2  ;;  %v1128_v21 = vld [vmem:[#allocation9 + $0x128] sm:$0xff]  ;;  %v1139_v2 = vld [vmem:[#allocation9 + $0x180] sm:$0xff] }
 0x317   :  { %v3155_v22 = vcombine.low %v1115_v3, %v1119_v5  ;;  %v3165_v31 = vcombine.low %v1124_v20, %v1128_v21  ;;  %v3172_v0 = vcombine.high %v1131_v26, %v1135_v27  ;;  %v3174_v32 = vcombine.high %v1132_v28, %v1136_v29 }
 0x318   :  { %v454_v37 = vadd.f32 %v448_v25, %v439_v33  ;;  %v453_v38 = vadd.f32 %v444_v24, %v438_v35  ;;  %v456_v39 = vmax.f32 %v452_v34, 0.0  ;;  %v455_v41 = vmax.f32 %v451_v36, 0.0  ;;  %v1143_v33 = vld [vmem:[#allocation9 + $0x1a0] sm:$0xff]  ;;  %v1140_v34 = vld [vmem:[#allocation9 + $0x188] sm:$0xff] }
 0x319   :  { %v3164_v24 = vcombine.high %v1123_v17, %v1127_v18  ;;  %v3166_v25 = vcombine.high %v1124_v20, %v1128_v21  ;;  %v1144_v35 = vld [vmem:[#allocation9 + $0x1a8] sm:$0xff]  ;;  %v3171_v36 = vcombine.low %v1131_v26, %v1135_v27 }
 0x31a   :  { %v458_v40 = vmax.f32 %v454_v37, 0.0  ;;  %v457_v42 = vmax.f32 %v453_v38, 0.0  ;;  %v3173_v37 = vcombine.low %v1132_v28, %v1136_v29  ;;  %v3180_v38 = vcombine.high %v1139_v2, %v1143_v33 }
 0x31b   :  { %v3181_v6 = vcombine.low %v1140_v34, %v1144_v35 }
 0x31c   :  { %v460_v4 = vpack.c.bf16 %v458_v40, %v456_v39  ;;  %v459_v43 = vpack.c.bf16 %v457_v42, %v455_v41  ;;  %v3182_v39 = vcombine.high %v1140_v34, %v1144_v35  ;;  %v1147_v40 = vld [vmem:[#allocation9 + $0x1c0] sm:$0xff]  ;;  %v1148_v42 = vld [vmem:[#allocation9 + $0x1c8] sm:$0xff] }
 0x31d   :  { %v1151_v41 = vld [vmem:[#allocation9 + $0x1e0] sm:$0xff]  ;;  %v1156_v34 = vld [vmem:[#allocation9 + $0x208] sm:$0xff] }
 0x31e   :  { %899 = vmatprep.mubr.bf16.mxu1 %v460_v4  ;;  %942 = vmatprep.mubr.bf16.mxu0 %v460_v4  ;;  %v1152_v4 = vld [vmem:[#allocation9 + $0x1e8] sm:$0xff]  ;;  %v3188_v44 = vcombine.high %v1147_v40, %v1151_v41 }
 0x31f   :  { %900 = vmatmul.mubr.bf16.vlgmr.msra.gmra.mrb[0].mxu1 %v459_v43  ;;  %943 = vmatmul.mubr.bf16.vlgmr.msra.gmra.mrb[4].mxu0 %v459_v43  ;;  %v3179_v43 = vcombine.low %v1139_v2, %v1143_v33  ;;  %v3190_v45 = vcombine.high %v1148_v42, %v1152_v4  ;;  %v3189_v47 = vcombine.low %v1148_v42, %v1152_v4  ;;  %v1155_v2 = vld [vmem:[#allocation9 + $0x200] sm:$0xff]  ;;  %v1164_v42 = vld [vmem:[#allocation9 + $0x248] sm:$0xff] }
 0x320   :  { %2670 = vmatpush1.bf16.msra.mxu1 %v3131_v46  ;;  %2756 = vmatpush1.bf16.msra.mxu0 %v3133_v51  ;;  %v3187_v46 = vcombine.low %v1147_v40, %v1151_v41  ;;  %v534_v51 = vrot.slane %v525_v48, %v3846_v10  ;;  %v1159_v33 = vld [vmem:[#allocation9 + $0x220] sm:$0xff] }
 0x321   :  { %2671 = vmatprep.subr.bf16.mxu1 %v3140_v53  ;;  %2757 = vmatprep.subr.bf16.mxu0 %v3142_v57  ;;  %v542_v57 = vrot.slane %v525_v48, %v3861_v19  ;;  %v3196_v35 = vcombine.high %v1155_v2, %v1159_v33  ;;  %v1163_v40 = vld [vmem:[#allocation9 + $0x240] sm:$0xff]  ;;  %v1172_v48 = vld [vmem:[#allocation9 + $0x288] sm:$0xff] }
 0x322   :  { %v1167_v41 = vld [vmem:[#allocation9 + $0x260] sm:$0xff] }
 0x323   :  { %v3204_v4 = vcombine.high %v1163_v40, %v1167_v41 }
 0x324   :  { %2672 = vmatpush1.bf16.msra.mxu1 %v3139_v61  ;;  %2758 = vmatpush1.bf16.msra.mxu0 %v3141_v62 }
 0x325   :  { %2673 = vmatprep.subr.bf16.mxu1 %v3148_v63  ;;  %2759 = vmatprep.subr.bf16.mxu0 %v3150_v1 }
 0x328   :  { %2674 = vmatpush1.bf16.msra.mxu1 %v3147_v12  ;;  %2760 = vmatpush1.bf16.msra.mxu0 %v3149_v14 }
 0x329   :  { %2675 = vmatprep.subr.bf16.mxu1 %v3156_v15  ;;  %2761 = vmatprep.subr.bf16.mxu0 %v3158_v16 }
 0x32c   :  { %2676 = vmatpush1.bf16.msra.mxu1 %v3155_v22  ;;  %2762 = vmatpush1.bf16.msra.mxu0 %v3157_v23 }
 0x32d   :  { %2677 = vmatprep.subr.bf16.mxu1 %v3164_v24  ;;  %2763 = vmatprep.subr.bf16.mxu0 %v3166_v25 }
 0x330   :  { %2678 = vmatpush1.bf16.msra.mxu1 %v3163_v30  ;;  %2764 = vmatpush1.bf16.msra.mxu0 %v3165_v31 }
 0x331   :  { %2679 = vmatprep.subr.bf16.mxu1 %v3172_v0  ;;  %2765 = vmatprep.subr.bf16.mxu0 %v3174_v32 }
 0x334   :  { %2680 = vmatpush1.bf16.msra.mxu1 %v3171_v36  ;;  %2766 = vmatpush1.bf16.msra.mxu0 %v3173_v37  ;;  %v1160_v36 = vld [vmem:[#allocation9 + $0x228] sm:$0xff]  ;;  %v3195_v37 = vcombine.low %v1155_v2, %v1159_v33 }
 0x335   :  { %2681 = vmatprep.subr.bf16.mxu1 %v3180_v38  ;;  %2767 = vmatprep.subr.bf16.mxu0 %v3182_v39  ;;  %v3197_v38 = vcombine.low %v1156_v34, %v1160_v36  ;;  %v3198_v39 = vcombine.high %v1156_v34, %v1160_v36  ;;  %v1215_v36 = vld [vmem:[#allocation9 + $0x3e0] sm:$0xff] }
 0x338   :  { %2682 = vmatpush1.bf16.msra.mxu1 %v3179_v43  ;;  %2768 = vmatpush1.bf16.msra.mxu0 %v3181_v6  ;;  %v1168_v43 = vld [vmem:[#allocation9 + $0x268] sm:$0xff]  ;;  %v3203_v6 = vcombine.low %v1163_v40, %v1167_v41 }
 0x339   :  { %2683 = vmatprep.subr.bf16.mxu1 %v3188_v44  ;;  %2769 = vmatprep.subr.bf16.mxu0 %v3190_v45  ;;  %v3205_v44 = vcombine.low %v1164_v42, %v1168_v43  ;;  %v3206_v45 = vcombine.high %v1164_v42, %v1168_v43 }
 0x33c   :  { %2684 = vmatpush1.bf16.msra.mxu1 %v3187_v46  ;;  %2770 = vmatpush1.bf16.msra.mxu0 %v3189_v47  ;;  %v1171_v46 = vld [vmem:[#allocation9 + $0x280] sm:$0xff] }
 0x33d   :  { %2685 = vmatprep.subr.bf16.mxu1 %v3196_v35  ;;  %2771 = vmatprep.subr.bf16.mxu0 %v3198_v39  ;;  %v1175_v47 = vld [vmem:[#allocation9 + $0x2a0] sm:$0xff] }
 0x33e   :  { %v1211_v35 = vld [vmem:[#allocation9 + $0x3c0] sm:$0xff] }
 0x33f   :  { %v3252_v41 = vcombine.high %v1211_v35, %v1215_v36 }
 0x340   :  { %2686 = vmatpush1.bf16.msra.mxu1 %v3195_v37  ;;  %2772 = vmatpush1.bf16.msra.mxu0 %v3197_v38  ;;  %v1212_v37 = vld [vmem:[#allocation9 + $0x3c8] sm:$0xff] }
 0x341   :  { %2687 = vmatprep.subr.bf16.mxu1 %v3204_v4  ;;  %2773 = vmatprep.subr.bf16.mxu0 %v3206_v45  ;;  %v1216_v38 = vld [vmem:[#allocation9 + $0x3e8] sm:$0xff]  ;;  %v3251_v4 = vcombine.low %v1211_v35, %v1215_v36 }
 0x342   :  { %v3254_v42 = vcombine.high %v1212_v37, %v1216_v38  ;;  %v3253_v43 = vcombine.low %v1212_v37, %v1216_v38  ;;  %v3972_v45 = vld [vmem:[#allocation9 + $0x408] sm:$0xff] }
 0x344   :  { %2688 = vmatpush1.bf16.msra.mxu1 %v3203_v6  ;;  %2774 = vmatpush1.bf16.msra.mxu0 %v3205_v44  ;;  %v3968_v6 = vld [vmem:[#allocation9 + $0x400] sm:$0xff] }
 0x345   :  { %v3970_v44 = vld [vmem:[#allocation9 + $0x420] sm:$0xff] }
 0x3f2   :  { %v901_v52 = vpop.f32.mrb[0].mxu1  ;;  %v944_v53 = vpop.f32.mrb[4].mxu0 }
 0x3f3   :  { %v3927_v54 = vadd.f32 %v901_v52, %v530_v49  ;;  %v3929_v55 = vadd.f32 %v944_v53, %v538_v50  ;;  %v903_v56 = vpop.f32.mrb[1].mxu1  ;;  %v946_v58 = vpop.f32.mrb[5].mxu0 }
 0x3f4   :  { %v3932_v59 = vadd.f32 %v903_v56, %v534_v51  ;;  %v905_v60 = vpop.f32.mrb[2].mxu1  ;;  %v948_v61 = vpop.f32.mrb[6].mxu0  ;;  %v3948_v15 = vadd.f32 %v946_v58, %v542_v57  ;;  %v1179_v56 = vld [vmem:[#allocation9 + $0x2c0] sm:$0xff]  ;;  %v1180_v58 = vld [vmem:[#allocation9 + $0x2c8] sm:$0xff] }
 0x3f5   :  { %v965_v62 = vmul.f32 %v3927_v54, %v3927_v54  ;;  %v3936_v63 = vadd.f32 %v905_v60, %v530_v49  ;;  %v3938_v1 = vadd.f32 %v948_v61, %v538_v50  ;;  %v907_v3 = vpop.f32.mrb[3].mxu1  ;;  %v950_v5 = vpop.f32.mrb[7].mxu0  ;;  %v967_v14 = vmul.f32 %v3929_v55, %v3929_v55  ;;  %v1176_v50 = vld [vmem:[#allocation9 + $0x2a8] sm:$0xff] }
 0x3f6   :  { %v955_v8 = vadd.f32 %v3932_v59, %v3927_v54  ;;  %v966_v9 = vmul.f32 %v3932_v59, %v3932_v59  ;;  %v3944_v12 = vadd.f32 %v907_v3, %v534_v51  ;;  %v3959_v23 = vadd.f32 %v950_v5, %v542_v57  ;;  %v1183_v57 = vld [vmem:[#allocation9 + $0x2e0] sm:$0xff] }
 0x3f7   :  { %v969_v16 = vmul.f32 %v3936_v63, %v3936_v63  ;;  %v971_v22 = vmul.f32 %v3938_v1, %v3938_v1  ;;  %v968_v29 = vmul.f32 %v3948_v15, %v3948_v15  ;;  %v3212_v49 = vcombine.high %v1171_v46, %v1175_v47  ;;  %v1187_v3 = vld [vmem:[#allocation9 + $0x300] sm:$0xff] }
 0x3f8   :  { %v960_v17 = vadd.f32 %v3944_v12, %v3936_v63  ;;  %v970_v18 = vmul.f32 %v3944_v12, %v3944_v12  ;;  %v956_v20 = vadd.f32 %v955_v8, %v3929_v55  ;;  %v973_v21 = vadd.f32 %v966_v9, %v965_v62  ;;  %v1184_v62 = vld [vmem:[#allocation9 + $0x2e8] sm:$0xff]  ;;  %v1191_v5 = vld [vmem:[#allocation9 + $0x320] sm:$0xff] }
 0x3f9   :  { %v972_v0 = vmul.f32 %v3959_v23, %v3959_v23  ;;  %v3211_v51 = vcombine.low %v1171_v46, %v1175_v47  ;;  %v3213_v52 = vcombine.low %v1172_v48, %v1176_v50  ;;  %v3214_v53 = vcombine.high %v1172_v48, %v1176_v50  ;;  %2689 = vmatprep.subr.bf16.mxu1 %v3212_v49  ;;  %v3978_v48 = vld [vmem:[#allocation9 + $0x428] sm:$0xff] }
 0x3fa   :  { %v957_v24 = vadd.f32 %v956_v20, %v3948_v15  ;;  %v961_v25 = vadd.f32 %v960_v17, %v3938_v1  ;;  %v974_v26 = vadd.f32 %v973_v21, %v967_v14  ;;  %v978_v27 = vadd.f32 %v970_v18, %v969_v16  ;;  %v1188_v16 = vld [vmem:[#allocation9 + $0x308] sm:$0xff]  ;;  %v1195_v18 = vld [vmem:[#allocation9 + $0x340] sm:$0xff] }
 0x3fb   :  { %2775 = vmatprep.subr.bf16.mxu0 %v3214_v53  ;;  %2690 = vmatpush1.bf16.msra.mxu1 %v3211_v51  ;;  %v3219_v60 = vcombine.low %v1179_v56, %v1183_v57  ;;  %v3220_v61 = vcombine.high %v1179_v56, %v1183_v57  ;;  %v3221_v8 = vcombine.low %v1180_v58, %v1184_v62  ;;  %v1192_v17 = vld [vmem:[#allocation9 + $0x328] sm:$0xff]  ;;  %v1199_v21 = vld [vmem:[#allocation9 + $0x360] sm:$0xff] }
 0x3fc   :  { %958 = vadd.xlane.f32.xlu1 %v957_v24  ;;  %v962_v28 = vadd.f32 %v961_v25, %v3959_v23  ;;  %v979_v30 = vadd.f32 %v978_v27, %v971_v22  ;;  %v975_v31 = vadd.f32 %v974_v26, %v968_v29  ;;  %2776 = vmatpush1.bf16.msra.mxu0 %v3213_v52  ;;  %v1196_v22 = vld [vmem:[#allocation9 + $0x348] sm:$0xff]  ;;  %v1203_v29 = vld [vmem:[#allocation9 + $0x380] sm:$0xff] }
 0x3fd   :  { %v3222_v9 = vcombine.high %v1180_v58, %v1184_v62  ;;  %v3228_v14 = vcombine.high %v1187_v3, %v1191_v5  ;;  %2691 = vmatprep.subr.bf16.mxu1 %v3220_v61  ;;  %v3230_v20 = vcombine.high %v1188_v16, %v1192_v17  ;;  %v1200_v24 = vld [vmem:[#allocation9 + $0x368] sm:$0xff]  ;;  %v3227_v25 = vcombine.low %v1187_v3, %v1191_v5 }
 0x3fe   :  { %963 = vadd.xlane.f32.xlu0 %v962_v28  ;;  %v980_v32 = vadd.f32 %v979_v30, %v972_v0  ;;  %v3229_v26 = vcombine.low %v1188_v16, %v1192_v17  ;;  %v3236_v27 = vcombine.high %v1195_v18, %v1199_v21  ;;  %v3238_v28 = vcombine.high %v1196_v22, %v1200_v24  ;;  %v1207_v30 = vld [vmem:[#allocation9 + $0x3a0] sm:$0xff]  ;;  %v1208_v0 = vld [vmem:[#allocation9 + $0x3a8] sm:$0xff] }
 0x3ff   :  { %2777 = vmatprep.subr.bf16.mxu0 %v3222_v9  ;;  %2692 = vmatpush1.bf16.msra.mxu1 %v3219_v60  ;;  %v3237_v2 = vcombine.low %v1196_v22, %v1200_v24  ;;  %v3244_v33 = vcombine.high %v1203_v29, %v1207_v30  ;;  %v3243_v39 = vcombine.low %v1203_v29, %v1207_v30 }
 0x400   :  { %976 = vadd.xlane.f32.xlu1 %v975_v31  ;;  %2778 = vmatpush1.bf16.msra.mxu0 %v3221_v8  ;;  %v1204_v31 = vld [vmem:[#allocation9 + $0x388] sm:$0xff]  ;;  %v3259_v46 = vcombine.low %v3968_v6, %v3970_v44  ;;  %v3260_v47 = vcombine.high %v3968_v6, %v3970_v44  ;;  %v3261_v49 = vcombine.low %v3972_v45, %v3978_v48 }
 0x401   :  { %2693 = vmatprep.subr.bf16.mxu1 %v3228_v14  ;;  %2779 = vmatprep.subr.bf16.mxu0 %v3230_v20  ;;  %v3246_v34 = vcombine.high %v1204_v31, %v1208_v0  ;;  %v3245_v40 = vcombine.low %v1204_v31, %v1208_v0  ;;  %v3262_v50 = vcombine.high %v3972_v45, %v3978_v48  ;;  %v954_v20 = vld [vmem:[%s4071_s12] sm:$0xf]  ;;  %v1251_v48 = vld [vmem:[#allocation9 + $0x500] sm:$0xff] }
 0x402   :  { %981 = vadd.xlane.f32.xlu0 %v980_v32  ;;  %v3235_v32 = vcombine.low %v1195_v18, %v1199_v21  ;;  %v953_v18 = vld [vmem:[%s4070_s11] sm:$0xf]  ;;  %v1054_v37 = vrot.slane %v954_v20, %v3855_v13 }
 0x403   :  { %2694 = vmatpush1.bf16.msra.mxu1 %v3227_v25  ;;  %v1021_v21 = vrot.slane %v953_v18, %v3846_v10  ;;  %v1017_v22 = vrot.slane %v953_v18, %v3849_v11  ;;  %v1029_v24 = vrot.slane %v953_v18, %v3861_v19  ;;  %v1025_v25 = vrot.slane %v953_v18, %v3855_v13 }
 0x404   :  { %2780 = vmatpush1.bf16.msra.mxu0 %v3229_v26  ;;  %2695 = vmatprep.subr.bf16.mxu1 %v3236_v27 }
 0x405   :  { %2781 = vmatprep.subr.bf16.mxu0 %v3238_v28 }
 0x407   :  { %2696 = vmatpush1.bf16.msra.mxu1 %v3235_v32  ;;  %v1050_v32 = vrot.slane %v954_v20, %v3846_v10 }
 0x408   :  { %2782 = vmatpush1.bf16.msra.mxu0 %v3237_v2  ;;  %2697 = vmatprep.subr.bf16.mxu1 %v3244_v33  ;;  %v1046_v2 = vrot.slane %v954_v20, %v3849_v11 }
 0x409   :  { %2783 = vmatprep.subr.bf16.mxu0 %v3246_v34 }
 0x40b   :  { %2698 = vmatpush1.bf16.msra.mxu1 %v3243_v39 }
 0x40c   :  { %2784 = vmatpush1.bf16.msra.mxu0 %v3245_v40  ;;  %2699 = vmatprep.subr.bf16.mxu1 %v3252_v41 }
 0x40d   :  { %2785 = vmatprep.subr.bf16.mxu0 %v3254_v42 }
 0x40f   :  { %2700 = vmatpush1.bf16.msra.mxu1 %v3251_v4 }
 0x410   :  { %2786 = vmatpush1.bf16.msra.mxu0 %v3253_v43  ;;  %2712 = vmatprep.subr.bf16.mxu1 %v3260_v47 }
 0x411   :  { %2798 = vmatprep.subr.bf16.mxu0 %v3262_v50 }
 0x489   :  { %v959_v51 = vpop.xlane.xlu1 %958 }
 0x48a   :  { %v983_v52 = vmul.f32 0.001953125, %v959_v51 }
 0x48b   :  { %v964_v53 = vpop.xlane.xlu0 %963 }
 0x48c   :  { %v984_v56 = vmul.f32 0.001953125, %v964_v53  ;;  %v987_v58 = vmul.f32 %v983_v52, %v983_v52  ;;  %v993_v26 = vsub.f32 %v3927_v54, %v983_v52  ;;  %v994_v27 = vsub.f32 %v3932_v59, %v983_v52 }
 0x48d   :  { %v977_v57 = vpop.xlane.xlu1 %976  ;;  %v995_v28 = vsub.f32 %v3929_v55, %v983_v52  ;;  %v996_v29 = vsub.f32 %v3948_v15, %v983_v52  ;;  %v1058_v15 = vrot.slane %v954_v20, %v3861_v19 }
 0x48e   :  { %v985_v60 = vmul.f32 0.001953125, %v977_v57  ;;  %v988_v3 = vmul.f32 %v984_v56, %v984_v56  ;;  %v997_v31 = vsub.f32 %v3936_v63, %v984_v56  ;;  %v998_v0 = vsub.f32 %v3944_v12, %v984_v56 }
 0x48f   :  { %v982_v61 = vpop.xlane.xlu0 %981  ;;  %v999_v59 = vsub.f32 %v3938_v1, %v984_v56  ;;  %v1000_v55 = vsub.f32 %v3959_v23, %v984_v56 }
 0x490   :  { %v989_v62 = vsub.f32 %v985_v60, %v987_v58  ;;  %v986_v5 = vmul.f32 0.001953125, %v982_v61 }
 0x492   :  { %v991_v8 = vmax.f32 %v989_v62, 0.0  ;;  %v990_v9 = vsub.f32 %v986_v5, %v988_v3 }
 0x494   :  { %v1001_v14 = vadd.f32 1e-05, %v991_v8  ;;  %v992_v16 = vmax.f32 %v990_v9, 0.0  ;;  %v1227_v8 = vld [vmem:[#allocation9 + $0x440] sm:$0xff] }
 0x496   :  { %3570 = vrsqrt.f32 %v1001_v14  ;;  %v1002_v17 = vadd.f32 1e-05, %v992_v16  ;;  %v1231_v14 = vld [vmem:[#allocation9 + $0x460] sm:$0xff]  ;;  %v1228_v16 = vld [vmem:[#allocation9 + $0x448] sm:$0xff] }
 0x498   :  { %3572 = vrsqrt.f32 %v1002_v17  ;;  %v1232_v17 = vld [vmem:[#allocation9 + $0x468] sm:$0xff] }
 0x4a0   :  { %v3571_v30 = vpop.eup %3570 }
 0x4a1   :  { %v1006_v33 = vmul.f32 %v3571_v30, %v994_v27  ;;  %v1005_v34 = vmul.f32 %v3571_v30, %v993_v26  ;;  %v1008_v35 = vmul.f32 %v3571_v30, %v996_v29  ;;  %v1007_v36 = vmul.f32 %v3571_v30, %v995_v28  ;;  %v1239_v29 = vld [vmem:[#allocation9 + $0x4a0] sm:$0xff]  ;;  %v1236_v30 = vld [vmem:[#allocation9 + $0x488] sm:$0xff] }
 0x4a2   :  { %v3573_v54 = vpop.eup %3572  ;;  %v3268_v27 = vcombine.high %v1227_v8, %v1231_v14  ;;  %v3270_v28 = vcombine.high %v1228_v16, %v1232_v17 }
 0x4a3   :  { %v1010_v63 = vmul.f32 %v3573_v54, %v998_v0  ;;  %v1035_v38 = vmul.f32 %v1021_v21, %v1006_v33  ;;  %v1009_v12 = vmul.f32 %v3573_v54, %v997_v31  ;;  %v1034_v39 = vmul.f32 %v1017_v22, %v1005_v34  ;;  %v1240_v31 = vld [vmem:[#allocation9 + $0x4a8] sm:$0xff] }
 0x4a4   :  { %v1012_v40 = vmul.f32 %v3573_v54, %v1000_v55  ;;  %v1037_v41 = vmul.f32 %v1029_v24, %v1008_v35  ;;  %v1011_v42 = vmul.f32 %v3573_v54, %v999_v59  ;;  %v1036_v4 = vmul.f32 %v1025_v25, %v1007_v36  ;;  %v1243_v35 = vld [vmem:[#allocation9 + $0x4c0] sm:$0xff]  ;;  %v1244_v54 = vld [vmem:[#allocation9 + $0x4c8] sm:$0xff] }
 0x4a5   :  { %v1039_v43 = vmul.f32 %v1021_v21, %v1010_v63  ;;  %v1064_v47 = vadd.f32 %v1050_v32, %v1035_v38  ;;  %v1038_v50 = vmul.f32 %v1017_v22, %v1009_v12  ;;  %v1063_v51 = vadd.f32 %v1046_v2, %v1034_v39  ;;  %v1247_v36 = vld [vmem:[#allocation9 + $0x4e0] sm:$0xff]  ;;  %v1248_v59 = vld [vmem:[#allocation9 + $0x4e8] sm:$0xff] }
 0x4a6   :  { %v1041_v52 = vmul.f32 %v1029_v24, %v1012_v40  ;;  %v1040_v1 = vmul.f32 %v1025_v25, %v1011_v42  ;;  %v1065_v53 = vadd.f32 %v1054_v37, %v1036_v4  ;;  %v1066_v57 = vadd.f32 %v1058_v15, %v1037_v41  ;;  %v1235_v25 = vld [vmem:[#allocation9 + $0x480] sm:$0xff]  ;;  %v1252_v55 = vld [vmem:[#allocation9 + $0x508] sm:$0xff] }
 0x4a7   :  { %v1068_v23 = vadd.f32 %v1050_v32, %v1039_v43  ;;  %v1067_v56 = vadd.f32 %v1046_v2, %v1038_v50  ;;  %v1072_v61 = vmax.f32 %v1064_v47, 0.0  ;;  %v1071_v3 = vmax.f32 %v1063_v51, 0.0  ;;  %v1259_v39 = vld [vmem:[#allocation9 + $0x540] sm:$0xff]  ;;  %v1260_v41 = vld [vmem:[#allocation9 + $0x548] sm:$0xff] }
 0x4a8   :  { %v1070_v58 = vadd.f32 %v1058_v15, %v1041_v52  ;;  %v1069_v60 = vadd.f32 %v1054_v37, %v1040_v1  ;;  %v1073_v18 = vmax.f32 %v1065_v53, 0.0  ;;  %v1074_v24 = vmax.f32 %v1066_v57, 0.0  ;;  %v1256_v15 = vld [vmem:[#allocation9 + $0x528] sm:$0xff]  ;;  %v1263_v40 = vld [vmem:[#allocation9 + $0x560] sm:$0xff] }
 0x4a9   :  { %v1076_v62 = vmax.f32 %v1068_v23, 0.0  ;;  %v1075_v5 = vmax.f32 %v1067_v56, 0.0  ;;  %v3267_v32 = vcombine.low %v1227_v8, %v1231_v14  ;;  %v3269_v2 = vcombine.low %v1228_v16, %v1232_v17  ;;  %v1264_v42 = vld [vmem:[#allocation9 + $0x568] sm:$0xff]  ;;  %v1267_v51 = vld [vmem:[#allocation9 + $0x580] sm:$0xff] }
 0x4aa   :  { %v1078_v9 = vmax.f32 %v1070_v58, 0.0  ;;  %v1077_v20 = vmax.f32 %v1069_v60, 0.0  ;;  %v3276_v33 = vcombine.high %v1235_v25, %v1239_v29  ;;  %v3278_v34 = vcombine.high %v1236_v30, %v1240_v31  ;;  %v1271_v52 = vld [vmem:[#allocation9 + $0x5a0] sm:$0xff]  ;;  %v1268_v1 = vld [vmem:[#allocation9 + $0x588] sm:$0xff] }
 0x4ab   :  { %v4006_v21 = vpack.c.bf16 %v1076_v62, %v1072_v61  ;;  %v4008_v22 = vpack.c.bf16 %v1075_v5, %v1071_v3  ;;  %v3275_v6 = vcombine.low %v1235_v25, %v1239_v29  ;;  %v3277_v44 = vcombine.low %v1236_v30, %v1240_v31  ;;  %v1272_v53 = vld [vmem:[#allocation9 + $0x5a8] sm:$0xff]  ;;  %v1275_v60 = vld [vmem:[#allocation9 + $0x5c0] sm:$0xff] }
 0x4ac   :  { %v4010_v26 = vpack.c.bf16 %v1077_v20, %v1073_v18  ;;  %v4016_v0 = vpack.c.bf16 %v1078_v9, %v1074_v24  ;;  %v3284_v45 = vcombine.high %v1243_v35, %v1247_v36  ;;  %v3283_v37 = vcombine.low %v1243_v35, %v1247_v36  ;;  %v1279_v61 = vld [vmem:[#allocation9 + $0x5e0] sm:$0xff]  ;;  %v1276_v62 = vld [vmem:[#allocation9 + $0x5c8] sm:$0xff] }
 0x4ad   :  { %2701 = vmatprep.mubr.bf16.mxu1 %v4006_v21  ;;  %2787 = vmatprep.mubr.bf16.mxu0 %v4006_v21  ;;  %v3285_v63 = vcombine.low %v1244_v54, %v1248_v59  ;;  %v3294_v12 = vcombine.high %v1252_v55, %v1256_v15  ;;  %v3293_v43 = vcombine.low %v1252_v55, %v1256_v15  ;;  %v1280_v3 = vld [vmem:[#allocation9 + $0x5e8] sm:$0xff]  ;;  %v1283_v16 = vld [vmem:[#allocation9 + $0x600] sm:$0xff] }
 0x4ae   :  { %2702 = vmatmul.mubr.bf16.vlgmr.msra.gmra.mrb[4].mxu1 %v4008_v22  ;;  %2788 = vmatmul.mubr.bf16.vlgmr.msra.gmra.mrb[8].mxu0 %v4008_v22  ;;  %v3300_v47 = vcombine.high %v1259_v39, %v1263_v40  ;;  %v3302_v50 = vcombine.high %v1260_v41, %v1264_v42  ;;  %v3299_v23 = vcombine.low %v1259_v39, %v1263_v40  ;;  %v1287_v17 = vld [vmem:[#allocation9 + $0x620] sm:$0xff]  ;;  %v1284_v18 = vld [vmem:[#allocation9 + $0x608] sm:$0xff] }
 0x4af   :  { %2713 = vmatpush1.bf16.msra.mxu1 %v3259_v46  ;;  %2799 = vmatpush1.bf16.msra.mxu0 %v3261_v49  ;;  %v3286_v46 = vcombine.high %v1244_v54, %v1248_v59  ;;  %v1255_v49 = vld [vmem:[#allocation9 + $0x520] sm:$0xff]  ;;  %v3301_v56 = vcombine.low %v1260_v41, %v1264_v42  ;;  %v3308_v57 = vcombine.high %v1267_v51, %v1271_v52  ;;  %v1288_v20 = vld [vmem:[#allocation9 + $0x628] sm:$0xff] }
 0x4b0   :  { %2744 = vmatprep.mubr.bf16.mxu1 %v4016_v0  ;;  %2830 = vmatprep.mubr.bf16.mxu0 %v4016_v0  ;;  %v3292_v38 = vcombine.high %v1251_v48, %v1255_v49  ;;  %v3291_v4 = vcombine.low %v1251_v48, %v1255_v49  ;;  %v3310_v58 = vcombine.high %v1268_v1, %v1272_v53  ;;  %v1291_v29 = vld [vmem:[#allocation9 + $0x640] sm:$0xff]  ;;  %v1292_v31 = vld [vmem:[#allocation9 + $0x648] sm:$0xff] }
 0x4b1   :  { %2714 = vmatprep.subr.bf16.mxu1 %v3268_v27  ;;  %2800 = vmatprep.subr.bf16.mxu0 %v3270_v28  ;;  %v3307_v5 = vcombine.low %v1267_v51, %v1271_v52  ;;  %v3309_v8 = vcombine.low %v1268_v1, %v1272_v53  ;;  %v3316_v9 = vcombine.high %v1275_v60, %v1279_v61  ;;  %v1295_v30 = vld [vmem:[#allocation9 + $0x660] sm:$0xff]  ;;  %v1300_v59 = vld [vmem:[#allocation9 + $0x688] sm:$0xff] }
 0x4b2   :  { %v3318_v14 = vcombine.high %v1276_v62, %v1280_v3  ;;  %v3315_v24 = vcombine.low %v1275_v60, %v1279_v61  ;;  %v3317_v25 = vcombine.low %v1276_v62, %v1280_v3  ;;  %v3324_v27 = vcombine.high %v1283_v16, %v1287_v17  ;;  %v1299_v36 = vld [vmem:[#allocation9 + $0x680] sm:$0xff]  ;;  %v1308_v15 = vld [vmem:[#allocation9 + $0x6c8] sm:$0xff] }
 0x4b3   :  { %2715 = vmatpush1.bf16.msra.mxu1 %v3267_v32  ;;  %2801 = vmatpush1.bf16.msra.mxu0 %v3269_v2  ;;  %v3326_v28 = vcombine.high %v1284_v18, %v1288_v20  ;;  %v1296_v32 = vld [vmem:[#allocation9 + $0x668] sm:$0xff]  ;;  %v3323_v2 = vcombine.low %v1283_v16, %v1287_v17  ;;  %v1303_v54 = vld [vmem:[#allocation9 + $0x6a0] sm:$0xff] }
 0x4b4   :  { %2716 = vmatprep.subr.bf16.mxu1 %v3276_v33  ;;  %2802 = vmatprep.subr.bf16.mxu0 %v3278_v34  ;;  %v3325_v33 = vcombine.low %v1284_v18, %v1288_v20  ;;  %v3332_v34 = vcombine.high %v1291_v29, %v1295_v30  ;;  %v3334_v35 = vcombine.high %v1292_v31, %v1296_v32  ;;  %v1307_v49 = vld [vmem:[#allocation9 + $0x6c0] sm:$0xff]  ;;  %v1316_v42 = vld [vmem:[#allocation9 + $0x708] sm:$0xff] }
 0x4b5   :  { %v1311_v55 = vld [vmem:[#allocation9 + $0x6e0] sm:$0xff]  ;;  %v1324_v53 = vld [vmem:[#allocation9 + $0x748] sm:$0xff] }
 0x4b6   :  { %v1315_v40 = vld [vmem:[#allocation9 + $0x700] sm:$0xff]  ;;  %v1332_v3 = vld [vmem:[#allocation9 + $0x788] sm:$0xff] }
 0x4b7   :  { %2717 = vmatpush1.bf16.msra.mxu1 %v3275_v6  ;;  %2803 = vmatpush1.bf16.msra.mxu0 %v3277_v44  ;;  %v1304_v6 = vld [vmem:[#allocation9 + $0x6a8] sm:$0xff]  ;;  %v3331_v44 = vcombine.low %v1291_v29, %v1295_v30  ;;  %v1319_v41 = vld [vmem:[#allocation9 + $0x720] sm:$0xff]  ;;  %v1093_v30 = vld [vmem:[#allocation9 + $0x10] sm:$0xff] }
 0x4b8   :  { %2718 = vmatprep.subr.bf16.mxu1 %v3284_v45  ;;  %2804 = vmatprep.subr.bf16.mxu0 %v3286_v46  ;;  %v3333_v45 = vcombine.low %v1292_v31, %v1296_v32  ;;  %v3340_v46 = vcombine.high %v1299_v36, %v1303_v54  ;;  %v3342_v48 = vcombine.high %v1300_v59, %v1304_v6  ;;  %v1323_v52 = vld [vmem:[#allocation9 + $0x740] sm:$0xff]  ;;  %v1340_v20 = vld [vmem:[#allocation9 + $0x7c8] sm:$0xff]  ;;  %v1097_v31 = vld [vmem:[#allocation9 + $0x30] sm:$0xff] }
 0x4b9   :  { %v1327_v1 = vld [vmem:[#allocation9 + $0x760] sm:$0xff]  ;;  %v1094_v32 = vld [vmem:[#allocation9 + $0x18] sm:$0xff] }
 0x4ba   :  { %v1331_v61 = vld [vmem:[#allocation9 + $0x780] sm:$0xff] }
 0x4bb   :  { %2719 = vmatpush1.bf16.msra.mxu1 %v3283_v37  ;;  %2805 = vmatpush1.bf16.msra.mxu0 %v3285_v63  ;;  %v1312_v37 = vld [vmem:[#allocation9 + $0x6e8] sm:$0xff]  ;;  %v3339_v63 = vcombine.low %v1299_v36, %v1303_v54  ;;  %v1335_v62 = vld [vmem:[#allocation9 + $0x7a0] sm:$0xff]  ;;  %v1101_v54 = vld [vmem:[#allocation9 + $0x50] sm:$0xff] }
 0x4bc   :  { %2720 = vmatprep.subr.bf16.mxu1 %v3292_v38  ;;  %2806 = vmatprep.subr.bf16.mxu0 %v3294_v12  ;;  %v3341_v38 = vcombine.low %v1300_v59, %v1304_v6  ;;  %v3348_v12 = vcombine.high %v1307_v49, %v1311_v55  ;;  %v3350_v39 = vcombine.high %v1308_v15, %v1312_v37  ;;  %v1339_v17 = vld [vmem:[#allocation9 + $0x7c0] sm:$0xff]  ;;  %v1105_v59 = vld [vmem:[#allocation9 + $0x70] sm:$0xff]  ;;  %v1102_v6 = vld [vmem:[#allocation9 + $0x58] sm:$0xff] }
 0x4bd   :  { %v1343_v18 = vld [vmem:[#allocation9 + $0x7e0] sm:$0xff] }
 0x4bf   :  { %2721 = vmatpush1.bf16.msra.mxu1 %v3291_v4  ;;  %2807 = vmatpush1.bf16.msra.mxu0 %v3293_v43  ;;  %v1320_v4 = vld [vmem:[#allocation9 + $0x728] sm:$0xff]  ;;  %v3347_v43 = vcombine.low %v1307_v49, %v1311_v55  ;;  %v1109_v55 = vld [vmem:[#allocation9 + $0x90] sm:$0xff] }
 0x4c0   :  { %2722 = vmatprep.subr.bf16.mxu1 %v3300_v47  ;;  %2808 = vmatprep.subr.bf16.mxu0 %v3302_v50  ;;  %v3349_v47 = vcombine.low %v1308_v15, %v1312_v37  ;;  %v3356_v50 = vcombine.high %v1315_v40, %v1319_v41  ;;  %v3358_v51 = vcombine.high %v1316_v42, %v1320_v4  ;;  %v1113_v15 = vld [vmem:[#allocation9 + $0xb0] sm:$0xff]  ;;  %v1110_v37 = vld [vmem:[#allocation9 + $0x98] sm:$0xff] }
 0x4c3   :  { %2723 = vmatpush1.bf16.msra.mxu1 %v3299_v23  ;;  %2809 = vmatpush1.bf16.msra.mxu0 %v3301_v56  ;;  %v1328_v23 = vld [vmem:[#allocation9 + $0x768] sm:$0xff]  ;;  %v3355_v56 = vcombine.low %v1315_v40, %v1319_v41  ;;  %v1117_v41 = vld [vmem:[#allocation9 + $0xd0] sm:$0xff] }
 0x4c4   :  { %2724 = vmatprep.subr.bf16.mxu1 %v3308_v57  ;;  %2810 = vmatprep.subr.bf16.mxu0 %v3310_v58  ;;  %v3357_v57 = vcombine.low %v1316_v42, %v1320_v4  ;;  %v3364_v58 = vcombine.high %v1323_v52, %v1327_v1  ;;  %v3366_v60 = vcombine.high %v1324_v53, %v1328_v23  ;;  %v1121_v42 = vld [vmem:[#allocation9 + $0xf0] sm:$0xff]  ;;  %v1118_v4 = vld [vmem:[#allocation9 + $0xd8] sm:$0xff] }
 0x4c7   :  { %2725 = vmatpush1.bf16.msra.mxu1 %v3307_v5  ;;  %2811 = vmatpush1.bf16.msra.mxu0 %v3309_v8  ;;  %v1336_v5 = vld [vmem:[#allocation9 + $0x7a8] sm:$0xff]  ;;  %v3363_v8 = vcombine.low %v1323_v52, %v1327_v1  ;;  %v1125_v1 = vld [vmem:[#allocation9 + $0x110] sm:$0xff] }
 0x4c8   :  { %2726 = vmatprep.subr.bf16.mxu1 %v3316_v9  ;;  %2812 = vmatprep.subr.bf16.mxu0 %v3318_v14  ;;  %v3365_v9 = vcombine.low %v1324_v53, %v1328_v23  ;;  %v3372_v14 = vcombine.high %v1331_v61, %v1335_v62  ;;  %v3374_v16 = vcombine.high %v1332_v3, %v1336_v5  ;;  %v1129_v53 = vld [vmem:[#allocation9 + $0x130] sm:$0xff]  ;;  %v1130_v23 = vld [vmem:[#allocation9 + $0x138] sm:$0xff] }
 0x4cb   :  { %2727 = vmatpush1.bf16.msra.mxu1 %v3315_v24  ;;  %2813 = vmatpush1.bf16.msra.mxu0 %v3317_v25  ;;  %v1344_v24 = vld [vmem:[#allocation9 + $0x7e8] sm:$0xff]  ;;  %v3371_v25 = vcombine.low %v1331_v61, %v1335_v62  ;;  %v1133_v61 = vld [vmem:[#allocation9 + $0x150] sm:$0xff] }
 0x4cc   :  { %2728 = vmatprep.subr.bf16.mxu1 %v3324_v27  ;;  %2814 = vmatprep.subr.bf16.mxu0 %v3326_v28  ;;  %v3373_v27 = vcombine.low %v1332_v3, %v1336_v5  ;;  %v3380_v28 = vcombine.high %v1339_v17, %v1343_v18  ;;  %v3382_v29 = vcombine.high %v1340_v20, %v1344_v24  ;;  %v1137_v62 = vld [vmem:[#allocation9 + $0x170] sm:$0xff]  ;;  %v1134_v3 = vld [vmem:[#allocation9 + $0x158] sm:$0xff] }
 0x4cd   :  { %v1138_v5 = vld [vmem:[#allocation9 + $0x178] sm:$0xff] }
 0x4cf   :  { %2729 = vmatpush1.bf16.msra.mxu1 %v3323_v2  ;;  %2815 = vmatpush1.bf16.msra.mxu0 %v3325_v33  ;;  %v1098_v2 = vld [vmem:[#allocation9 + $0x38] sm:$0xff]  ;;  %v3379_v33 = vcombine.low %v1339_v17, %v1343_v18  ;;  %v1141_v17 = vld [vmem:[#allocation9 + $0x190] sm:$0xff] }
 0x4d0   :  { %2730 = vmatprep.subr.bf16.mxu1 %v3332_v34  ;;  %2816 = vmatprep.subr.bf16.mxu0 %v3334_v35  ;;  %v3381_v34 = vcombine.low %v1340_v20, %v1344_v24  ;;  %v3136_v35 = vcombine.high %v1093_v30, %v1097_v31  ;;  %v3138_v36 = vcombine.high %v1094_v32, %v1098_v2  ;;  %v1145_v18 = vld [vmem:[#allocation9 + $0x1b0] sm:$0xff]  ;;  %v1142_v20 = vld [vmem:[#allocation9 + $0x198] sm:$0xff] }
 0x4d1   :  { %v1146_v24 = vld [vmem:[#allocation9 + $0x1b8] sm:$0xff] }
 0x4d3   :  { %2731 = vmatpush1.bf16.msra.mxu1 %v3331_v44  ;;  %2817 = vmatpush1.bf16.msra.mxu0 %v3333_v45  ;;  %v1106_v44 = vld [vmem:[#allocation9 + $0x78] sm:$0xff]  ;;  %v3135_v45 = vcombine.low %v1093_v30, %v1097_v31  ;;  %v1149_v30 = vld [vmem:[#allocation9 + $0x1d0] sm:$0xff] }
 0x4d4   :  { %2732 = vmatprep.subr.bf16.mxu1 %v3340_v46  ;;  %2818 = vmatprep.subr.bf16.mxu0 %v3342_v48  ;;  %v3137_v46 = vcombine.low %v1094_v32, %v1098_v2  ;;  %v3144_v48 = vcombine.high %v1101_v54, %v1105_v59  ;;  %v3146_v49 = vcombine.high %v1102_v6, %v1106_v44  ;;  %v1153_v31 = vld [vmem:[#allocation9 + $0x1f0] sm:$0xff]  ;;  %v1150_v32 = vld [vmem:[#allocation9 + $0x1d8] sm:$0xff] }
 0x4d5   :  { %v1154_v2 = vld [vmem:[#allocation9 + $0x1f8] sm:$0xff] }
 0x4d7   :  { %2733 = vmatpush1.bf16.msra.mxu1 %v3339_v63  ;;  %2819 = vmatpush1.bf16.msra.mxu0 %v3341_v38  ;;  %v1114_v63 = vld [vmem:[#allocation9 + $0xb8] sm:$0xff]  ;;  %v3143_v38 = vcombine.low %v1101_v54, %v1105_v59  ;;  %v1157_v54 = vld [vmem:[#allocation9 + $0x210] sm:$0xff] }
 0x4d8   :  { %2734 = vmatprep.subr.bf16.mxu1 %v3348_v12  ;;  %2820 = vmatprep.subr.bf16.mxu0 %v3350_v39  ;;  %v3145_v12 = vcombine.low %v1102_v6, %v1106_v44  ;;  %v3152_v39 = vcombine.high %v1109_v55, %v1113_v15  ;;  %v3154_v40 = vcombine.high %v1110_v37, %v1114_v63  ;;  %v1161_v59 = vld [vmem:[#allocation9 + $0x230] sm:$0xff]  ;;  %v1158_v6 = vld [vmem:[#allocation9 + $0x218] sm:$0xff] }
 0x4d9   :  { %v1162_v44 = vld [vmem:[#allocation9 + $0x238] sm:$0xff] }
 0x4db   :  { %2735 = vmatpush1.bf16.msra.mxu1 %v3347_v43  ;;  %2821 = vmatpush1.bf16.msra.mxu0 %v3349_v47  ;;  %v1122_v43 = vld [vmem:[#allocation9 + $0xf8] sm:$0xff]  ;;  %v3151_v47 = vcombine.low %v1109_v55, %v1113_v15  ;;  %v1165_v55 = vld [vmem:[#allocation9 + $0x250] sm:$0xff] }
 0x4dc   :  { %2736 = vmatprep.subr.bf16.mxu1 %v3356_v50  ;;  %2822 = vmatprep.subr.bf16.mxu0 %v3358_v51  ;;  %v3153_v50 = vcombine.low %v1110_v37, %v1114_v63  ;;  %v3160_v51 = vcombine.high %v1117_v41, %v1121_v42  ;;  %v3162_v52 = vcombine.high %v1118_v4, %v1122_v43  ;;  %v1169_v15 = vld [vmem:[#allocation9 + $0x270] sm:$0xff]  ;;  %v1166_v37 = vld [vmem:[#allocation9 + $0x258] sm:$0xff] }
 0x4dd   :  { %v1170_v63 = vld [vmem:[#allocation9 + $0x278] sm:$0xff] }
 0x4df   :  { %2737 = vmatpush1.bf16.msra.mxu1 %v3355_v56  ;;  %2823 = vmatpush1.bf16.msra.mxu0 %v3357_v57  ;;  %v3159_v56 = vcombine.low %v1117_v41, %v1121_v42  ;;  %v3161_v57 = vcombine.low %v1118_v4, %v1122_v43  ;;  %v1173_v41 = vld [vmem:[#allocation9 + $0x290] sm:$0xff]  ;;  %v1174_v4 = vld [vmem:[#allocation9 + $0x298] sm:$0xff] }
 0x4e0   :  { %2738 = vmatprep.subr.bf16.mxu1 %v3364_v58  ;;  %2824 = vmatprep.subr.bf16.mxu0 %v3366_v60  ;;  %v3168_v58 = vcombine.high %v1125_v1, %v1129_v53  ;;  %v1177_v42 = vld [vmem:[#allocation9 + $0x2b0] sm:$0xff]  ;;  %v1178_v43 = vld [vmem:[#allocation9 + $0x2b8] sm:$0xff] }
 0x4e3   :  { %2739 = vmatpush1.bf16.msra.mxu1 %v3363_v8  ;;  %2825 = vmatpush1.bf16.msra.mxu0 %v3365_v9  ;;  %v3167_v8 = vcombine.low %v1125_v1, %v1129_v53  ;;  %v1181_v1 = vld [vmem:[#allocation9 + $0x2d0] sm:$0xff] }
 0x4e4   :  { %2740 = vmatprep.subr.bf16.mxu1 %v3372_v14  ;;  %2826 = vmatprep.subr.bf16.mxu0 %v3374_v16  ;;  %v3176_v14 = vcombine.high %v1133_v61, %v1137_v62  ;;  %v3178_v16 = vcombine.high %v1134_v3, %v1138_v5  ;;  %v1185_v53 = vld [vmem:[#allocation9 + $0x2f0] sm:$0xff] }
 0x4e7   :  { %2741 = vmatpush1.bf16.msra.mxu1 %v3371_v25  ;;  %2827 = vmatpush1.bf16.msra.mxu0 %v3373_v27  ;;  %v3175_v25 = vcombine.low %v1133_v61, %v1137_v62  ;;  %v3177_v27 = vcombine.low %v1134_v3, %v1138_v5  ;;  %v1189_v61 = vld [vmem:[#allocation9 + $0x310] sm:$0xff]  ;;  %v1190_v3 = vld [vmem:[#allocation9 + $0x318] sm:$0xff] }
 0x4e8   :  { %2742 = vmatprep.subr.bf16.mxu1 %v3380_v28  ;;  %2828 = vmatprep.subr.bf16.mxu0 %v3382_v29  ;;  %v3184_v28 = vcombine.high %v1141_v17, %v1145_v18  ;;  %v3186_v29 = vcombine.high %v1142_v20, %v1146_v24  ;;  %v1193_v62 = vld [vmem:[#allocation9 + $0x330] sm:$0xff]  ;;  %v1194_v5 = vld [vmem:[#allocation9 + $0x338] sm:$0xff] }
 0x4eb   :  { %2743 = vmatpush1.bf16.msra.mxu1 %v3379_v33  ;;  %2829 = vmatpush1.bf16.msra.mxu0 %v3381_v34  ;;  %v3183_v33 = vcombine.low %v1141_v17, %v1145_v18  ;;  %v3185_v34 = vcombine.low %v1142_v20, %v1146_v24  ;;  %v1197_v17 = vld [vmem:[#allocation9 + $0x350] sm:$0xff]  ;;  %v1198_v20 = vld [vmem:[#allocation9 + $0x358] sm:$0xff] }
 0x4ec   :  { %2841 = vmatprep.subr.bf16.mxu1 %v3136_v35  ;;  %2927 = vmatprep.subr.bf16.mxu0 %v3138_v36  ;;  %v3192_v35 = vcombine.high %v1149_v30, %v1153_v31  ;;  %v3194_v36 = vcombine.high %v1150_v32, %v1154_v2  ;;  %v1201_v18 = vld [vmem:[#allocation9 + $0x370] sm:$0xff]  ;;  %v1202_v24 = vld [vmem:[#allocation9 + $0x378] sm:$0xff] }
 0x4ee   :  { %2745 = vmatmul.mubr.bf16.vlgmr.msra.gmra.mrb[4].mxu1 %v4010_v26  ;;  %2831 = vmatmul.mubr.bf16.vlgmr.msra.gmra.mrb[8].mxu0 %v4010_v26 }
 0x4ef   :  { %2842 = vmatpush1.bf16.msra.mxu1 %v3135_v45  ;;  %2873 = vmatprep.mubr.bf16.mxu1 %v4006_v21  ;;  %v3191_v45 = vcombine.low %v1149_v30, %v1153_v31  ;;  %v1205_v30 = vld [vmem:[#allocation9 + $0x390] sm:$0xff] }
 0x4f0   :  { %2928 = vmatpush1.bf16.msra.mxu0 %v3137_v46  ;;  %2959 = vmatprep.mubr.bf16.mxu0 %v4006_v21  ;;  %v1126_v21 = vld [vmem:[#allocation9 + $0x118] sm:$0xff]  ;;  %v3193_v46 = vcombine.low %v1150_v32, %v1154_v2  ;;  %v1209_v31 = vld [vmem:[#allocation9 + $0x3b0] sm:$0xff] }
 0x4f1   :  { %2843 = vmatprep.subr.bf16.mxu1 %v3144_v48  ;;  %2929 = vmatprep.subr.bf16.mxu0 %v3146_v49  ;;  %v3170_v60 = vcombine.high %v1126_v21, %v1130_v23  ;;  %v3169_v9 = vcombine.low %v1126_v21, %v1130_v23  ;;  %v3200_v48 = vcombine.high %v1157_v54, %v1161_v59  ;;  %v1182_v21 = vld [vmem:[#allocation9 + $0x2d8] sm:$0xff] }
 0x4f2   :  { %v3202_v49 = vcombine.high %v1158_v6, %v1162_v44  ;;  %v1186_v23 = vld [vmem:[#allocation9 + $0x2f8] sm:$0xff] }
 0x4f3   :  { %2844 = vmatpush1.bf16.msra.mxu1 %v3143_v38  ;;  %v3199_v38 = vcombine.low %v1157_v54, %v1161_v59  ;;  %v1206_v32 = vld [vmem:[#allocation9 + $0x398] sm:$0xff]  ;;  %v1213_v54 = vld [vmem:[#allocation9 + $0x3d0] sm:$0xff] }
 0x4f4   :  { %2930 = vmatpush1.bf16.msra.mxu0 %v3145_v12  ;;  %2845 = vmatprep.subr.bf16.mxu1 %v3152_v39  ;;  %v3201_v12 = vcombine.low %v1158_v6, %v1162_v44  ;;  %v3208_v39 = vcombine.high %v1165_v55, %v1169_v15  ;;  %v1210_v2 = vld [vmem:[#allocation9 + $0x3b8] sm:$0xff]  ;;  %v1217_v59 = vld [vmem:[#allocation9 + $0x3f0] sm:$0xff] }
 0x4f5   :  { %2931 = vmatprep.subr.bf16.mxu0 %v3154_v40  ;;  %v3210_v40 = vcombine.high %v1166_v37, %v1170_v63  ;;  %v1214_v6 = vld [vmem:[#allocation9 + $0x3d8] sm:$0xff] }
 0x4f6   :  { %v1218_v44 = vld [vmem:[#allocation9 + $0x3f8] sm:$0xff] }
 0x4f7   :  { %2846 = vmatpush1.bf16.msra.mxu1 %v3151_v47  ;;  %v3207_v47 = vcombine.low %v1165_v55, %v1169_v15  ;;  %v1221_v55 = vld [vmem:[#allocation9 + $0x410] sm:$0xff] }
 0x4f8   :  { %2932 = vmatpush1.bf16.msra.mxu0 %v3153_v50  ;;  %2847 = vmatprep.subr.bf16.mxu1 %v3160_v51  ;;  %v3209_v50 = vcombine.low %v1166_v37, %v1170_v63  ;;  %v3216_v51 = vcombine.high %v1173_v41, %v1177_v42  ;;  %v1225_v15 = vld [vmem:[#allocation9 + $0x430] sm:$0xff]  ;;  %v1222_v37 = vld [vmem:[#allocation9 + $0x418] sm:$0xff] }
 0x4f9   :  { %2933 = vmatprep.subr.bf16.mxu0 %v3162_v52  ;;  %v3218_v52 = vcombine.high %v1174_v4, %v1178_v43  ;;  %v1226_v63 = vld [vmem:[#allocation9 + $0x438] sm:$0xff] }
 0x4fb   :  { %2848 = vmatpush1.bf16.msra.mxu1 %v3159_v56  ;;  %v3215_v56 = vcombine.low %v1173_v41, %v1177_v42  ;;  %v1229_v41 = vld [vmem:[#allocation9 + $0x450] sm:$0xff] }
 0x4fc   :  { %2934 = vmatpush1.bf16.msra.mxu0 %v3161_v57  ;;  %2849 = vmatprep.subr.bf16.mxu1 %v3168_v58  ;;  %v3217_v57 = vcombine.low %v1174_v4, %v1178_v43  ;;  %v3224_v58 = vcombine.high %v1181_v1, %v1185_v53  ;;  %v1233_v42 = vld [vmem:[#allocation9 + $0x470] sm:$0xff]  ;;  %v3263_v4 = vcombine.low %v1221_v55, %v1225_v15  ;;  %v1230_v43 = vld [vmem:[#allocation9 + $0x458] sm:$0xff] }
 0x4fd   :  { %2935 = vmatprep.subr.bf16.mxu0 %v3170_v60  ;;  %v3226_v60 = vcombine.high %v1182_v21, %v1186_v23 }
 0x4ff   :  { %2850 = vmatpush1.bf16.msra.mxu1 %v3167_v8  ;;  %v3223_v8 = vcombine.low %v1181_v1, %v1185_v53  ;;  %v1241_v1 = vld [vmem:[#allocation9 + $0x4b0] sm:$0xff] }
 0x500   :  { %2936 = vmatpush1.bf16.msra.mxu0 %v3169_v9  ;;  %2851 = vmatprep.subr.bf16.mxu1 %v3176_v14  ;;  %v3225_v9 = vcombine.low %v1182_v21, %v1186_v23  ;;  %v3232_v14 = vcombine.high %v1189_v61, %v1193_v62  ;;  %v1238_v21 = vld [vmem:[#allocation9 + $0x498] sm:$0xff] }
 0x501   :  { %2937 = vmatprep.subr.bf16.mxu0 %v3178_v16  ;;  %v3234_v16 = vcombine.high %v1190_v3, %v1194_v5  ;;  %v1242_v23 = vld [vmem:[#allocation9 + $0x4b8] sm:$0xff] }
 0x503   :  { %2852 = vmatpush1.bf16.msra.mxu1 %v3175_v25  ;;  %v3231_v25 = vcombine.low %v1189_v61, %v1193_v62  ;;  %v1245_v61 = vld [vmem:[#allocation9 + $0x4d0] sm:$0xff] }
 0x504   :  { %2938 = vmatpush1.bf16.msra.mxu0 %v3177_v27  ;;  %2853 = vmatprep.subr.bf16.mxu1 %v3184_v28  ;;  %v3233_v27 = vcombine.low %v1190_v3, %v1194_v5  ;;  %v3240_v28 = vcombine.high %v1197_v17, %v1201_v18  ;;  %v1249_v62 = vld [vmem:[#allocation9 + $0x4f0] sm:$0xff]  ;;  %v1246_v3 = vld [vmem:[#allocation9 + $0x4d8] sm:$0xff] }
 0x505   :  { %2939 = vmatprep.subr.bf16.mxu0 %v3186_v29  ;;  %v3242_v29 = vcombine.high %v1198_v20, %v1202_v24  ;;  %v1250_v5 = vld [vmem:[#allocation9 + $0x4f8] sm:$0xff] }
 0x507   :  { %2854 = vmatpush1.bf16.msra.mxu1 %v3183_v33  ;;  %v3239_v33 = vcombine.low %v1197_v17, %v1201_v18  ;;  %v1257_v17 = vld [vmem:[#allocation9 + $0x530] sm:$0xff]  ;;  %v1254_v18 = vld [vmem:[#allocation9 + $0x518] sm:$0xff] }
 0x508   :  { %2940 = vmatpush1.bf16.msra.mxu0 %v3185_v34  ;;  %2855 = vmatprep.subr.bf16.mxu1 %v3192_v35  ;;  %v3241_v34 = vcombine.low %v1198_v20, %v1202_v24  ;;  %v3248_v35 = vcombine.high %v1205_v30, %v1209_v31  ;;  %v1258_v20 = vld [vmem:[#allocation9 + $0x538] sm:$0xff]  ;;  %v3289_v24 = vcombine.low %v1246_v3, %v1250_v5 }
 0x509   :  { %2941 = vmatprep.subr.bf16.mxu0 %v3194_v36  ;;  %v3250_v36 = vcombine.high %v1206_v32, %v1210_v2 }
 0x50b   :  { %2856 = vmatpush1.bf16.msra.mxu1 %v3191_v45  ;;  %v3247_v45 = vcombine.low %v1205_v30, %v1209_v31  ;;  %v1262_v30 = vld [vmem:[#allocation9 + $0x558] sm:$0xff] }
 0x50c   :  { %2942 = vmatpush1.bf16.msra.mxu0 %v3193_v46  ;;  %2857 = vmatprep.subr.bf16.mxu1 %v3200_v48  ;;  %v3249_v46 = vcombine.low %v1206_v32, %v1210_v2  ;;  %v3256_v48 = vcombine.high %v1213_v54, %v1217_v59  ;;  %v1266_v31 = vld [vmem:[#allocation9 + $0x578] sm:$0xff]  ;;  %v3297_v2 = vcombine.low %v1254_v18, %v1258_v20 }
 0x50d   :  { %2943 = vmatprep.subr.bf16.mxu0 %v3202_v49  ;;  %v3258_v49 = vcombine.high %v1214_v6, %v1218_v44 }
 0x50f   :  { %2858 = vmatpush1.bf16.msra.mxu1 %v3199_v38  ;;  %v3255_v38 = vcombine.low %v1213_v54, %v1217_v59  ;;  %v1270_v54 = vld [vmem:[#allocation9 + $0x598] sm:$0xff] }
 0x510   :  { %2944 = vmatpush1.bf16.msra.mxu0 %v3201_v12  ;;  %2859 = vmatprep.subr.bf16.mxu1 %v3208_v39  ;;  %v3257_v12 = vcombine.low %v1214_v6, %v1218_v44  ;;  %v3264_v39 = vcombine.high %v1221_v55, %v1225_v15  ;;  %v1274_v59 = vld [vmem:[#allocation9 + $0x5b8] sm:$0xff]  ;;  %v3305_v44 = vcombine.low %v1262_v30, %v1266_v31 }
 0x511   :  { %2945 = vmatprep.subr.bf16.mxu0 %v3210_v40  ;;  %v3266_v40 = vcombine.high %v1222_v37, %v1226_v63  ;;  %v1278_v55 = vld [vmem:[#allocation9 + $0x5d8] sm:$0xff] }
 0x512   :  { %v1282_v15 = vld [vmem:[#allocation9 + $0x5f8] sm:$0xff] }
 0x513   :  { %2860 = vmatpush1.bf16.msra.mxu1 %v3207_v47  ;;  %v1234_v47 = vld [vmem:[#allocation9 + $0x478] sm:$0xff] }
 0x514   :  { %2946 = vmatpush1.bf16.msra.mxu0 %v3209_v50  ;;  %2861 = vmatprep.subr.bf16.mxu1 %v3216_v51  ;;  %v3265_v50 = vcombine.low %v1222_v37, %v1226_v63  ;;  %v3272_v51 = vcombine.high %v1229_v41, %v1233_v42  ;;  %v3274_v53 = vcombine.high %v1230_v43, %v1234_v47 }
 0x515   :  { %2947 = vmatprep.subr.bf16.mxu0 %v3218_v52  ;;  %v1237_v52 = vld [vmem:[#allocation9 + $0x490] sm:$0xff]  ;;  %v3313_v63 = vcombine.low %v1270_v54, %v1274_v59 }
 0x517   :  { %2862 = vmatpush1.bf16.msra.mxu1 %v3215_v56  ;;  %v3271_v56 = vcombine.low %v1229_v41, %v1233_v42  ;;  %v1286_v41 = vld [vmem:[#allocation9 + $0x618] sm:$0xff] }
 0x518   :  { %2948 = vmatpush1.bf16.msra.mxu0 %v3217_v57  ;;  %2863 = vmatprep.subr.bf16.mxu1 %v3224_v58  ;;  %v3273_v57 = vcombine.low %v1230_v43, %v1234_v47  ;;  %v3280_v58 = vcombine.high %v1237_v52, %v1241_v1  ;;  %v1290_v42 = vld [vmem:[#allocation9 + $0x638] sm:$0xff]  ;;  %v3321_v43 = vcombine.low %v1278_v55, %v1282_v15 }
 0x519   :  { %2949 = vmatprep.subr.bf16.mxu0 %v3226_v60  ;;  %v3282_v60 = vcombine.high %v1238_v21, %v1242_v23 }
 0x51b   :  { %2864 = vmatpush1.bf16.msra.mxu1 %v3223_v8  ;;  %v3279_v8 = vcombine.low %v1237_v52, %v1241_v1  ;;  %v1297_v52 = vld [vmem:[#allocation9 + $0x670] sm:$0xff]  ;;  %v1294_v1 = vld [vmem:[#allocation9 + $0x658] sm:$0xff] }
 0x51c   :  { %2950 = vmatpush1.bf16.msra.mxu0 %v3225_v9  ;;  %2865 = vmatprep.subr.bf16.mxu1 %v3232_v14  ;;  %v3288_v9 = vcombine.high %v1245_v61, %v1249_v62  ;;  %v3290_v14 = vcombine.high %v1246_v3, %v1250_v5 }
 0x51d   :  { %2951 = vmatprep.subr.bf16.mxu0 %v3234_v16  ;;  %v1253_v16 = vld [vmem:[#allocation9 + $0x510] sm:$0xff] }
 0x51e   :  { %v3295_v32 = vcombine.low %v1253_v16, %v1257_v17 }
 0x51f   :  { %2866 = vmatpush1.bf16.msra.mxu1 %v3231_v25  ;;  %v3296_v25 = vcombine.high %v1253_v16, %v1257_v17  ;;  %v1310_v16 = vld [vmem:[#allocation9 + $0x6d8] sm:$0xff] }
 0x520   :  { %2952 = vmatpush1.bf16.msra.mxu0 %v3233_v27  ;;  %2867 = vmatprep.subr.bf16.mxu1 %v3240_v28  ;;  %v3298_v27 = vcombine.high %v1254_v18, %v1258_v20  ;;  %v1261_v28 = vld [vmem:[#allocation9 + $0x550] sm:$0xff]  ;;  %v1314_v17 = vld [vmem:[#allocation9 + $0x6f8] sm:$0xff] }
 0x521   :  { %2953 = vmatprep.subr.bf16.mxu0 %v3242_v29  ;;  %v1265_v29 = vld [vmem:[#allocation9 + $0x570] sm:$0xff] }
 0x522   :  { %v3303_v6 = vcombine.low %v1261_v28, %v1265_v29 }
 0x523   :  { %2868 = vmatpush1.bf16.msra.mxu1 %v3239_v33  ;;  %v3304_v33 = vcombine.high %v1261_v28, %v1265_v29  ;;  %v1318_v28 = vld [vmem:[#allocation9 + $0x718] sm:$0xff] }
 0x524   :  { %2954 = vmatpush1.bf16.msra.mxu0 %v3241_v34  ;;  %2869 = vmatprep.subr.bf16.mxu1 %v3248_v35  ;;  %v3306_v34 = vcombine.high %v1262_v30, %v1266_v31  ;;  %v1269_v35 = vld [vmem:[#allocation9 + $0x590] sm:$0xff]  ;;  %v1322_v29 = vld [vmem:[#allocation9 + $0x738] sm:$0xff]  ;;  %v3353_v31 = vcombine.low %v1310_v16, %v1314_v17 }
 0x525   :  { %2955 = vmatprep.subr.bf16.mxu0 %v3250_v36  ;;  %v1273_v36 = vld [vmem:[#allocation9 + $0x5b0] sm:$0xff] }
 0x526   :  { %v3311_v37 = vcombine.low %v1269_v35, %v1273_v36 }
 0x527   :  { %2870 = vmatpush1.bf16.msra.mxu1 %v3247_v45  ;;  %v3312_v45 = vcombine.high %v1269_v35, %v1273_v36  ;;  %v1326_v35 = vld [vmem:[#allocation9 + $0x758] sm:$0xff] }
 0x528   :  { %2956 = vmatpush1.bf16.msra.mxu0 %v3249_v46  ;;  %2871 = vmatprep.subr.bf16.mxu1 %v3256_v48  ;;  %v3314_v46 = vcombine.high %v1270_v54, %v1274_v59  ;;  %v1277_v48 = vld [vmem:[#allocation9 + $0x5d0] sm:$0xff]  ;;  %v1330_v36 = vld [vmem:[#allocation9 + $0x778] sm:$0xff]  ;;  %v3361_v59 = vcombine.low %v1318_v28, %v1322_v29 }
 0x529   :  { %2957 = vmatprep.subr.bf16.mxu0 %v3258_v49  ;;  %v1281_v49 = vld [vmem:[#allocation9 + $0x5f0] sm:$0xff] }
 0x52b   :  { %2872 = vmatpush1.bf16.msra.mxu1 %v3255_v38  ;;  %v3320_v38 = vcombine.high %v1277_v48, %v1281_v49 }
 0x52c   :  { %2958 = vmatpush1.bf16.msra.mxu0 %v3257_v12  ;;  %2884 = vmatprep.subr.bf16.mxu1 %v3264_v39  ;;  %v3322_v12 = vcombine.high %v1278_v55, %v1282_v15  ;;  %v1285_v39 = vld [vmem:[#allocation9 + $0x610] sm:$0xff]  ;;  %v3369_v15 = vcombine.low %v1326_v35, %v1330_v36 }
 0x52d   :  { %2970 = vmatprep.subr.bf16.mxu0 %v3266_v40  ;;  %v1289_v40 = vld [vmem:[#allocation9 + $0x630] sm:$0xff] }
 0x52e   :  { %2874 = vmatmul.mubr.bf16.vlgmr.msra.gmra.mrb[8].mxu1 %v4008_v22  ;;  %v3328_v47 = vcombine.high %v1285_v39, %v1289_v40 }
 0x52f   :  { %2960 = vmatmul.mubr.bf16.vlgmr.msra.gmra.mrb[12].mxu0 %v4008_v22  ;;  %2885 = vmatpush1.bf16.msra.mxu1 %v3263_v4  ;;  %v3281_v22 = vcombine.low %v1238_v21, %v1242_v23  ;;  %v3319_v4 = vcombine.low %v1277_v48, %v1281_v49  ;;  %v3327_v21 = vcombine.low %v1285_v39, %v1289_v40  ;;  %v1334_v48 = vld [vmem:[#allocation9 + $0x798] sm:$0xff] }
 0x530   :  { %2916 = vmatprep.mubr.bf16.mxu1 %v4016_v0  ;;  %2971 = vmatpush1.bf16.msra.mxu0 %v3265_v50  ;;  %v3330_v50 = vcombine.high %v1286_v41, %v1290_v42  ;;  %v3329_v23 = vcombine.low %v1286_v41, %v1290_v42  ;;  %v1338_v49 = vld [vmem:[#allocation9 + $0x7b8] sm:$0xff] }
 0x531   :  { %3002 = vmatprep.mubr.bf16.mxu0 %v4016_v0  ;;  %2886 = vmatprep.subr.bf16.mxu1 %v3272_v51  ;;  %v3287_v0 = vcombine.low %v1245_v61, %v1249_v62  ;;  %v1293_v51 = vld [vmem:[#allocation9 + $0x650] sm:$0xff]  ;;  %v1302_v61 = vld [vmem:[#allocation9 + $0x698] sm:$0xff]  ;;  %v3377_v42 = vcombine.low %v1334_v48, %v1338_v49 }
 0x532   :  { %2972 = vmatprep.subr.bf16.mxu0 %v3274_v53  ;;  %v1298_v53 = vld [vmem:[#allocation9 + $0x678] sm:$0xff]  ;;  %v3335_v3 = vcombine.low %v1293_v51, %v1297_v52 }
 0x533   :  { %2887 = vmatpush1.bf16.msra.mxu1 %v3271_v56  ;;  %v3336_v56 = vcombine.high %v1293_v51, %v1297_v52  ;;  %v1306_v62 = vld [vmem:[#allocation9 + $0x6b8] sm:$0xff]  ;;  %v3337_v5 = vcombine.low %v1294_v1, %v1298_v53 }
 0x534   :  { %2973 = vmatpush1.bf16.msra.mxu0 %v3273_v57  ;;  %2888 = vmatprep.subr.bf16.mxu1 %v3280_v58  ;;  %v3338_v57 = vcombine.high %v1294_v1, %v1298_v53  ;;  %v1301_v58 = vld [vmem:[#allocation9 + $0x690] sm:$0xff]  ;;  %v3345_v20 = vcombine.low %v1302_v61, %v1306_v62  ;;  %v1342_v39 = vld [vmem:[#allocation9 + $0x7d8] sm:$0xff] }
 0x535   :  { %2974 = vmatprep.subr.bf16.mxu0 %v3282_v60  ;;  %v1305_v60 = vld [vmem:[#allocation9 + $0x6b0] sm:$0xff]  ;;  %v1346_v40 = vld [vmem:[#allocation9 + $0x7f8] sm:$0xff] }
 0x536   :  { %v3343_v18 = vcombine.low %v1301_v58, %v1305_v60  ;;  %v1347_v51 = vld [vmem:[%s4073_s14] sm:$0xff]  ;;  %s3706_s14 = smov [#allocation11]  }
 0x537   :  { %2889 = vmatpush1.bf16.msra.mxu1 %v3279_v8  ;;  %v3344_v8 = vcombine.high %v1301_v58, %v1305_v60  ;;  %v1352_v52 = vrot.slane %v1347_v51, %v3849_v11  ;;  %v1360_v1 = vrot.slane %v1347_v51, %v3855_v13  ;;  %v1356_v53 = vrot.slane %v1347_v51, %v3846_v10  ;;  %s3034_s17 = sshll.u32 %s3706_s14, 4  ;;  %s3035_s17 = int_to_ptr.vmem [resolvable:$true] %s3034_s17 }
 0x538   :  { %2975 = vmatpush1.bf16.msra.mxu0 %v3281_v22  ;;  %2890 = vmatprep.subr.bf16.mxu1 %v3288_v9  ;;  %v3346_v22 = vcombine.high %v1302_v61, %v1306_v62  ;;  %v1309_v9 = vld [vmem:[#allocation9 + $0x6d0] sm:$0xff]  ;;  %s3662_s20 = scalar_lea.vmem %s3035_s17, 2048  ;;  %p3667_p5 = scmp.lt.s32.totalorder %s3035_s17, %s3035_s17 }
 0x539   :  { %2976 = vmatprep.subr.bf16.mxu0 %v3290_v14  ;;  %v1313_v14 = vld [vmem:[#allocation9 + $0x6f0] sm:$0xff]  ;;  %p3663_p4 = scmp.ne.s32.totalorder %s3035_s17, %s3662_s20  ;;  %p3668_p6 = scmp.lt.s32.totalorder %s3662_s20, %s3662_s20 }
 0x53a   :  { %v3351_v30 = vcombine.low %v1309_v9, %v1313_v14 }
 0x53b   :  { %2891 = vmatpush1.bf16.msra.mxu1 %v3287_v0  ;;  %v3352_v0 = vcombine.high %v1309_v9, %v1313_v14  ;;  %v1367_v9 = vsub.s32 4, %v3843_v7  ;;  %v1375_v14 = vsub.s32 6, %v3843_v7  ;;  %p3669_p7 = por %p3668_p6, %p3667_p5 }
 0x53c   :  { %2977 = vmatpush1.bf16.msra.mxu0 %v3289_v24  ;;  %2892 = vmatprep.subr.bf16.mxu1 %v3296_v25  ;;  %v3354_v24 = vcombine.high %v1310_v16, %v1314_v17  ;;  %v1317_v25 = vld [vmem:[#allocation9 + $0x710] sm:$0xff]  ;;  %v1371_v16 = vsub.s32 5, %v3843_v7  ;;  %v1379_v17 = vsub.s32 7, %v3843_v7 }
 0x53d   :  { %2978 = vmatprep.subr.bf16.mxu0 %v3298_v27  ;;  %v1321_v27 = vld [vmem:[#allocation9 + $0x730] sm:$0xff]  ;;  %p3670_p8 = pnand %p3669_p7, %p3663_p4 }
 0x53e   :  { %v3359_v54 = vcombine.low %v1317_v25, %v1321_v27 }
 0x53f   :  { %2893 = vmatpush1.bf16.msra.mxu1 %v3295_v32  ;;  %v3360_v32 = vcombine.high %v1317_v25, %v1321_v27 }
 0x540   :  { %2979 = vmatpush1.bf16.msra.mxu0 %v3297_v2  ;;  %2894 = vmatprep.subr.bf16.mxu1 %v3304_v33  ;;  %v3362_v2 = vcombine.high %v1318_v28, %v1322_v29  ;;  %v1325_v33 = vld [vmem:[#allocation9 + $0x750] sm:$0xff] }
 0x541   :  { %2980 = vmatprep.subr.bf16.mxu0 %v3306_v34  ;;  %v1329_v34 = vld [vmem:[#allocation9 + $0x770] sm:$0xff] }
 0x542   :  { %v3367_v55 = vcombine.low %v1325_v33, %v1329_v34 }
 0x543   :  { %2895 = vmatpush1.bf16.msra.mxu1 %v3303_v6  ;;  %v3368_v6 = vcombine.high %v1325_v33, %v1329_v34 }
 0x544   :  { %2981 = vmatpush1.bf16.msra.mxu0 %v3305_v44  ;;  %2896 = vmatprep.subr.bf16.mxu1 %v3312_v45  ;;  %v3370_v44 = vcombine.high %v1326_v35, %v1330_v36  ;;  %v1333_v45 = vld [vmem:[#allocation9 + $0x790] sm:$0xff] }
 0x545   :  { %2982 = vmatprep.subr.bf16.mxu0 %v3314_v46  ;;  %v1337_v46 = vld [vmem:[#allocation9 + $0x7b0] sm:$0xff] }
 0x546   :  { %v3375_v41 = vcombine.low %v1333_v45, %v1337_v46 }
 0x547   :  { %2897 = vmatpush1.bf16.msra.mxu1 %v3311_v37  ;;  %v3376_v37 = vcombine.high %v1333_v45, %v1337_v46 }
 0x548   :  { %2983 = vmatpush1.bf16.msra.mxu0 %v3313_v63  ;;  %2898 = vmatprep.subr.bf16.mxu1 %v3320_v38  ;;  %v3378_v63 = vcombine.high %v1334_v48, %v1338_v49  ;;  %v1341_v38 = vld [vmem:[#allocation9 + $0x7d0] sm:$0xff] }
 0x549   :  { %2984 = vmatprep.subr.bf16.mxu0 %v3322_v12  ;;  %v1345_v12 = vld [vmem:[#allocation9 + $0x7f0] sm:$0xff] }
 0x54b   :  { %2899 = vmatpush1.bf16.msra.mxu1 %v3319_v4  ;;  %v3384_v4 = vcombine.high %v1341_v38, %v1345_v12 }
 0x54c   :  { %2985 = vmatpush1.bf16.msra.mxu0 %v3321_v43  ;;  %2900 = vmatprep.subr.bf16.mxu1 %v3328_v47  ;;  %v3386_v43 = vcombine.high %v1342_v39, %v1346_v40  ;;  %v3383_v47 = vcombine.low %v1341_v38, %v1345_v12 }
 0x54d   :  { %2986 = vmatprep.subr.bf16.mxu0 %v3330_v50  ;;  %v3385_v50 = vcombine.low %v1342_v39, %v1346_v40 }
 0x54f   :  { %2901 = vmatpush1.bf16.msra.mxu1 %v3327_v21  ;;  %v1364_v21 = vrot.slane %v1347_v51, %v3861_v19 }
 0x550   :  { %2987 = vmatpush1.bf16.msra.mxu0 %v3329_v23  ;;  %2902 = vmatprep.subr.bf16.mxu1 %v3336_v56 }
 0x551   :  { %2988 = vmatprep.subr.bf16.mxu0 %v3338_v57 }
 0x553   :  { %2903 = vmatpush1.bf16.msra.mxu1 %v3335_v3 }
 0x554   :  { %2989 = vmatpush1.bf16.msra.mxu0 %v3337_v5  ;;  %2904 = vmatprep.subr.bf16.mxu1 %v3344_v8 }
 0x555   :  { %2990 = vmatprep.subr.bf16.mxu0 %v3346_v22 }
 0x557   :  { %2905 = vmatpush1.bf16.msra.mxu1 %v3343_v18  ;;  %v1368_v18 = vrot.slane %v1347_v51, %v1367_v9 }
 0x558   :  { %2991 = vmatpush1.bf16.msra.mxu0 %v3345_v20  ;;  %2906 = vmatprep.subr.bf16.mxu1 %v3352_v0  ;;  %v1376_v20 = vrot.slane %v1347_v51, %v1375_v14  ;;  %v1372_v0 = vrot.slane %v1347_v51, %v1371_v16 }
 0x559   :  { %2992 = vmatprep.subr.bf16.mxu0 %v3354_v24  ;;  %v1380_v24 = vrot.slane %v1347_v51, %v1379_v17 }
 0x55b   :  { %2907 = vmatpush1.bf16.msra.mxu1 %v3351_v30 }
 0x55c   :  { %2993 = vmatpush1.bf16.msra.mxu0 %v3353_v31  ;;  %2908 = vmatprep.subr.bf16.mxu1 %v3360_v32 }
 0x55d   :  { %2994 = vmatprep.subr.bf16.mxu0 %v3362_v2 }
 0x55f   :  { %2909 = vmatpush1.bf16.msra.mxu1 %v3359_v54 }
 0x560   :  { %2995 = vmatpush1.bf16.msra.mxu0 %v3361_v59  ;;  %2910 = vmatprep.subr.bf16.mxu1 %v3368_v6 }
 0x561   :  { %2996 = vmatprep.subr.bf16.mxu0 %v3370_v44 }
 0x563   :  { %2911 = vmatpush1.bf16.msra.mxu1 %v3367_v55 }
 0x564   :  { %2997 = vmatpush1.bf16.msra.mxu0 %v3369_v15  ;;  %2912 = vmatprep.subr.bf16.mxu1 %v3376_v37 }
 0x565   :  { %2998 = vmatprep.subr.bf16.mxu0 %v3378_v63 }
 0x567   :  { %2913 = vmatpush1.bf16.msra.mxu1 %v3375_v41 }
 0x568   :  { %2999 = vmatpush1.bf16.msra.mxu0 %v3377_v42  ;;  %2914 = vmatprep.subr.bf16.mxu1 %v3384_v4 }
 0x569   :  { %3000 = vmatprep.subr.bf16.mxu0 %v3386_v43 }
 0x56b   :  { %2915 = vmatpush1.bf16.msra.mxu1 %v3383_v47 }
 0x56c   :  { %3001 = vmatpush1.bf16.msra.mxu0 %v3385_v50 }
 0x56e   :  { %2917 = vmatmul.mubr.bf16.vlgmr.msra.gmra.mrb[8].mxu1 %v4010_v26 }
 0x56f   :  { %3003 = vmatmul.mubr.bf16.vlgmr.msra.gmra.mrb[12].mxu0 %v4010_v26 }
 0x5c1   :  { %v2746_v23 = vpop.f32.mrb[4].mxu1  ;;  %v2832_v56 = vpop.f32.mrb[8].mxu0 }
 0x5c2   :  { %v3387_v57 = vadd.f32 %v2746_v23, %v1352_v52  ;;  %v3391_v58 = vadd.f32 %v2832_v56, %v1360_v1  ;;  %v2748_v60 = vpop.f32.mrb[5].mxu1  ;;  %v2834_v61 = vpop.f32.mrb[9].mxu0 }
 0x5c3   :  { %v3388_v62 = vadd.f32 %v2748_v60, %v1356_v53  ;;  %v3392_v26 = vadd.f32 %v2834_v61, %v1364_v21  ;;  %v2750_v3 = vpop.f32.mrb[6].mxu1  ;;  %v2836_v5 = vpop.f32.mrb[10].mxu0 }
 0x5c4   :  { %3013 = vst [vmem:[#allocation11] sm:$0xff] %v3387_v57  ;;  %3015 = vst [vmem:[#allocation11 + $0x10] sm:$0xff] %v3391_v58  ;;  %v3389_v8 = vadd.f32 %v2750_v3, %v1352_v52  ;;  %v3393_v11 = vadd.f32 %v2836_v5, %v1360_v1  ;;  %v2752_v22 = vpop.f32.mrb[7].mxu1  ;;  %v2838_v13 = vpop.f32.mrb[11].mxu0 }
 0x5c5   :  { %3014 = vst [vmem:[#allocation11 + $0x8] sm:$0xff] %v3388_v62  ;;  %3016 = vst [vmem:[#allocation11 + $0x18] sm:$0xff] %v3392_v26  ;;  %v3390_v10 = vadd.f32 %v2752_v22, %v1356_v53  ;;  %v3394_v19 = vadd.f32 %v2838_v13, %v1364_v21 }
 0x5c6   :  { %3021 = vst [vmem:[#allocation11 + $0x40] sm:$0xff] %v3389_v8  ;;  %3023 = vst [vmem:[#allocation11 + $0x50] sm:$0xff] %v3393_v11 }
 0x5c7   :  { %3022 = vst [vmem:[#allocation11 + $0x48] sm:$0xff] %v3390_v10  ;;  %3024 = vst [vmem:[#allocation11 + $0x58] sm:$0xff] %v3394_v19 }
 0x641   :  { %v2918_v25 = vpop.f32.mrb[8].mxu1 }
 0x642   :  { %v3395_v27 = vadd.f32 %v2918_v25, %v1368_v18  ;;  %v3004_v28 = vpop.f32.mrb[12].mxu0  ;;  %v2920_v29 = vpop.f32.mrb[9].mxu1 }
 0x643   :  { %v3399_v30 = vadd.f32 %v3004_v28, %v1376_v20  ;;  %v3396_v31 = vadd.f32 %v2920_v29, %v1372_v0  ;;  %v3006_v32 = vpop.f32.mrb[13].mxu0  ;;  %v2922_v2 = vpop.f32.mrb[10].mxu1 }
 0x644   :  { %3017 = vst [vmem:[#allocation11 + $0x20] sm:$0xff] %v3395_v27  ;;  %v3400_v33 = vadd.f32 %v3006_v32, %v1380_v24  ;;  %v3397_v34 = vadd.f32 %v2922_v2, %v1368_v18  ;;  %v3008_v35 = vpop.f32.mrb[14].mxu0  ;;  %v2924_v36 = vpop.f32.mrb[11].mxu1 }
 0x645   :  { %3019 = vst [vmem:[#allocation11 + $0x30] sm:$0xff] %v3399_v30  ;;  %3018 = vst [vmem:[#allocation11 + $0x28] sm:$0xff] %v3396_v31  ;;  %v3401_v7 = vadd.f32 %v3008_v35, %v1376_v20  ;;  %v3398_v54 = vadd.f32 %v2924_v36, %v1372_v0  ;;  %v3010_v59 = vpop.f32.mrb[15].mxu0 }
 0x646   :  { %3020 = vst [vmem:[#allocation11 + $0x38] sm:$0xff] %v3400_v33  ;;  %3025 = vst [vmem:[#allocation11 + $0x60] sm:$0xff] %v3397_v34  ;;  %v3402_v6 = vadd.f32 %v3010_v59, %v1380_v24 }
 0x647   :  { %3027 = vst [vmem:[#allocation11 + $0x70] sm:$0xff] %v3401_v7  ;;  %3026 = vst [vmem:[#allocation11 + $0x68] sm:$0xff] %v3398_v54 }
 0x648   :  { %3028 = vst [vmem:[#allocation11 + $0x78] sm:$0xff] %v3402_v6 }
 0x649   :  { %3673 = shalt.err (!%p3670_p8)
}
 0x64a   :  { %s4077_s22 = sld [smem:[#allocation16_spill]] }
 0x650   :  { %s3674_s23 = scalar_lea.hbm %s4077_s22, 2048 }
 0x651   :  { %p3675_p9 = scmp.ne.s32.totalorder %s4077_s22, %s3674_s23  ;;  %p3678_p10 = scmp.lt.u32.totalorder %s3674_s23, %s4077_s22 }
 0x653   :  { %p3680_p11 = pnand %p3678_p10, %p3675_p9 }
 0x655   :  { %3683 = shalt.err (!%p3680_p11)
}
 0x656   :  { %s3707_s0 = smov 1024   ;;  %s3708_s13 = smov 64  }
 0x657   :  { %3040 = dma.vmem_to_hbm [thread:$0]  %s3035_s17, 2048, %s4077_s22, [#allocation5], %s3707_s0, %s3707_s0, %s3708_s13  }
 0x658   :  { %3690 = dma.done.wait [#allocation5], 2048  }
 0x659   :  { %3691 = vsyncadd [#allocation5], 4294965248 }
 0x65a   :  { %3044 = vsyncpa [#allocation4], 1 }
 0x65b   :  { %3045 = vsyncpa [#allocation7], 1 }
 0x65c   :  { %3046 = vsyncpa [#allocation10], 1 }
 0x65d   :  { %3047 = vsyncpa [#allocation5], 1 }

</bundles_post_ra>
